<compile_context>
chip_gen: v5e
topology: v5e:2x2
jax: 0.10.0
libtpu: 0.0.40
codegen_flags: <defaults>
</compile_context>

<pallas_src>
import functools
import math

import jax
import jax.numpy as jnp
import numpy as np
from jax.experimental import pallas as pl
from jax.experimental.pallas import tpu as pltpu

LN_EPS = 1e-5      # nn.LayerNorm default eps
ATTN_EPS = 1e-6    # LinearAttention eps


# ----------------------------- Pallas kernel -----------------------------
def _class_tx_kernel(x_ref, g_ref,
                     wx_ref, wg_ref, bqkv_ref, mask_ref,
                     w1_ref, b1_ref, w2_ref, b2_ref,
                     o_ref, *, mm_dtype):
    def cast(t):
        return t.astype(mm_dtype)

    x = x_ref[...]                                   # (BN, L, C) f32
    BN, L, C = x.shape
    rows = BN * L

    # ---- LayerNorm 1 (affine folded into wx/bqkv in the wrapper) ----
    mu = jnp.mean(x, axis=-1, keepdims=True)
    xc = x - mu
    var = jnp.mean(xc * xc, axis=-1, keepdims=True)
    xn = (xc * jax.lax.rsqrt(var + LN_EPS)).reshape(rows, C)

    # ---- fused q|k|v projection: qkv = xn @ Wx + g @ Wg + b  (no [xn, g] concat) ----
    g2 = g_ref[...].reshape(rows, -1)
    qkv = (jnp.dot(cast(xn), wx_ref[...], preferred_element_type=jnp.float32)
           + jnp.dot(cast(g2), wg_ref[...], preferred_element_type=jnp.float32)
           + bqkv_ref[...])                          # (rows, 3C) f32

    q = qkv[:, :C]
    k = qkv[:, C:2 * C]
    v = qkv[:, 2 * C:]

    # elu(x)+1 feature map (exp arg clamped so the unselected branch stays finite in bf16 too)
    Q = jnp.where(q > 0, q + 1.0, jnp.exp(jnp.minimum(q, 0.0))).reshape(BN, L, C)
    K = jnp.where(k > 0, k + 1.0, jnp.exp(jnp.minimum(k, 0.0))).reshape(BN, L, C)
    Vs = (v * (1.0 / float(L))).reshape(BN, L, C)    # values / v_length

    # ---- linear attention, all heads at once via block-diagonal head mask ----
    #   KV[b,c,v]   = sum_l K[b,l,c] * Vs[b,l,v]      (masked to same-head (c,v) blocks)
    #   O[b,l,v]    = sum_c Q[b,l,c] * KVm[b,c,v]
    #   Zden[b,l,v] = sum_{c in head(v)} Q[b,l,c] * Ksum[b,c]
    mask = mask_ref[...]                             # (C, C) same-head indicator
    # Single full-width transpose (replaces 4 per-head 8-lane slices/transposes + concat);
    # kept explicit to stay on proven batched dot_general dimension numbers — Mosaic would
    # insert the same relayout if the transpose were folded into the einsum subscripts.
    KT = jnp.swapaxes(K, 1, 2)                       # (BN, C, L)
    KV = jnp.einsum('bcl,blv->bcv', cast(KT), cast(Vs),
                    preferred_element_type=jnp.float32)          # (BN, C, C)
    KV = KV * mask[None]
    O = jnp.einsum('blc,bcv->blv', cast(Q), cast(KV),
                   preferred_element_type=jnp.float32)           # (BN, L, C)
    Ksum = jnp.sum(K, axis=1)                        # (BN, C)
    P = (Q * Ksum[:, None, :]).reshape(rows, C)
    Zden = (jnp.dot(cast(P), cast(mask), preferred_element_type=jnp.float32)
            .reshape(BN, L, C) + ATTN_EPS)
    attn = O * (float(L) * pl.reciprocal(Zden, approx=True))

    x1 = x_ref[...] + attn                           # residual (re-read x; short live range)

    # ---- LayerNorm 2 (affine folded into w1/b1) + MLP + residual ----
    mu2 = jnp.mean(x1, axis=-1, keepdims=True)
    xc2 = x1 - mu2
    var2 = jnp.mean(xc2 * xc2, axis=-1, keepdims=True)
    x2n = (xc2 * jax.lax.rsqrt(var2 + LN_EPS)).reshape(rows, C)

    h1 = jnp.dot(cast(x2n), w1_ref[...], preferred_element_type=jnp.float32) + b1_ref[...]
    h1 = jnp.maximum(h1, 0.0)
    mlp = jnp.dot(cast(h1), w2_ref[...], preferred_element_type=jnp.float32) + b2_ref[...]
    o_ref[...] = x1 + mlp.reshape(BN, L, C)


# ------------------------- host-side prep / launch -------------------------
def _choose_grid_steps(N, L, max_rows=1024):
    """Smallest grid-step count (>=2 when possible, so both v7x TensorCores get work) that
    divides N and keeps the per-step row count BN*L <= max_rows (vreg / VMEM pressure)."""
    start = 2 if N > 1 else 1
    for g in range(start, N + 1):
        if N % g == 0 and (N // g) * L <= max_rows:
            return g
    return N


def _prep_weights(params, C, Cg, nheads, mm_dtype):
    """Fold LayerNorm affines into downstream weights and fuse q/k/v into one wide matmul."""
    n1g = params['n1g'].reshape(C)
    n1b = params['n1b'].reshape(C)
    n2g = params['n2g'].reshape(C)
    n2b = params['n2b'].reshape(C)

    qw_x, qw_g = params['qw'][:C], params['qw'][C:]
    kw_x, kw_g = params['kw'][:C], params['kw'][C:]
    vw = params['vw']

    # LayerNorm-1 affine folded into the x-facing parts: (xn*g1+b1) @ W = xn @ (diag(g1)W) + b1@W
    wx = jnp.concatenate([n1g[:, None] * qw_x,
                          n1g[:, None] * kw_x,
                          n1g[:, None] * vw], axis=1)                           # (C, 3C)
    wg = jnp.concatenate([qw_g, kw_g, jnp.zeros((Cg, C), qw_g.dtype)], axis=1)  # (Cg, 3C)
    bqkv = jnp.concatenate([params['qb'] + n1b @ qw_x,
                            params['kb'] + n1b @ kw_x,
                            params['vb'] + n1b @ vw], axis=1)                   # (1, 3C)

    # LayerNorm-2 affine folded into the first MLP layer.
    w1 = n2g[:, None] * params['w1']                                            # (C, 4C)
    b1 = params['b1'] + n2b @ params['w1']                                      # (1, 4C)
    w2, b2 = params['w2'], params['b2']

    # Block-diagonal head mask: 1 where both channels belong to the same head.
    D = C // nheads
    head = jnp.arange(C) // D
    mask = (head[:, None] == head[None, :]).astype(jnp.float32)                 # (C, C)

    wx, wg, w1, w2 = (w.astype(mm_dtype) for w in (wx, wg, w1, w2))
    return [wx, wg, bqkv, mask, w1, b1, w2, b2]


def _seq_block_pallas(x_seq, g_seq, params, nheads, mm_dtype=jnp.float32):
    N, L, C = x_seq.shape
    Cg = g_seq.shape[-1]
    G = _choose_grid_steps(N, L)
    BN = N // G

    weights = _prep_weights(params, C, Cg, nheads, mm_dtype)
    w_specs = [pl.BlockSpec(w.shape, lambda i: (0, 0)) for w in weights]  # constant 2-D blocks

    rows = N * L
    flops = int(2 * rows * (C + Cg) * 3 * C          # fused qkv projection
                + 4 * rows * C * C                   # attention KV + O
                + 2 * rows * C * C                   # attention denominator
                + 16 * rows * C * C)                 # MLP (C -> 4C -> C)
    transcendentals = int(rows * (3 * C + 2))        # elu-exp (q,k), reciprocal, 2x rsqrt
    bytes_accessed = int(4 * (2 * x_seq.size + g_seq.size)
                         + sum(int(w.size) * w.dtype.itemsize for w in weights))

    return pl.pallas_call(
        functools.partial(_class_tx_kernel, mm_dtype=mm_dtype),
        out_shape=jax.ShapeDtypeStruct((N, L, C), jnp.float32),
        grid_spec=pltpu.PrefetchScalarGridSpec(
            num_scalar_prefetch=0,
            grid=(G,),
            in_specs=[pl.BlockSpec((BN, L, C), lambda i: (i, 0, 0)),
                      pl.BlockSpec((BN, L, Cg), lambda i: (i, 0, 0))] + w_specs,
            out_specs=pl.BlockSpec((BN, L, C), lambda i: (i, 0, 0)),
        ),
        compiler_params=pltpu.CompilerParams(dimension_semantics=("parallel",)),
        cost_estimate=pl.CostEstimate(flops=flops, transcendentals=transcendentals,
                                      bytes_accessed=bytes_accessed),
    )(x_seq, g_seq, *weights)


# ------------------------- pure-JAX reference block -------------------------
def _seq_block_ref(x, g, p, nheads):
    N, L, C = x.shape
    D = C // nheads

    def ln(z, gamma, beta):
        mu = z.mean(-1, keepdims=True)
        var = ((z - mu) ** 2).mean(-1, keepdims=True)
        return (z - mu) / jnp.sqrt(var + LN_EPS) * gamma + beta

    xn = ln(x, p['n1g'], p['n1b'])
    xg = jnp.concatenate([xn, g], axis=-1)
    q = xg @ p['qw'] + p['qb']
    k = xg @ p['kw'] + p['kb']
    v = xn @ p['vw'] + p['vb']
    q = q.reshape(N, L, nheads, D)
    k = k.reshape(N, L, nheads, D)
    v = v.reshape(N, L, nheads, D)
    Q = jnp.where(q > 0, q + 1.0, jnp.exp(q))
    K = jnp.where(k > 0, k + 1.0, jnp.exp(k))
    v = v / L
    KV = jnp.einsum('nshd,nshv->nhdv', K, v)
    Z = 1.0 / (jnp.einsum('nlhd,nhd->nlh', Q, K.sum(axis=1)) + ATTN_EPS)
    out = jnp.einsum('nlhd,nhdv,nlh->nlhv', Q, KV, Z) * L
    x1 = x + out.reshape(N, L, C)
    x2n = ln(x1, p['n2g'], p['n2b'])
    h = jnp.maximum(x2n @ p['w1'] + p['b1'], 0.0)
    return x1 + h @ p['w2'] + p['b2']


# ----------------------------- module wrapper -----------------------------
def _interp_matrix(dst, src):
    """Row-weight matrix for 1D bilinear interpolation with align_corners=True."""
    if src == 1:
        return jnp.ones((dst, 1), jnp.float32)
    pos = jnp.arange(dst, dtype=jnp.float32) * (src - 1) / (dst - 1)
    lo = jnp.clip(jnp.floor(pos).astype(jnp.int32), 0, src - 2)
    frac = pos - lo.astype(jnp.float32)
    rows = jnp.arange(dst)
    M = jnp.zeros((dst, src), jnp.float32)
    M = M.at[rows, lo].add(1.0 - frac)
    M = M.at[rows, lo + 1].add(frac)
    return M


def class_transformer_layer(x, guidance, params, *, nheads=4,
                            pooling_size=(4, 4), pad_len=16, use_pallas=True,
                            mm_dtype=jnp.float32):
    B, C, T, H, W = x.shape
    ph, pw = pooling_size
    Hp, Wp = H // ph, W // pw

    # AvgPool2d over (H, W) per (B, T) slice.
    xp = x.reshape(B, C, T, Hp, ph, Wp, pw).mean(axis=(4, 6))   # (B, C, T, Hp, Wp)

    # Pad token axis to pad_len with the (zero-initialized) padding parameters.
    Tp = T
    if pad_len > 0 and T < pad_len:
        Tp = pad_len
        pad_tok = jnp.broadcast_to(params['padding_tokens'].reshape(1, C, 1, 1, 1),
                                   (B, C, pad_len - T, Hp, Wp))
        xp = jnp.concatenate([xp, pad_tok], axis=2)
        Cg = params['padding_guidance'].shape[-1]
        pad_g = jnp.broadcast_to(params['padding_guidance'].reshape(1, 1, Cg),
                                 (B, pad_len - T, Cg))
        guidance = jnp.concatenate([guidance, pad_g], axis=1)

    Cg = guidance.shape[-1]
    # (B, C, Tp, Hp, Wp) -> (B*Hp*Wp, Tp, C)   (same (b, h, w) flattening order as rearrange)
    x_seq = xp.transpose(0, 3, 4, 2, 1).reshape(B * Hp * Wp, Tp, C)
    g_seq = jnp.broadcast_to(guidance[:, None, None],
                             (B, Hp, Wp, Tp, Cg)).reshape(B * Hp * Wp, Tp, Cg)

    if use_pallas:
        out_seq = _seq_block_pallas(x_seq, g_seq, params, nheads, mm_dtype=mm_dtype)
    else:
        out_seq = _seq_block_ref(x_seq, g_seq, params, nheads)

    # back to (B, Tp, C, Hp, Wp), bilinear upsample (align_corners=True) to (H, W)
    out5 = out_seq.reshape(B, Hp, Wp, Tp, C).transpose(0, 3, 4, 1, 2)
    # TODO(synk): bilinear upsampling + avg-pool kept in plain JAX (pure data movement / tiny reduction).
    Mh = _interp_matrix(H, Hp)
    Mw = _interp_matrix(W, Wp)
    up = jnp.einsum('Hh,Ww,btchw->btcHW', Mh, Mw, out5)          # (B, Tp, C, H, W)
    up = up.transpose(0, 2, 1, 3, 4)[:, :, :T]                   # (B, C, T, H, W)
    return x + up


# ----------------------------- parameter init -----------------------------
def init_params(key, hidden_dim, guidance_dim):
    ks = jax.random.split(key, 5)

    def lin(k, fan_in, fan_out):
        kw, kb = jax.random.split(k)
        bound = 1.0 / math.sqrt(fan_in)
        w = jax.random.uniform(kw, (fan_in, fan_out), jnp.float32, -bound, bound)
        b = jax.random.uniform(kb, (1, fan_out), jnp.float32, -bound, bound)
        return w, b

    qw, qb = lin(ks[0], hidden_dim + guidance_dim, hidden_dim)
    kw, kb = lin(ks[1], hidden_dim + guidance_dim, hidden_dim)
    vw, vb = lin(ks[2], hidden_dim, hidden_dim)
    w1, b1 = lin(ks[3], hidden_dim, hidden_dim * 4)
    w2, b2 = lin(ks[4], hidden_dim * 4, hidden_dim)
    return dict(
        qw=qw, qb=qb, kw=kw, kb=kb, vw=vw, vb=vb,
        n1g=jnp.ones((1, hidden_dim), jnp.float32), n1b=jnp.zeros((1, hidden_dim), jnp.float32),
        n2g=jnp.ones((1, hidden_dim), jnp.float32), n2b=jnp.zeros((1, hidden_dim), jnp.float32),
        w1=w1, b1=b1, w2=w2, b2=b2,
        padding_tokens=jnp.zeros((1, 1, hidden_dim), jnp.float32),
        padding_guidance=jnp.zeros((1, 1, guidance_dim), jnp.float32),
    )


if __name__ == "__main__":
    hidden_dim, guidance_dim, nheads = 32, 32, 4
    B, T, H, W = 2, 8, 16, 16
    pad_len = 16

    key = jax.random.PRNGKey(0)
    kx, kg, kp = jax.random.split(key, 3)
    x = jax.random.normal(kx, (B, hidden_dim, T, H, W), jnp.float32)
    guidance = jax.random.normal(kg, (B, T, guidance_dim), jnp.float32)
    params = init_params(kp, hidden_dim, guidance_dim)

    out = class_transformer_layer(x, guidance, params, nheads=nheads,
                                  pooling_size=(4, 4), pad_len=pad_len, use_pallas=True)
    out = jax.block_until_ready(out)
    assert out.shape == x.shape and out.dtype == jnp.float32

    ref = class_transformer_layer(x, guidance, params, nheads=nheads,
                                  pooling_size=(4, 4), pad_len=pad_len, use_pallas=False)
    ref = jax.block_until_ready(ref)
    np.testing.assert_allclose(np.asarray(out), np.asarray(ref), rtol=1e-2, atol=1e-2)

    print("KERNEL_OK")
</pallas_src>

<mosaic_0001>
module attributes {stable_mosaic.version = 11 : i64} {
  func.func @_class_tx_kernel(%arg0: i32, %arg1: memref<16x16x32xf32, #tpu.memory_space<vmem>>, %arg2: memref<16x16x32xf32, #tpu.memory_space<vmem>>, %arg3: memref<32x96xf32, #tpu.memory_space<vmem>>, %arg4: memref<32x96xf32, #tpu.memory_space<vmem>>, %arg5: memref<1x96xf32, #tpu.memory_space<vmem>>, %arg6: memref<32x32xf32, #tpu.memory_space<vmem>>, %arg7: memref<32x128xf32, #tpu.memory_space<vmem>>, %arg8: memref<1x128xf32, #tpu.memory_space<vmem>>, %arg9: memref<128x32xf32, #tpu.memory_space<vmem>>, %arg10: memref<1x32xf32, #tpu.memory_space<vmem>>, %arg11: memref<16x16x32xf32, #tpu.memory_space<vmem>>) attributes {dimension_semantics = [#tpu.dimension_semantics<parallel>], iteration_bounds = array<i64: 2>, scalar_prefetch = 0 : i64, scratch_operands = 0 : i64, tpu.core_type = #tpu.core_type<tc>, window_params = [{transform_indices = @transform_0, window_bounds = array<i64: 16, 16, 32>}, {transform_indices = @transform_1, window_bounds = array<i64: 16, 16, 32>}, {pipeline_mode = #tpu.pipeline_mode<synchronous>, transform_indices = @transform_2, window_bounds = array<i64: 32, 96>}, {pipeline_mode = #tpu.pipeline_mode<synchronous>, transform_indices = @transform_3, window_bounds = array<i64: 32, 96>}, {pipeline_mode = #tpu.pipeline_mode<synchronous>, transform_indices = @transform_4, window_bounds = array<i64: 1, 96>}, {pipeline_mode = #tpu.pipeline_mode<synchronous>, transform_indices = @transform_5, window_bounds = array<i64: 32, 32>}, {pipeline_mode = #tpu.pipeline_mode<synchronous>, transform_indices = @transform_6, window_bounds = array<i64: 32, 128>}, {pipeline_mode = #tpu.pipeline_mode<synchronous>, transform_indices = @transform_7, window_bounds = array<i64: 1, 128>}, {pipeline_mode = #tpu.pipeline_mode<synchronous>, transform_indices = @transform_8, window_bounds = array<i64: 128, 32>}, {pipeline_mode = #tpu.pipeline_mode<synchronous>, transform_indices = @transform_9, window_bounds = array<i64: 1, 32>}, {transform_indices = @transform_10, window_bounds = array<i64: 16, 16, 32>}]} {
    %c0 = arith.constant 0 : index
    %c0_0 = arith.constant 0 : index
    %c0_1 = arith.constant 0 : index
    %0 = vector.load %arg1[%c0, %c0_0, %c0_1] : memref<16x16x32xf32, #tpu.memory_space<vmem>>, vector<16x16x32xf32>
    %cst = arith.constant dense<0.000000e+00> : vector<16x16xf32>
    %1 = vector.multi_reduction <add>, %0, %cst [2] : vector<16x16x32xf32> to vector<16x16xf32>
    %2 = vector.shape_cast %1 : vector<16x16xf32> to vector<16x16x1xf32>
    %cst_2 = arith.constant 3.200000e+01 : f32
    %3 = vector.broadcast %cst_2 : f32 to vector<16x16x1xf32>
    %4 = arith.divf %2, %3 : vector<16x16x1xf32>
    %5 = vector.broadcast %4 : vector<16x16x1xf32> to vector<16x16x32xf32>
    %6 = arith.subf %0, %5 : vector<16x16x32xf32>
    %7 = arith.mulf %6, %6 : vector<16x16x32xf32>
    %cst_3 = arith.constant dense<0.000000e+00> : vector<16x16xf32>
    %8 = vector.multi_reduction <add>, %7, %cst_3 [2] : vector<16x16x32xf32> to vector<16x16xf32>
    %9 = vector.shape_cast %8 : vector<16x16xf32> to vector<16x16x1xf32>
    %cst_4 = arith.constant 3.200000e+01 : f32
    %10 = vector.broadcast %cst_4 : f32 to vector<16x16x1xf32>
    %11 = arith.divf %9, %10 : vector<16x16x1xf32>
    %cst_5 = arith.constant 9.99999974E-6 : f32
    %12 = vector.broadcast %cst_5 : f32 to vector<16x16x1xf32>
    %13 = arith.addf %11, %12 : vector<16x16x1xf32>
    %14 = math.rsqrt %13 : vector<16x16x1xf32>
    %15 = vector.broadcast %14 : vector<16x16x1xf32> to vector<16x16x32xf32>
    %16 = arith.mulf %6, %15 : vector<16x16x32xf32>
    %17 = vector.shape_cast %16 : vector<16x16x32xf32> to vector<256x32xf32>
    %c0_6 = arith.constant 0 : index
    %c0_7 = arith.constant 0 : index
    %c0_8 = arith.constant 0 : index
    %18 = vector.load %arg2[%c0_6, %c0_7, %c0_8] : memref<16x16x32xf32, #tpu.memory_space<vmem>>, vector<16x16x32xf32>
    %19 = vector.shape_cast %18 : vector<16x16x32xf32> to vector<256x32xf32>
    %c0_9 = arith.constant 0 : index
    %c0_10 = arith.constant 0 : index
    %20 = vector.load %arg3[%c0_9, %c0_10] : memref<32x96xf32, #tpu.memory_space<vmem>>, vector<32x96xf32>
    %cst_11 = arith.constant dense<0.000000e+00> : vector<256x96xf32>
    %21 = tpu.matmul %17, %20, %cst_11 {dimension_numbers = #tpu.dot_dimension_numbers<[1], [0], [0], [1], [0, 0, 1, 1], [], []>} : vector<256x32xf32>, vector<32x96xf32>, vector<256x96xf32> -> vector<256x96xf32>
    %c0_12 = arith.constant 0 : index
    %c0_13 = arith.constant 0 : index
    %22 = vector.load %arg4[%c0_12, %c0_13] : memref<32x96xf32, #tpu.memory_space<vmem>>, vector<32x96xf32>
    %cst_14 = arith.constant dense<0.000000e+00> : vector<256x96xf32>
    %23 = tpu.matmul %19, %22, %cst_14 {dimension_numbers = #tpu.dot_dimension_numbers<[1], [0], [0], [1], [0, 0, 1, 1], [], []>} : vector<256x32xf32>, vector<32x96xf32>, vector<256x96xf32> -> vector<256x96xf32>
    %24 = arith.addf %21, %23 : vector<256x96xf32>
    %c0_15 = arith.constant 0 : index
    %c0_16 = arith.constant 0 : index
    %25 = vector.load %arg5[%c0_15, %c0_16] : memref<1x96xf32, #tpu.memory_space<vmem>>, vector<1x96xf32>
    %26 = vector.broadcast %25 : vector<1x96xf32> to vector<256x96xf32>
    %27 = arith.addf %24, %26 : vector<256x96xf32>
    %28 = vector.extract_strided_slice %27 {offsets = [0, 0], sizes = [256, 32], strides = [1, 1]} : vector<256x96xf32> to vector<256x32xf32>
    %29 = vector.extract_strided_slice %27 {offsets = [0, 32], sizes = [256, 32], strides = [1, 1]} : vector<256x96xf32> to vector<256x32xf32>
    %30 = vector.extract_strided_slice %27 {offsets = [0, 64], sizes = [256, 32], strides = [1, 1]} : vector<256x96xf32> to vector<256x32xf32>
    %cst_17 = arith.constant 0.000000e+00 : f32
    %31 = vector.broadcast %cst_17 : f32 to vector<256x32xf32>
    %32 = arith.cmpf ogt, %28, %31 : vector<256x32xf32>
    %cst_18 = arith.constant 1.000000e+00 : f32
    %33 = vector.broadcast %cst_18 : f32 to vector<256x32xf32>
    %34 = arith.addf %28, %33 : vector<256x32xf32>
    %cst_19 = arith.constant 0.000000e+00 : f32
    %35 = vector.broadcast %cst_19 : f32 to vector<256x32xf32>
    %36 = arith.minimumf %28, %35 : vector<256x32xf32>
    %37 = math.exp %36 : vector<256x32xf32>
    %38 = arith.select %32, %34, %37 : vector<256x32xi1>, vector<256x32xf32>
    %39 = vector.shape_cast %38 : vector<256x32xf32> to vector<16x16x32xf32>
    %cst_20 = arith.constant 0.000000e+00 : f32
    %40 = vector.broadcast %cst_20 : f32 to vector<256x32xf32>
    %41 = arith.cmpf ogt, %29, %40 : vector<256x32xf32>
    %cst_21 = arith.constant 1.000000e+00 : f32
    %42 = vector.broadcast %cst_21 : f32 to vector<256x32xf32>
    %43 = arith.addf %29, %42 : vector<256x32xf32>
    %cst_22 = arith.constant 0.000000e+00 : f32
    %44 = vector.broadcast %cst_22 : f32 to vector<256x32xf32>
    %45 = arith.minimumf %29, %44 : vector<256x32xf32>
    %46 = math.exp %45 : vector<256x32xf32>
    %47 = arith.select %41, %43, %46 : vector<256x32xi1>, vector<256x32xf32>
    %48 = vector.shape_cast %47 : vector<256x32xf32> to vector<16x16x32xf32>
    %cst_23 = arith.constant 6.250000e-02 : f32
    %49 = vector.broadcast %cst_23 : f32 to vector<256x32xf32>
    %50 = arith.mulf %30, %49 : vector<256x32xf32>
    %51 = vector.shape_cast %50 : vector<256x32xf32> to vector<16x16x32xf32>
    %c0_24 = arith.constant 0 : index
    %c0_25 = arith.constant 0 : index
    %52 = vector.load %arg6[%c0_24, %c0_25] : memref<32x32xf32, #tpu.memory_space<vmem>>, vector<32x32xf32>
    %53 = tpu.transpose %48, [0, 2, 1] : vector<16x16x32xf32> -> vector<16x32x16xf32>
    "tpu.trace_start"() <{level = 10 : i32, message = "bcl,blv->bcv"}> : () -> ()
    %cst_26 = arith.constant dense<0.000000e+00> : vector<16x32x32xf32>
    %54 = tpu.matmul %53, %51, %cst_26 {dimension_numbers = #tpu.dot_dimension_numbers<[2], [1], [1], [2], [0, 0, 0, 1, 1, 2], [0], [0]>} : vector<16x32x16xf32>, vector<16x16x32xf32>, vector<16x32x32xf32> -> vector<16x32x32xf32>
    "tpu.trace_stop"() : () -> ()
    %55 = vector.shape_cast %52 : vector<32x32xf32> to vector<1x32x32xf32>
    %56 = vector.broadcast %55 : vector<1x32x32xf32> to vector<16x32x32xf32>
    %57 = arith.mulf %54, %56 : vector<16x32x32xf32>
    "tpu.trace_start"() <{level = 10 : i32, message = "blc,bcv->blv"}> : () -> ()
    %cst_27 = arith.constant dense<0.000000e+00> : vector<16x16x32xf32>
    %58 = tpu.matmul %39, %57, %cst_27 {dimension_numbers = #tpu.dot_dimension_numbers<[2], [1], [1], [2], [0, 0, 0, 1, 1, 2], [0], [0]>} : vector<16x16x32xf32>, vector<16x32x32xf32>, vector<16x16x32xf32> -> vector<16x16x32xf32>
    "tpu.trace_stop"() : () -> ()
    %cst_28 = arith.constant dense<0.000000e+00> : vector<16x32xf32>
    %59 = vector.multi_reduction <add>, %48, %cst_28 [1] : vector<16x16x32xf32> to vector<16x32xf32>
    %60 = vector.shape_cast %59 : vector<16x32xf32> to vector<16x1x32xf32>
    %61 = vector.broadcast %60 : vector<16x1x32xf32> to vector<16x16x32xf32>
    %62 = arith.mulf %39, %61 : vector<16x16x32xf32>
    %63 = vector.shape_cast %62 : vector<16x16x32xf32> to vector<256x32xf32>
    %cst_29 = arith.constant dense<0.000000e+00> : vector<256x32xf32>
    %64 = tpu.matmul %63, %52, %cst_29 {dimension_numbers = #tpu.dot_dimension_numbers<[1], [0], [0], [1], [0, 0, 1, 1], [], []>} : vector<256x32xf32>, vector<32x32xf32>, vector<256x32xf32> -> vector<256x32xf32>
    %65 = vector.shape_cast %64 : vector<256x32xf32> to vector<16x16x32xf32>
    %cst_30 = arith.constant 9.99999997E-7 : f32
    %66 = vector.broadcast %cst_30 : f32 to vector<16x16x32xf32>
    %67 = arith.addf %65, %66 : vector<16x16x32xf32>
    %68 = tpu.reciprocal %67 {approx = true} : vector<16x16x32xf32> -> vector<16x16x32xf32>
    %cst_31 = arith.constant 1.600000e+01 : f32
    %69 = vector.broadcast %cst_31 : f32 to vector<16x16x32xf32>
    %70 = arith.mulf %69, %68 : vector<16x16x32xf32>
    %71 = arith.mulf %58, %70 : vector<16x16x32xf32>
    %c0_32 = arith.constant 0 : index
    %c0_33 = arith.constant 0 : index
    %c0_34 = arith.constant 0 : index
    %72 = vector.load %arg1[%c0_32, %c0_33, %c0_34] : memref<16x16x32xf32, #tpu.memory_space<vmem>>, vector<16x16x32xf32>
    %73 = arith.addf %72, %71 : vector<16x16x32xf32>
    %cst_35 = arith.constant dense<0.000000e+00> : vector<16x16xf32>
    %74 = vector.multi_reduction <add>, %73, %cst_35 [2] : vector<16x16x32xf32> to vector<16x16xf32>
    %75 = vector.shape_cast %74 : vector<16x16xf32> to vector<16x16x1xf32>
    %cst_36 = arith.constant 3.200000e+01 : f32
    %76 = vector.broadcast %cst_36 : f32 to vector<16x16x1xf32>
    %77 = arith.divf %75, %76 : vector<16x16x1xf32>
    %78 = vector.broadcast %77 : vector<16x16x1xf32> to vector<16x16x32xf32>
    %79 = arith.subf %73, %78 : vector<16x16x32xf32>
    %80 = arith.mulf %79, %79 : vector<16x16x32xf32>
    %cst_37 = arith.constant dense<0.000000e+00> : vector<16x16xf32>
    %81 = vector.multi_reduction <add>, %80, %cst_37 [2] : vector<16x16x32xf32> to vector<16x16xf32>
    %82 = vector.shape_cast %81 : vector<16x16xf32> to vector<16x16x1xf32>
    %cst_38 = arith.constant 3.200000e+01 : f32
    %83 = vector.broadcast %cst_38 : f32 to vector<16x16x1xf32>
    %84 = arith.divf %82, %83 : vector<16x16x1xf32>
    %cst_39 = arith.constant 9.99999974E-6 : f32
    %85 = vector.broadcast %cst_39 : f32 to vector<16x16x1xf32>
    %86 = arith.addf %84, %85 : vector<16x16x1xf32>
    %87 = math.rsqrt %86 : vector<16x16x1xf32>
    %88 = vector.broadcast %87 : vector<16x16x1xf32> to vector<16x16x32xf32>
    %89 = arith.mulf %79, %88 : vector<16x16x32xf32>
    %90 = vector.shape_cast %89 : vector<16x16x32xf32> to vector<256x32xf32>
    %c0_40 = arith.constant 0 : index
    %c0_41 = arith.constant 0 : index
    %91 = vector.load %arg7[%c0_40, %c0_41] : memref<32x128xf32, #tpu.memory_space<vmem>>, vector<32x128xf32>
    %cst_42 = arith.constant dense<0.000000e+00> : vector<256x128xf32>
    %92 = tpu.matmul %90, %91, %cst_42 {dimension_numbers = #tpu.dot_dimension_numbers<[1], [0], [0], [1], [0, 0, 1, 1], [], []>} : vector<256x32xf32>, vector<32x128xf32>, vector<256x128xf32> -> vector<256x128xf32>
    %c0_43 = arith.constant 0 : index
    %c0_44 = arith.constant 0 : index
    %93 = vector.load %arg8[%c0_43, %c0_44] : memref<1x128xf32, #tpu.memory_space<vmem>>, vector<1x128xf32>
    %94 = vector.broadcast %93 : vector<1x128xf32> to vector<256x128xf32>
    %95 = arith.addf %92, %94 : vector<256x128xf32>
    %cst_45 = arith.constant 0.000000e+00 : f32
    %96 = vector.broadcast %cst_45 : f32 to vector<256x128xf32>
    %97 = arith.maximumf %95, %96 : vector<256x128xf32>
    %c0_46 = arith.constant 0 : index
    %c0_47 = arith.constant 0 : index
    %98 = vector.load %arg9[%c0_46, %c0_47] : memref<128x32xf32, #tpu.memory_space<vmem>>, vector<128x32xf32>
    %cst_48 = arith.constant dense<0.000000e+00> : vector<256x32xf32>
    %99 = tpu.matmul %97, %98, %cst_48 {dimension_numbers = #tpu.dot_dimension_numbers<[1], [0], [0], [1], [0, 0, 1, 1], [], []>} : vector<256x128xf32>, vector<128x32xf32>, vector<256x32xf32> -> vector<256x32xf32>
    %c0_49 = arith.constant 0 : index
    %c0_50 = arith.constant 0 : index
    %100 = vector.load %arg10[%c0_49, %c0_50] : memref<1x32xf32, #tpu.memory_space<vmem>>, vector<1x32xf32>
    %101 = vector.broadcast %100 : vector<1x32xf32> to vector<256x32xf32>
    %102 = arith.addf %99, %101 : vector<256x32xf32>
    %103 = vector.shape_cast %102 : vector<256x32xf32> to vector<16x16x32xf32>
    %104 = arith.addf %73, %103 : vector<16x16x32xf32>
    %c0_51 = arith.constant 0 : index
    %c0_52 = arith.constant 0 : index
    %c0_53 = arith.constant 0 : index
    %105 = vector.load %arg11[%c0_51, %c0_52, %c0_53] : memref<16x16x32xf32, #tpu.memory_space<vmem>>, vector<16x16x32xf32>
    tpu.vector_store %arg11[%c0_51, %c0_52, %c0_53], %104 {strides = array<i32>} : memref<16x16x32xf32, #tpu.memory_space<vmem>>, vector<16x16x32xf32>,
    return
  }
  func.func @transform_0(%arg0: i32) -> (i32, i32, i32) {
    %c0_i32 = arith.constant 0 : i32
    %c0_i32_0 = arith.constant 0 : i32
    %c0_i32_1 = arith.constant 0 : i32
    return %arg0, %c0_i32, %c0_i32_0 : i32, i32, i32
  }
  func.func @transform_1(%arg0: i32) -> (i32, i32, i32) {
    %c0_i32 = arith.constant 0 : i32
    %c0_i32_0 = arith.constant 0 : i32
    %c0_i32_1 = arith.constant 0 : i32
    return %arg0, %c0_i32, %c0_i32_0 : i32, i32, i32
  }
  func.func @transform_2(%arg0: i32) -> (i32, i32) {
    %c0_i32 = arith.constant 0 : i32
    %c0_i32_0 = arith.constant 0 : i32
    %c0_i32_1 = arith.constant 0 : i32
    return %c0_i32, %c0_i32_0 : i32, i32
  }
  func.func @transform_3(%arg0: i32) -> (i32, i32) {
    %c0_i32 = arith.constant 0 : i32
    %c0_i32_0 = arith.constant 0 : i32
    %c0_i32_1 = arith.constant 0 : i32
    return %c0_i32, %c0_i32_0 : i32, i32
  }
  func.func @transform_4(%arg0: i32) -> (i32, i32) {
    %c0_i32 = arith.constant 0 : i32
    %c0_i32_0 = arith.constant 0 : i32
    %c0_i32_1 = arith.constant 0 : i32
    return %c0_i32, %c0_i32_0 : i32, i32
  }
  func.func @transform_5(%arg0: i32) -> (i32, i32) {
    %c0_i32 = arith.constant 0 : i32
    %c0_i32_0 = arith.constant 0 : i32
    %c0_i32_1 = arith.constant 0 : i32
    return %c0_i32, %c0_i32_0 : i32, i32
  }
  func.func @transform_6(%arg0: i32) -> (i32, i32) {
    %c0_i32 = arith.constant 0 : i32
    %c0_i32_0 = arith.constant 0 : i32
    %c0_i32_1 = arith.constant 0 : i32
    return %c0_i32, %c0_i32_0 : i32, i32
  }
  func.func @transform_7(%arg0: i32) -> (i32, i32) {
    %c0_i32 = arith.constant 0 : i32
    %c0_i32_0 = arith.constant 0 : i32
    %c0_i32_1 = arith.constant 0 : i32
    return %c0_i32, %c0_i32_0 : i32, i32
  }
  func.func @transform_8(%arg0: i32) -> (i32, i32) {
    %c0_i32 = arith.constant 0 : i32
    %c0_i32_0 = arith.constant 0 : i32
    %c0_i32_1 = arith.constant 0 : i32
    return %c0_i32, %c0_i32_0 : i32, i32
  }
  func.func @transform_9(%arg0: i32) -> (i32, i32) {
    %c0_i32 = arith.constant 0 : i32
    %c0_i32_0 = arith.constant 0 : i32
    %c0_i32_1 = arith.constant 0 : i32
    return %c0_i32, %c0_i32_0 : i32, i32
  }
  func.func @transform_10(%arg0: i32) -> (i32, i32, i32) {
    %c0_i32 = arith.constant 0 : i32
    %c0_i32_0 = arith.constant 0 : i32
    %c0_i32_1 = arith.constant 0 : i32
    return %arg0, %c0_i32, %c0_i32_0 : i32, i32, i32
  }
}

</mosaic_0001>

<bundles_post_ra>
// kernel: tpu_custom_call.1
= control target key start
LH: loop header
LB: loop body
LE: loop exit
PB: predicated region body
PF: predicated region fallthrough
CT: control target
= control target key end

     0   :  { %s9566_s0 = inlined_call_operand.hbm [shape: f32[32,16,32], index: 0, kind: input, shape index: {}]   ;;  %s9567_s1 = inlined_call_operand.hbm [shape: f32[32,16,32], index: 1, kind: input, shape index: {}]   ;;  %s9568_s2 = inlined_call_operand.vmem [shape: f32[32,96], index: 2, kind: input, shape index: {}]   ;;  %s9569_s3 = inlined_call_operand.vmem [shape: f32[32,96], index: 3, kind: input, shape index: {}]   ;;  %s9570_s4 = inlined_call_operand.vmem [shape: f32[1,96], index: 4, kind: input, shape index: {}]   ;;  %s9571_s5 = inlined_call_operand.vmem [shape: f32[32,32], index: 5, kind: input, shape index: {}]   ;;  %s9572_s6 = inlined_call_operand.vmem [shape: f32[32,128], index: 6, kind: input, shape index: {}]   ;;  %s9573_s7 = inlined_call_operand.vmem [shape: f32[1,128], index: 7, kind: input, shape index: {}]   ;;  %s9574_s8 = inlined_call_operand.vmem [shape: f32[128,32], index: 8, kind: input, shape index: {}]   ;;  %s9575_s9 = inlined_call_operand.vmem [shape: f32[1,32], index: 9, kind: input, shape index: {}]   ;;  %s9576_s10 = inlined_call_operand.hbm [shape: f32[32,16,32], index: 10, kind: output, shape index: {}]  }
   0x1   :  { %9604 = sst [smem:[#allocation29_spill]] %s9566_s0 }
   0x2   :  { %9605 = sst [smem:[#allocation30_spill]] %s9576_s10 }
   0x3   :  { %15 = vsyncpa [#allocation3], 0 }
   0x4   :  { %17 = vsyncpa [#allocation3 + $0x1], 0 }
   0x5   :  { %18 = vsyncpa [#allocation6], 0 }
   0x6   :  { %20 = vsyncpa [#allocation6 + $0x1], 0 }
   0x7   :  { %21 = vsyncpa [#allocation4], 0 }
   0x8   :  { %23 = vsyncpa [#allocation4 + $0x1], 0  ;;  %s6583_s13 = smov 0   ;;  %s6585_s14 = smov 0  }
   0x9   :  { %s6587_s15 = smov 0   ;;  %s6589_s16 = smov 0  }
   0xa LB: > { %9606 = sst [smem:[#allocation11_spill]] %s6507_s13  ;;  %s6604_s17 = sadd.s32 4294967295, %s6519_s16   ;;  %s6519_s16 = sphi %s6589_s16, %s9691_s16   ;;  %s6515_s15 = sphi %s6587_s15, %s9693_s15   ;;  %s6511_s14 = sphi %s6585_s14, %s9695_s14   ;;  %s6507_s13 = sphi %s6583_s13, %s9694_s13  }
   0xb   : > { %9607 = sst [smem:[#allocation12_spill]] %s6515_s15  ;;  %s5719_s18 = sadd.s32 4294967294, %s6519_s16  }
   0xc   : > { %s6608_s19 = sadd.s32 1, %s6519_s16   ;;  %s36_s20 = sadd.s32 1, %s6515_s15 }
   0xd   : > { %9608 = sst [smem:[#allocation13_spill]] %s6608_s19  ;;  %s33_s21 = ssub.s32 %s6519_s16, %s6608_s19 }
   0xe   : > { %p43_p0 = scmp.ne.s32.totalorder %s6515_s15, %s6511_s14  ;;  %p34_p1 = scmp.eq.s32.totalorder %s33_s21, 0 }
   0xf   : > { %p44_p2 = scmp.eq.s32.totalorder %s6519_s16, 0  ;;  %p49_p3 = scmp.ne.s32.totalorder %s6511_s14, %s6507_s13 }
  0x10   : > { %p50_p4 = scmp.eq.s32.totalorder %s6604_s17, 0  ;;  %p267_p7 = scmp.eq.s32.totalorder %s6604_s17, 1 }
  0x11   : > { %s6620_s22 = scalar_select %p34_p1, %s6515_s15, %s36_s20  }
  0x12   : > { %p6622_p5 = por %p44_p2, %p43_p0  ;;  %p6626_p6 = por %p50_p4, %p49_p3 }
  0x13   : > { %9609 = sst [smem:[#allocation14_spill]] %s6620_s22  ;;  %p273_p8 = scmp.eq.s32.totalorder %s5719_s18, 1 }
  0x14   : > { %p6003_p10 = scmp.lt.s32.totalorder %s6519_s16, 2  ;;  %p6633_p11 = por %p267_p7, %p43_p0 }
  0x15   : > { %p6637_p12 = por %p273_p8, %p49_p3  ;;  %s6642_s27 = sand.u32 1, %s6515_s15  }
  0x16   : > { %s9612_s25 = scalar_select %p6633_p11, 1, 0 }
  0x17   : > { %s9614_s26 = scalar_select %p6637_p12, 1, 0 }
  0x18   : > { %9613 = sst [smem:[#allocation15_spill]] %s9612_s25  ;;  %s9581_s28 = sshll.u32 %s6519_s16, 8 }
  0x19   : > { %9615 = sst [smem:[#allocation16_spill]] %s9614_s26  ;;  %s9580_s29 = sshll.u32 %s6642_s27, 8 }
  0x1a   : > { %s9616_s0 = sld [smem:[#allocation29_spill]]  ;;  %s321_s20 = scalar_lea.vmem [#allocation2], %s9580_s29 }
  0x1b   : > { %s330_s21 = sshll.u32 %s321_s20, 4  ;;  %p6655_p13 = pnand %p6003_p10, %p6622_p5  ;;  %s331_s21 = int_to_ptr.vmem [resolvable:$true] %s330_s21 }
  0x1c   : > { %p5730_p0 = scmp.ge.s32.totalorder %s6519_s16, 1  ;;  %p361_p1 = scmp.lt.s32.totalorder %s6519_s16, 3 }
  0x1d   : > { %s318_s15 = scalar_lea.sflag [#allocation3], %s6642_s27  ;;  %p6393_p3 = pneg %p6655_p13 }
  0x20   : > { %s327_s12 = scalar_lea.hbm %s9616_s0, %s9581_s28 }
  0x21   : > { %s328_s18 = sshll.u32 %s327_s12, 4  ;;  %s6396_s12 = scalar_lea.hbm %s9616_s0, 512  ;;  %s329_s18 = int_to_ptr.hbm [resolvable:$true] %s328_s18 }
  0x22   : > { %s6389_s19 = sshra.s32 %s329_s18, 4  ;;  %s6390_s19 = int_to_ptr.hbm [resolvable:$true] %s6389_s19 }
  0x23   : > { %s6391_s30 = scalar_lea.hbm %s6390_s19, 256  ;;  %p6397_p5 = scmp.lt.s32.totalorder %s6390_s19, %s9616_s0 }
  0x24   : > { %p6392_p2 = scmp.ne.s32.totalorder %s6390_s19, %s6391_s30  ;;  %p6398_p8 = scmp.lt.s32.totalorder %s6396_s12, %s6391_s30 }
  0x26   : > { %p6394_p4 = pnand %p6393_p3, %p6392_p2  ;;  %p6399_p10 = por %p6398_p8, %p6397_p5 }
  0x28   : > { %p6395_p7 = pneg %p6394_p4 }
  0x2a   : > { %p6400_p9 = pnand %p6399_p10, %p6395_p7 }
  0x2c   : > { %6403 = shalt.err (!%p6400_p9)
}
  0x2d   : > { %s6521_s28 = smov 128   ;;  %s6522_s26 = smov 8  }
  0x2e   : > { %5995 = dma.hbm_to_vmem [thread:$0]  (!%p6655_p13), %s329_s18, 4096, %s331_s21, %s318_s15, %s6521_s28, %s6521_s28, %s6522_s26  }
  0x2f   : > { %p6679_p2 = pnand %p5730_p0, %p361_p1  ;;  %s9619_s19 = sshll.u32 %s6519_s16, 8 }
  0x30   : > { %s350_s11 = scalar_lea.hbm %s9567_s1, %s9619_s19  ;;  %s9620_s20 = sshll.u32 %s6642_s27, 8 }
  0x31   : > { %s351_s12 = sshll.u32 %s350_s11, 4  ;;  %s344_s0 = scalar_lea.vmem [#allocation5], %s9620_s20  ;;  %s352_s12 = int_to_ptr.hbm [resolvable:$true] %s351_s12 }
  0x32   : > { %s353_s13 = sshll.u32 %s344_s0, 4  ;;  %s341_s10 = scalar_lea.sflag [#allocation6], %s6642_s27  ;;  %s354_s13 = int_to_ptr.vmem [resolvable:$true] %s353_s13 }
  0x33   : > { %s6419_s25 = sshra.s32 %s352_s12, 4  ;;  %s6426_s30 = scalar_lea.hbm %s9567_s1, 512  ;;  %s6420_s25 = int_to_ptr.hbm [resolvable:$true] %s6419_s25 }
  0x34   : > { %s6421_s15 = scalar_lea.hbm %s6420_s25, 256  ;;  %p6427_p4 = scmp.lt.s32.totalorder %s6420_s25, %s9567_s1 }
  0x35   : > { %p6422_p9 = scmp.ne.s32.totalorder %s6420_s25, %s6421_s15  ;;  %p6428_p7 = scmp.lt.s32.totalorder %s6426_s30, %s6421_s15 }
  0x37   : > { %p6424_p0 = pnand %p6422_p9, %p6393_p3  ;;  %p6429_p5 = por %p6428_p7, %p6427_p4 }
  0x39   : > { %p6425_p1 = pneg %p6424_p0 }
  0x3b   : > { %p6430_p8 = pnand %p6429_p5, %p6425_p1 }
  0x3d   : > { %6433 = shalt.err (!%p6430_p8)
}
  0x3e   : > { %5998 = dma.hbm_to_vmem [thread:$0]  (!%p6655_p13), %s352_s12, 4096, %s354_s13, %s341_s10, %s6521_s28, %s6521_s28, %s6522_s26  }
  0x3f   : > { %365 = sbr.rel (%p6679_p2) target bundleno = 2771 (0xad3), region = 60 }
  0x44   : > { %s6705_s0 = sand.u32 1, %s6511_s14  }
  0x45   : > { %s6708_s27 = sshll.u32 %s6705_s0, 8  ;;  %s368_s25 = scalar_lea.sflag [#allocation3], %s6705_s0 }
  0x46   : > { %s6712_s11 = scalar_lea.vmem [#allocation2], %s6708_s27 }
  0x47   : > { %6494 = dma.done.wait (%p6626_p6), %s368_s25, 4096  }
  0x48   : > { %6496 = vsyncadd (%p6626_p6), %s368_s25, 4294963200  ;;  %s378_s10 = scalar_lea.sflag [#allocation6], %s6705_s0  ;;  %s6720_s13 = scalar_lea.vmem [#allocation5], %s6708_s27 }
  0x49   : > { %6498 = dma.done.wait (%p6626_p6), %s378_s10, 4096  }
  0x4a   : > { %6500 = vsyncadd (%p6626_p6), %s378_s10, 4294963200  ;;  %vm459_vm0 = vcmask 261120   ;;  %v6727_v0 = vld [vmem:[%s6712_s11 + $0x20] sm:$0xff]  ;;  %v6730_v1 = vld [vmem:[%s6712_s11 + $0x10] sm:$0xff]  ;;  %v6523_v56 = vmov 32.0   ;;  %s6524_s28 = smov 64  }
  0x4b   : > { %v6733_v2 = vld [vmem:[%s6712_s11] sm:$0xff]  ;;  %v472_v3 = vsel %vm459_vm0, %v6727_v0, 0.0  ;;  %v466_v4 = vsel %vm459_vm0, %v6730_v1, 0.0  ;;  %v6742_v6 = vld [vmem:[%s6712_s11 + $0x28] sm:$0xff]  ;;  %v6745_v7 = vld [vmem:[%s6712_s11 + $0x18] sm:$0xff]  ;;  %6128 = vrcp.f32 %v6523_v56  ;;  %s6525_s29 = smov 96  }
  0x4c   : > { %v460_v5 = vsel %vm459_vm0, %v6733_v2, 0.0  ;;  %473 = vadd.xlane.f32.xlu2 %v472_v3  ;;  %467 = vadd.xlane.f32.xlu1 %v466_v4  ;;  %v6748_v8 = vld [vmem:[%s6712_s11 + $0x8] sm:$0xff]  ;;  %v475_v9 = vsel %vm459_vm0, %v6742_v6, 0.0  ;;  %v469_v10 = vsel %vm459_vm0, %v6745_v7, 0.0  ;;  %v6757_v12 = vld [vmem:[%s6712_s11 + $0x40] sm:$0xff]  ;;  %v6760_v13 = vld [vmem:[%s6712_s11 + $0x30] sm:$0xff] }
  0x4d   : > { %461 = vadd.xlane.f32.xlu0 %v460_v5  ;;  %v463_v11 = vsel %vm459_vm0, %v6748_v8, 0.0  ;;  %v6763_v14 = vld [vmem:[%s6712_s11 + $0x38] sm:$0xff]  ;;  %v484_v15 = vsel %vm459_vm0, %v6757_v12, 0.0  ;;  %v478_v16 = vsel %vm459_vm0, %v6760_v13, 0.0  ;;  %v6775_v19 = vld [vmem:[%s6712_s11 + $0x48] sm:$0xff]  ;;  %v6778_v20 = vld [vmem:[%s6712_s11 + $0x50] sm:$0xff] }
  0x4e   : > { %v481_v17 = vsel %vm459_vm0, %v6763_v14, 0.0  ;;  %v6772_v18 = vld [vmem:[%s6712_s11 + $0x58] sm:$0xff]  ;;  %v487_v22 = vsel %vm459_vm0, %v6775_v19, 0.0  ;;  %v490_v23 = vsel %vm459_vm0, %v6778_v20, 0.0  ;;  %v6787_v24 = vld [vmem:[%s6712_s11 + $0x70] sm:$0xff]  ;;  %v6790_v25 = vld [vmem:[%s6712_s11 + $0x60] sm:$0xff] }
  0x4f   : > { %v493_v21 = vsel %vm459_vm0, %v6772_v18, 0.0  ;;  %v6793_v26 = vld [vmem:[%s6712_s11 + $0x68] sm:$0xff]  ;;  %v502_v27 = vsel %vm459_vm0, %v6787_v24, 0.0  ;;  %v496_v28 = vsel %vm459_vm0, %v6790_v25, 0.0  ;;  %v6805_v31 = vld [vmem:[%s6712_s11 + $0x78] sm:$0xff]  ;;  %v6808_v32 = vld [vmem:[%s6712_s11 + $0x80] sm:$0xff] }
  0x50   : > { %v499_v29 = vsel %vm459_vm0, %v6793_v26, 0.0  ;;  %v6802_v30 = vld [vmem:[%s6712_s11 + $0x88] sm:$0xff]  ;;  %v505_v34 = vsel %vm459_vm0, %v6805_v31, 0.0  ;;  %v508_v35 = vsel %vm459_vm0, %v6808_v32, 0.0  ;;  %v6817_v36 = vld [vmem:[%s6712_s11 + $0xa0] sm:$0xff]  ;;  %v6820_v37 = vld [vmem:[%s6712_s11 + $0x90] sm:$0xff] }
  0x51   : > { %v511_v33 = vsel %vm459_vm0, %v6802_v30, 0.0  ;;  %v6823_v38 = vld [vmem:[%s6712_s11 + $0x98] sm:$0xff]  ;;  %v520_v39 = vsel %vm459_vm0, %v6817_v36, 0.0  ;;  %v514_v40 = vsel %vm459_vm0, %v6820_v37, 0.0  ;;  %v6835_v43 = vld [vmem:[%s6712_s11 + $0xa8] sm:$0xff]  ;;  %v6838_v44 = vld [vmem:[%s6712_s11 + $0xb0] sm:$0xff]  ;;  %v6129_v57 = vpop.eup %6128 }
  0x52   : > { %v517_v41 = vsel %vm459_vm0, %v6823_v38, 0.0  ;;  %v6832_v42 = vld [vmem:[%s6712_s11 + $0xb8] sm:$0xff]  ;;  %v523_v46 = vsel %vm459_vm0, %v6835_v43, 0.0  ;;  %v526_v47 = vsel %vm459_vm0, %v6838_v44, 0.0  ;;  %v6847_v48 = vld [vmem:[%s6712_s11 + $0xd0] sm:$0xff]  ;;  %v6850_v49 = vld [vmem:[%s6712_s11 + $0xc0] sm:$0xff]  ;;  %vm561_vm1 = vweird.f32 %v6129_v57 }
  0x53   : > { %v529_v45 = vsel %vm459_vm0, %v6832_v42, 0.0  ;;  %v6853_v50 = vld [vmem:[%s6712_s11 + $0xc8] sm:$0xff]  ;;  %v538_v51 = vsel %vm459_vm0, %v6847_v48, 0.0  ;;  %v532_v52 = vsel %vm459_vm0, %v6850_v49, 0.0  ;;  %v6862_v54 = vld [vmem:[%s6712_s11 + $0xd8] sm:$0xff]  ;;  %v557_v58 = vmul.f32 32.0, %v6129_v57 }
  0x54   : > { %476 = vadd.xlane.f32.xlu2 %v475_v9  ;;  %470 = vadd.xlane.f32.xlu1 %v469_v10  ;;  %v535_v53 = vsel %vm459_vm0, %v6853_v50, 0.0  ;;  %v541_v55 = vsel %vm459_vm0, %v6862_v54, 0.0  ;;  %s9207_s30 = scalar_lea.vmem [#allocation7], %s6708_s27  ;;  %s5969_s25 = sshll.u32 %s6604_s17, 8 }
  0x55   : > { %464 = vadd.xlane.f32.xlu0 %v463_v11  ;;  %v558_v59 = vsub.f32 1.0, %v557_v58  ;;  %s9687_s26 = sld [smem:[#allocation30_spill]]  ;;  %s5607_s17 = scalar_lea.sflag [#allocation4], %s6705_s0 }
  0x57   : > { %v559_v60 = vmul.f32 %v6129_v57, %v558_v59 }
  0x59   : > { %v560_v61 = vadd.f32 %v6129_v57, %v559_v60 }
  0x5b   : > { %v6866_v62 = vsel %vm561_vm1, %v6129_v57, %v560_v61  ;;  %s6469_s21 = scalar_lea.hbm %s9687_s26, 512 }
  0x5c   : > { %485 = vadd.xlane.f32.xlu2 %v484_v15  ;;  %479 = vadd.xlane.f32.xlu1 %v478_v16  ;;  %9621 = vst [vmem:[#allocation17_spill] sm:$0xff] %v6866_v62 }
  0x5d   : > { %482 = vadd.xlane.f32.xlu0 %v481_v17 }
  0x64   : > { %494 = vadd.xlane.f32.xlu2 %v493_v21  ;;  %488 = vadd.xlane.f32.xlu1 %v487_v22 }
  0x65   : > { %491 = vadd.xlane.f32.xlu0 %v490_v23 }
  0x6c   : > { %503 = vadd.xlane.f32.xlu2 %v502_v27  ;;  %497 = vadd.xlane.f32.xlu1 %v496_v28 }
  0x6d   : > { %500 = vadd.xlane.f32.xlu0 %v499_v29 }
  0x74   : > { %512 = vadd.xlane.f32.xlu2 %v511_v33  ;;  %506 = vadd.xlane.f32.xlu1 %v505_v34 }
  0x75   : > { %509 = vadd.xlane.f32.xlu0 %v508_v35 }
  0x7c   : > { %521 = vadd.xlane.f32.xlu2 %v520_v39  ;;  %515 = vadd.xlane.f32.xlu1 %v514_v40 }
  0x7d   : > { %518 = vadd.xlane.f32.xlu0 %v517_v41 }
  0x84   : > { %530 = vadd.xlane.f32.xlu2 %v529_v45  ;;  %524 = vadd.xlane.f32.xlu1 %v523_v46 }
  0x85   : > { %527 = vadd.xlane.f32.xlu0 %v526_v47 }
  0x8c   : > { %539 = vadd.xlane.f32.xlu2 %v538_v51  ;;  %533 = vadd.xlane.f32.xlu1 %v532_v52 }
  0x8d   : > { %536 = vadd.xlane.f32.xlu0 %v535_v53 }
  0x94   : > { %542 = vadd.xlane.f32.xlu1 %v541_v55 }
  0xbf   : > { %v474_v63 = vpop.xlane.xlu2 %473  ;;  %v468_v3 = vpop.xlane.xlu1 %467 }
  0xc0   : > { %v565_v4 = vmul.f32 %v6866_v62, %v468_v3  ;;  %v462_v5 = vpop.xlane.xlu0 %461  ;;  %v567_v28 = vmul.f32 %v6866_v62, %v474_v63 }
  0xc1   : > { %v563_v9 = vmul.f32 %v6866_v62, %v462_v5 }
  0xc2   : > { %v6871_v10 = vsub.f32 %v6730_v1, %v565_v4  ;;  %v6900_v41 = vsub.f32 %v6727_v0, %v567_v28 }
  0xc3   : > { %v6874_v11 = vsub.f32 %v6733_v2, %v563_v9 }
  0xc4   : > { %v629_v15 = vmul.f32 %v6871_v10, %v6871_v10  ;;  %v631_v53 = vmul.f32 %v6900_v41, %v6900_v41 }
  0xc5   : > { %v627_v16 = vmul.f32 %v6874_v11, %v6874_v11 }
  0xc6   : > { %v665_v17 = vsel %vm459_vm0, %v629_v15, 0.0  ;;  %v671_v60 = vsel %vm459_vm0, %v631_v53, 0.0 }
  0xc7   : > { %v477_v21 = vpop.xlane.xlu2 %476  ;;  %666 = vadd.xlane.f32.xlu1 %v665_v17  ;;  %v471_v22 = vpop.xlane.xlu1 %470  ;;  %v659_v23 = vsel %vm459_vm0, %v627_v16, 0.0 }
  0xc8   : > { %v568_v27 = vmul.f32 %v6866_v62, %v477_v21  ;;  %v566_v1 = vmul.f32 %v6866_v62, %v471_v22  ;;  %660 = vadd.xlane.f32.xlu0 %v659_v23  ;;  %v465_v2 = vpop.xlane.xlu0 %464 }
  0xc9   : > { %v564_v29 = vmul.f32 %v6866_v62, %v465_v2 }
  0xca   : > { %v6887_v33 = vsub.f32 %v6742_v6, %v568_v27  ;;  %v6890_v34 = vsub.f32 %v6745_v7, %v566_v1 }
  0xcb   : > { %v6893_v35 = vsub.f32 %v6748_v8, %v564_v29 }
  0xcc   : > { %v632_v39 = vmul.f32 %v6887_v33, %v6887_v33  ;;  %v630_v40 = vmul.f32 %v6890_v34, %v6890_v34 }
  0xcd   : > { %v628_v45 = vmul.f32 %v6893_v35, %v6893_v35 }
  0xce   : > { %v674_v6 = vsel %vm459_vm0, %v632_v39, 0.0  ;;  %v668_v7 = vsel %vm459_vm0, %v630_v40, 0.0  ;;  %v1210_v40 = vld [vmem:[%s9569_s3 + $0x18] sm:$0xff] }
  0xcf   : > { %v486_v46 = vpop.xlane.xlu2 %485  ;;  %675 = vadd.xlane.f32.xlu1 %v674_v6  ;;  %v480_v8 = vpop.xlane.xlu1 %479  ;;  %v662_v47 = vsel %vm459_vm0, %v628_v45, 0.0  ;;  %5970 = vmatpush.msra.mxu1 %v1210_v40 }
  0xd0   : > { %v571_v51 = vmul.f32 %v6866_v62, %v486_v46  ;;  %v569_v52 = vmul.f32 %v6866_v62, %v480_v8  ;;  %669 = vadd.xlane.f32.xlu0 %v668_v7  ;;  %663 = vadd.xlane.f32.xlu2 %v662_v47  ;;  %v483_v0 = vpop.xlane.xlu0 %482 }
  0xd1   : > { %v570_v55 = vmul.f32 %v6866_v62, %v483_v0  ;;  %1319 = vmatpush.msra.mxu0 %v1210_v40 }
  0xd2   : > { %v6913_v56 = vsub.f32 %v6757_v12, %v571_v51  ;;  %v6916_v57 = vsub.f32 %v6760_v13, %v569_v52 }
  0xd3   : > { %v6924_v61 = vsub.f32 %v6763_v14, %v570_v55 }
  0xd4   : > { %v635_v58 = vmul.f32 %v6913_v56, %v6913_v56  ;;  %v633_v59 = vmul.f32 %v6916_v57, %v6916_v57 }
  0xd5   : > { %v634_v15 = vmul.f32 %v6924_v61, %v6924_v61 }
  0xd6   : > { %v683_v63 = vsel %vm459_vm0, %v635_v58, 0.0  ;;  %v677_v3 = vsel %vm459_vm0, %v633_v59, 0.0 }
  0xd7   : > { %v495_v12 = vpop.xlane.xlu2 %494  ;;  %684 = vadd.xlane.f32.xlu1 %v683_v63  ;;  %v489_v4 = vpop.xlane.xlu1 %488  ;;  %v680_v23 = vsel %vm459_vm0, %v634_v15, 0.0 }
  0xd8   : > { %v574_v13 = vmul.f32 %v6866_v62, %v495_v12  ;;  %v572_v5 = vmul.f32 %v6866_v62, %v489_v4  ;;  %678 = vadd.xlane.f32.xlu0 %v677_v3  ;;  %672 = vadd.xlane.f32.xlu2 %v671_v60  ;;  %v492_v9 = vpop.xlane.xlu0 %491  ;;  %v1207_v60 = vld [vmem:[%s9569_s3] sm:$0xff]  ;;  %v1194_v12 = vld [vmem:[%s6720_s13 + $0xb8] sm:$0xff] }
  0xd9   : > { %v573_v14 = vmul.f32 %v6866_v62, %v492_v9 }
  0xda   : > { %v6934_v16 = vsub.f32 %v6772_v18, %v574_v13  ;;  %v6937_v17 = vsub.f32 %v6775_v19, %v572_v5  ;;  %v1206_v5 = vld [vmem:[%s9568_s2 + $0x18] sm:$0xff] }
  0xdb   : > { %v6945_v27 = vsub.f32 %v6778_v20, %v573_v14  ;;  %v1209_v20 = vld [vmem:[%s9569_s3 + $0x10] sm:$0xff] }
  0xdc   : > { %v638_v21 = vmul.f32 %v6934_v16, %v6934_v16  ;;  %v636_v22 = vmul.f32 %v6937_v17, %v6937_v17  ;;  %5971 = vmatpush.msra.mxu1 %v1209_v20  ;;  %1320 = vmatpush.msra.mxu0 %v1209_v20 }
  0xdd   : > { %v637_v45 = vmul.f32 %v6945_v27, %v6945_v27 }
  0xde   : > { %v692_v1 = vsel %vm459_vm0, %v638_v21, 0.0  ;;  %v686_v2 = vsel %vm459_vm0, %v636_v22, 0.0 }
  0xdf   : > { %v504_v18 = vpop.xlane.xlu2 %503  ;;  %693 = vadd.xlane.f32.xlu1 %v692_v1  ;;  %v498_v28 = vpop.xlane.xlu1 %497  ;;  %v689_v51 = vsel %vm459_vm0, %v637_v45, 0.0 }
  0xe0   : > { %v577_v19 = vmul.f32 %v6866_v62, %v504_v18  ;;  %v575_v29 = vmul.f32 %v6866_v62, %v498_v28  ;;  %687 = vadd.xlane.f32.xlu0 %v686_v2  ;;  %681 = vadd.xlane.f32.xlu2 %v680_v23  ;;  %v501_v39 = vpop.xlane.xlu0 %500 }
  0xe1   : > { %v576_v6 = vmul.f32 %v6866_v62, %v501_v39 }
  0xe2   : > { %v6961_v7 = vsub.f32 %v6787_v24, %v577_v19  ;;  %v6964_v46 = vsub.f32 %v6790_v25, %v575_v29  ;;  %v1195_v19 = vld [vmem:[%s6720_s13 + $0xc0] sm:$0xff] }
  0xe3   : > { %v6972_v52 = vsub.f32 %v6793_v26, %v576_v6  ;;  %v1208_v26 = vld [vmem:[%s9569_s3 + $0x8] sm:$0xff] }
  0xe4   : > { %v641_v8 = vmul.f32 %v6961_v7, %v6961_v7  ;;  %v639_v47 = vmul.f32 %v6964_v46, %v6964_v46  ;;  %5972 = vmatpush.msra.mxu1 %v1208_v26  ;;  %1321 = vmatpush.msra.mxu0 %v1208_v26 }
  0xe5   : > { %v640_v63 = vmul.f32 %v6972_v52, %v6972_v52 }
  0xe6   : > { %v701_v24 = vsel %vm459_vm0, %v641_v8, 0.0  ;;  %v695_v0 = vsel %vm459_vm0, %v639_v47, 0.0  ;;  %5973 = vmatpush.msra.mxu1 %v1207_v60  ;;  %1322 = vmatpush.msra.mxu0 %v1207_v60 }
  0xe7   : > { %v513_v25 = vpop.xlane.xlu2 %512  ;;  %702 = vadd.xlane.f32.xlu1 %v701_v24  ;;  %v507_v53 = vpop.xlane.xlu1 %506  ;;  %5757 = vmatmul.msk.f32.vlgmr.msra.gmra.mxu1 %vm459_vm0, %v1194_v12 }
  0xe8   : > { %v580_v55 = vmul.f32 %v6866_v62, %v513_v25  ;;  %v578_v58 = vmul.f32 %v6866_v62, %v507_v53  ;;  %696 = vadd.xlane.f32.xlu0 %v695_v0  ;;  %690 = vadd.xlane.f32.xlu2 %v689_v51  ;;  %v510_v59 = vpop.xlane.xlu0 %509  ;;  %v1205_v25 = vld [vmem:[%s9568_s2 + $0x10] sm:$0xff] }
  0xe9   : > { %v579_v3 = vmul.f32 %v6866_v62, %v510_v59  ;;  %1528 = vmatpush.msrb.mxu1 %v1206_v5 }
  0xea   : > { %v6989_v4 = vsub.f32 %v6802_v30, %v580_v55  ;;  %v6992_v13 = vsub.f32 %v6805_v31, %v578_v58  ;;  %v698_v30 = vsel %vm459_vm0, %v640_v63, 0.0  ;;  %v1196_v55 = vld [vmem:[%s6720_s13 + $0xc8] sm:$0xff] }
  0xeb   : > { %v7004_v31 = vsub.f32 %v6808_v32, %v579_v3  ;;  %1529 = vmatpush.msrb.mxu1 %v1205_v25  ;;  %v7105_v25 = vld [vmem:[%s6712_s11 + $0xf8] sm:$0xff] }
  0xec   : > { %v644_v9 = vmul.f32 %v6989_v4, %v6989_v4  ;;  %v642_v15 = vmul.f32 %v6992_v13, %v6992_v13 }
  0xed   : > { %v643_v28 = vmul.f32 %v7004_v31, %v7004_v31 }
  0xee   : > { %v710_v14 = vsel %vm459_vm0, %v644_v9, 0.0  ;;  %v704_v21 = vsel %vm459_vm0, %v642_v15, 0.0  ;;  %v7059_v15 = vld [vmem:[%s6712_s11 + $0xf0] sm:$0xff] }
  0xef   : > { %v522_v22 = vpop.xlane.xlu2 %521  ;;  %711 = vadd.xlane.f32.xlu1 %v710_v14  ;;  %v516_v23 = vpop.xlane.xlu1 %515  ;;  %5758 = vmatmul.msk.f32.gmra.mxu1 %vm459_vm0, %v1195_v19  ;;  %v707_v45 = vsel %vm459_vm0, %v643_v28, 0.0 }
  0xf0   : > { %v583_v1 = vmul.f32 %v6866_v62, %v522_v22  ;;  %v581_v2 = vmul.f32 %v6866_v62, %v516_v23  ;;  %705 = vadd.xlane.f32.xlu0 %v704_v21  ;;  %699 = vadd.xlane.f32.xlu2 %v698_v30  ;;  %v519_v18 = vpop.xlane.xlu0 %518  ;;  %v1204_v21 = vld [vmem:[%s9568_s2 + $0x8] sm:$0xff]  ;;  %v7069_v22 = vld [vmem:[%s6712_s11 + $0xe0] sm:$0xff] }
  0xf1   : > { %v582_v32 = vmul.f32 %v6866_v62, %v519_v18  ;;  %1530 = vmatpush.msrb.mxu1 %v1204_v21  ;;  %v544_v18 = vsel %vm459_vm0, %v7069_v22, 0.0 }
  0xf2   : > { %v7015_v29 = vsub.f32 %v6817_v36, %v583_v1  ;;  %v7018_v39 = vsub.f32 %v6820_v37, %v581_v2  ;;  %v550_v1 = vsel %vm459_vm0, %v7059_v15, 0.0 }
  0xf3   : > { %v7027_v6 = vsub.f32 %v6823_v38, %v582_v32 }
  0xf4   : > { %v647_v40 = vmul.f32 %v7015_v29, %v7015_v29  ;;  %v645_v20 = vmul.f32 %v7018_v39, %v7018_v39 }
  0xf5   : > { %v646_v38 = vmul.f32 %v7027_v6, %v7027_v6 }
  0xf6   : > { %v719_v36 = vsel %vm459_vm0, %v647_v40, 0.0  ;;  %v713_v8 = vsel %vm459_vm0, %v645_v20, 0.0  ;;  %v1198_v40 = vld [vmem:[%s6720_s13 + $0xd8] sm:$0xff]  ;;  %v7090_v20 = vld [vmem:[%s6712_s11 + $0xe8] sm:$0xff] }
  0xf7   : > { %v531_v37 = vpop.xlane.xlu2 %530  ;;  %720 = vadd.xlane.f32.xlu1 %v719_v36  ;;  %v525_v47 = vpop.xlane.xlu1 %524  ;;  %5759 = vmatmul.msk.f32.gmra.mxu1 %vm459_vm0, %v1196_v55  ;;  %v716_v63 = vsel %vm459_vm0, %v646_v38, 0.0 }
  0xf8   : > { %v586_v51 = vmul.f32 %v6866_v62, %v531_v37  ;;  %v584_v24 = vmul.f32 %v6866_v62, %v525_v47  ;;  %714 = vadd.xlane.f32.xlu0 %v713_v8  ;;  %708 = vadd.xlane.f32.xlu2 %v707_v45  ;;  %v528_v0 = vpop.xlane.xlu0 %527  ;;  %v547_v8 = vsel %vm459_vm0, %v7090_v20, 0.0 }
  0xf9   : > { %v585_v53 = vmul.f32 %v6866_v62, %v528_v0  ;;  %v1199_v0 = vld [vmem:[%s6720_s13 + $0xe0] sm:$0xff] }
  0xfa   : > { %v7041_v58 = vsub.f32 %v6832_v42, %v586_v51  ;;  %v7044_v59 = vsub.f32 %v6835_v43, %v584_v24 }
  0xfb   : > { %v7053_v3 = vsub.f32 %v6838_v44, %v585_v53  ;;  %v1197_v44 = vld [vmem:[%s6720_s13 + $0xd0] sm:$0xff]  ;;  %v553_v53 = vsel %vm459_vm0, %v7105_v25, 0.0 }
  0xfc   : > { %v650_v26 = vmul.f32 %v7041_v58, %v7041_v58  ;;  %v648_v60 = vmul.f32 %v7044_v59, %v7044_v59 }
  0xfd   : > { %v649_v14 = vmul.f32 %v7053_v3, %v7053_v3 }
  0xfe   : > { %v728_v42 = vsel %vm459_vm0, %v650_v26, 0.0  ;;  %v722_v43 = vsel %vm459_vm0, %v648_v60, 0.0  ;;  %v1200_v26 = vld [vmem:[%s6720_s13 + $0xe8] sm:$0xff] }
  0xff   : > { %729 = vadd.xlane.f32.xlu1 %v728_v42  ;;  %v540_v12 = vpop.xlane.xlu2 %539  ;;  %v534_v5 = vpop.xlane.xlu1 %533  ;;  %5760 = vmatmul.msk.f32.gmra.mxu1 %vm459_vm0, %v1197_v44  ;;  %v725_v28 = vsel %vm459_vm0, %v649_v14, 0.0  ;;  %v1203_v42 = vld [vmem:[%s9568_s2] sm:$0xff]  ;;  %v1172_v14 = vld [vmem:[%s6720_s13 + $0x8] sm:$0xff] }
 0x100   : > { %723 = vadd.xlane.f32.xlu0 %v722_v43  ;;  %717 = vadd.xlane.f32.xlu2 %v716_v63  ;;  %v589_v9 = vmul.f32 %v6866_v62, %v540_v12  ;;  %v587_v30 = vmul.f32 %v6866_v62, %v534_v5  ;;  %v537_v32 = vpop.xlane.xlu0 %536  ;;  %v1202_v63 = vld [vmem:[%s6720_s13 + $0xf8] sm:$0xff]  ;;  %v1171_v43 = vld [vmem:[%s6720_s13] sm:$0xff] }
 0x101   : > { %1531 = vmatpush.msrb.mxu1 %v1203_v42  ;;  %5734 = vmatmul.msk.f32.vlgmr.msra.gmra.mxu0 %vm459_vm0, %v1171_v43 }
 0x102   : > { %v7072_v23 = vsub.f32 %v6847_v48, %v589_v9  ;;  %v7078_v2 = vsub.f32 %v6850_v49, %v587_v30  ;;  %v588_v49 = vmul.f32 %v6866_v62, %v537_v32 }
 0x104   : > { %v653_v48 = vmul.f32 %v7072_v23, %v7072_v23  ;;  %v651_v19 = vmul.f32 %v7078_v2, %v7078_v2  ;;  %v7098_v37 = vsub.f32 %v6853_v50, %v588_v49 }
 0x106   : > { %v737_v45 = vsel %vm459_vm0, %v653_v48, 0.0  ;;  %v731_v36 = vsel %vm459_vm0, %v651_v19, 0.0  ;;  %v652_v24 = vmul.f32 %v7098_v37, %v7098_v37 }
 0x107   : > { %551 = vadd.xlane.f32.xlu1 %v550_v1  ;;  %5761 = vmatmul.msk.f32.gmra.mxu1 %vm459_vm0, %v1198_v40  ;;  %v543_v47 = vpop.xlane.xlu1 %542  ;;  %v1173_v40 = vld [vmem:[%s6720_s13 + $0x10] sm:$0xff] }
 0x108   : > { %545 = vadd.xlane.f32.xlu0 %v544_v18  ;;  %726 = vadd.xlane.f32.xlu2 %v725_v28  ;;  %v590_v51 = vmul.f32 %v6866_v62, %v543_v47  ;;  %v734_v38 = vsel %vm459_vm0, %v652_v24, 0.0 }
 0x109   : > { %5735 = vmatmul.msk.f32.gmra.mxu0 %vm459_vm0, %v1172_v14 }
 0x10a   : > { %v7109_v50 = vsub.f32 %v6862_v54, %v590_v51  ;;  %v1201_v54 = vld [vmem:[%s6720_s13 + $0xf0] sm:$0xff] }
 0x10c   : > { %v654_v55 = vmul.f32 %v7109_v50, %v7109_v50 }
 0x10e   : > { %v740_v60 = vsel %vm459_vm0, %v654_v55, 0.0 }
 0x10f   : > { %738 = vadd.xlane.f32.xlu1 %v737_v45  ;;  %5762 = vmatmul.msk.f32.gmra.mxu1 %vm459_vm0, %v1199_v0 }
 0x110   : > { %732 = vadd.xlane.f32.xlu0 %v731_v36  ;;  %548 = vadd.xlane.f32.xlu2 %v547_v8 }
 0x111   : > { %5736 = vmatmul.msk.f32.gmra.mxu0 %vm459_vm0, %v1173_v40 }
 0x117   : > { %5763 = vmatmul.msk.f32.gmra.mxu1 %vm459_vm0, %v1200_v26 }
 0x118   : > { %735 = vadd.xlane.f32.xlu2 %v734_v38  ;;  %554 = vadd.xlane.f32.xlu0 %v553_v53 }
 0x11f   : > { %5764 = vmatmul.msk.f32.gmra.mxu1 %vm459_vm0, %v1201_v54  ;;  %v1174_v54 = vld [vmem:[%s6720_s13 + $0x18] sm:$0xff] }
 0x120   : > { %741 = vadd.xlane.f32.xlu2 %v740_v60  ;;  %5737 = vmatmul.msk.f32.gmra.mxu0 %vm459_vm0, %v1174_v54 }
 0x127   : > { %5765 = vmatmul.msk.f32.gmra.mxu1 %vm459_vm0, %v1202_v63 }
 0x13a   : > { %v667_v12 = vpop.xlane.xlu1 %666 }
 0x13b   : > { %v757_v5 = vmul.f32 %v667_v12, %v6866_v62  ;;  %v661_v9 = vpop.xlane.xlu0 %660 }
 0x13c   : > { %v755_v30 = vmul.f32 %v661_v9, %v6866_v62 }
 0x13d   : > { %v7132_v21 = vadd.f32 1e-05, %v757_v5 }
 0x13e   : > { %v787_v44 = vadd.f32 1e-05, %v755_v30 }
 0x13f   : > { %vm845_vm8 = vweird.f32 %v7132_v21 }
 0x140   : > { %6130 = vrsqrt.f32 %v787_v44  ;;  %vm825_vm3 = vweird.f32 %v787_v44 }
 0x141   : > { %6132 = vrsqrt.f32 %v7132_v21 }
 0x142   : > { %v676_v1 = vpop.xlane.xlu1 %675 }
 0x143   : > { %v664_v18 = vpop.xlane.xlu2 %663  ;;  %v670_v28 = vpop.xlane.xlu0 %669 }
 0x144   : > { %v756_v32 = vmul.f32 %v664_v18, %v6866_v62  ;;  %v758_v48 = vmul.f32 %v670_v28, %v6866_v62  ;;  %v760_v18 = vmul.f32 %v676_v1, %v6866_v62 }
 0x146   : > { %v6131_v19 = vpop.eup %6130  ;;  %v788_v49 = vadd.f32 1e-05, %v756_v32  ;;  %v7138_v36 = vadd.f32 1e-05, %v758_v48 }
 0x147   : > { %v820_v45 = vmul.f32 %v6131_v19, %v787_v44  ;;  %v7141_v8 = vpop.eup %6132  ;;  %vm826_vm2 = vweird.f32 %v6131_v19 }
 0x148   : > { %6134 = vrsqrt.f32 %v788_v49  ;;  %v840_v53 = vmul.f32 %v7141_v8, %v7132_v21  ;;  %vm827_vm4 = vmor %vm825_vm3, %vm826_vm2  ;;  %vm835_vm6 = vweird.f32 %v788_v49  ;;  %vm846_vm9 = vweird.f32 %v7141_v8 }
 0x149   : > { %v821_v47 = vmul.f32 %v6131_v19, %v820_v45  ;;  %6136 = vrsqrt.f32 %v7138_v36  ;;  %vm847_vm10 = vmor %vm845_vm8, %vm846_vm9  ;;  %vm855_vm11 = vweird.f32 %v7138_v36 }
 0x14a   : > { %v7143_v51 = vpop.xlane.xlu1 %684  ;;  %v841_v12 = vmul.f32 %v7141_v8, %v840_v53  ;;  %v1175_v53 = vld [vmem:[%s6720_s13 + $0x20] sm:$0xff] }
 0x14b   : > { %v822_v24 = vmul.f32 0.5, %v821_v47  ;;  %v673_v0 = vpop.xlane.xlu2 %672  ;;  %v679_v38 = vpop.xlane.xlu0 %678  ;;  %5738 = vmatmul.msk.f32.gmra.mxu0 %vm459_vm0, %v1175_v53 }
 0x14c   : > { %v759_v55 = vmul.f32 %v673_v0, %v6866_v62  ;;  %v842_v45 = vmul.f32 0.5, %v841_v12 }
 0x14d   : > { %v823_v26 = vsub.f32 1.5, %v822_v24 }
 0x14e   : > { %v6135_v60 = vpop.eup %6134  ;;  %v7150_v43 = vadd.f32 1e-05, %v759_v55  ;;  %v843_v24 = vsub.f32 1.5, %v842_v45 }
 0x14f   : > { %v824_v63 = vmul.f32 %v6131_v19, %v823_v26  ;;  %v830_v42 = vmul.f32 %v6135_v60, %v788_v49  ;;  %v7154_v5 = vpop.eup %6136  ;;  %vm836_vm5 = vweird.f32 %v6135_v60  ;;  %v761_v26 = vmul.f32 %v679_v38, %v6866_v62 }
 0x150   : > { %6138 = vrsqrt.f32 %v7150_v43  ;;  %v850_v44 = vmul.f32 %v7154_v5, %v7138_v36  ;;  %vm837_vm7 = vmor %vm835_vm6, %vm836_vm5  ;;  %v844_v21 = vmul.f32 %v7141_v8, %v843_v24  ;;  %vm856_vm12 = vweird.f32 %v7154_v5 }
 0x151   : > { %v831_v9 = vmul.f32 %v6135_v60, %v830_v42  ;;  %v828_v14 = vsel %vm827_vm4, %v6131_v19, %v824_v63  ;;  %v7166_v19 = vadd.f32 1e-05, %v760_v18  ;;  %vm857_vm13 = vmor %vm855_vm11, %vm856_vm12  ;;  %vm865_vm14 = vweird.f32 %v7150_v43 }
 0x152   : > { %v7156_v30 = vpop.xlane.xlu1 %693  ;;  %v1139_v40 = vmul.f32 %v828_v14, %v6874_v11  ;;  %v851_v0 = vmul.f32 %v7154_v5, %v850_v44  ;;  %v848_v18 = vsel %vm847_vm10, %v7141_v8, %v844_v21 }
 0x153   : > { %v832_v28 = vmul.f32 0.5, %v831_v9  ;;  %v682_v32 = vpop.xlane.xlu2 %681  ;;  %v7160_v48 = vpop.xlane.xlu0 %687  ;;  %6140 = vrsqrt.f32 %v7166_v19  ;;  %vm875_vm2 = vweird.f32 %v7166_v19 }
 0x154   : > { %5766 = vmatmul.msk.f32.vlgmr.msrb.gmra.mxu1 %vm459_vm0, %v1139_v40  ;;  %v852_v42 = vmul.f32 0.5, %v851_v0  ;;  %v762_v40 = vmul.f32 %v682_v32, %v6866_v62 }
 0x155   : > { %v833_v47 = vsub.f32 1.5, %v832_v28  ;;  %v1176_v28 = vld [vmem:[%s6720_s13 + $0x28] sm:$0xff] }
 0x156   : > { %v7170_v55 = vpop.eup %6138  ;;  %v853_v38 = vsub.f32 1.5, %v852_v42  ;;  %5739 = vmatmul.msk.f32.gmra.mxu0 %vm459_vm0, %v1176_v28  ;;  %v7211_v0 = vadd.f32 1e-05, %v762_v40 }
 0x157   : > { %v834_v1 = vmul.f32 %v6135_v60, %v833_v47  ;;  %v860_v12 = vmul.f32 %v7170_v55, %v7150_v43  ;;  %v1141_v47 = vmul.f32 %v848_v18, %v6871_v10  ;;  %vm866_vm15 = vweird.f32 %v7170_v55  ;;  %v1177_v43 = vld [vmem:[%s6720_s13 + $0x30] sm:$0xff] }
 0x158   : > { %v854_v24 = vmul.f32 %v7154_v5, %v853_v38  ;;  %vm867_vm1 = vmor %vm865_vm14, %vm866_vm15  ;;  %vm895_vm8 = vweird.f32 %v7211_v0 }
 0x159   : > { %v838_v11 = vsel %vm837_vm7, %v6135_v60, %v834_v1  ;;  %v7188_v60 = vadd.f32 1e-05, %v761_v26  ;;  %v861_v14 = vmul.f32 %v7170_v55, %v860_v12  ;;  %v763_v26 = vmul.f32 %v7143_v51, %v6866_v62 }
 0x15a   : > { %v1140_v63 = vmul.f32 %v838_v11, %v6893_v35  ;;  %v7184_v9 = vpop.xlane.xlu1 %702  ;;  %v7193_v35 = vpop.eup %6140  ;;  %v858_v11 = vsel %vm857_vm13, %v7154_v5, %v854_v24 }
 0x15b   : > { %v7177_v54 = vpop.xlane.xlu2 %690  ;;  %v7179_v49 = vpop.xlane.xlu0 %696  ;;  %6142 = vrsqrt.f32 %v7188_v60  ;;  %v870_v8 = vmul.f32 %v7193_v35, %v7166_v19  ;;  %v862_v1 = vmul.f32 0.5, %v861_v14  ;;  %v1142_v12 = vmul.f32 %v858_v11, %v6890_v34  ;;  %v1178_v19 = vld [vmem:[%s6720_s13 + $0x38] sm:$0xff] }
 0x15c   : > { %5767 = vmatmul.msk.f32.gmra.mxu1 %vm459_vm0, %v1140_v63  ;;  %6144 = vrsqrt.f32 %v7211_v0  ;;  %v7233_v51 = vadd.f32 1e-05, %v763_v26  ;;  %vm876_vm3 = vweird.f32 %v7193_v35  ;;  %vm885_vm5 = vweird.f32 %v7188_v60 }
 0x15d   : > { %v871_v32 = vmul.f32 %v7193_v35, %v870_v8  ;;  %v863_v53 = vsub.f32 1.5, %v862_v1  ;;  %vm877_vm4 = vmor %vm875_vm2, %vm876_vm3 }
 0x15e   : > { %5740 = vmatmul.msk.f32.gmra.mxu0 %vm459_vm0, %v1177_v43  ;;  %6146 = vrsqrt.f32 %v7233_v51  ;;  %vm905_vm11 = vweird.f32 %v7233_v51 }
 0x15f   : > { %v872_v21 = vmul.f32 0.5, %v871_v32  ;;  %v864_v38 = vmul.f32 %v7170_v55, %v863_v53 }
 0x161   : > { %v7215_v10 = vpop.eup %6142  ;;  %v873_v14 = vsub.f32 1.5, %v872_v21  ;;  %v868_v34 = vsel %vm867_vm1, %v7170_v55, %v864_v38  ;;  %v765_v38 = vmul.f32 %v7177_v54, %v6866_v62 }
 0x162   : > { %v7209_v36 = vpop.xlane.xlu1 %711  ;;  %v880_v5 = vmul.f32 %v7215_v10, %v7188_v60  ;;  %v7239_v40 = vpop.eup %6144  ;;  %v1143_v24 = vmul.f32 %v868_v34, %v6900_v41  ;;  %vm886_vm6 = vweird.f32 %v7215_v10 }
 0x163   : > { %v7200_v45 = vpop.xlane.xlu2 %699  ;;  %v7202_v44 = vpop.xlane.xlu0 %705  ;;  %v890_v55 = vmul.f32 %v7239_v40, %v7211_v0  ;;  %v874_v53 = vmul.f32 %v7193_v35, %v873_v14  ;;  %vm7279_vm7 = vmor %vm885_vm5, %vm886_vm6  ;;  %v7286_v54 = vadd.f32 1e-05, %v765_v38  ;;  %vm896_vm9 = vweird.f32 %v7239_v40 }
 0x164   : > { %5768 = vmatmul.msk.f32.gmra.mxu1 %vm459_vm0, %v1141_v47  ;;  %v881_v18 = vmul.f32 %v7215_v10, %v880_v5  ;;  %v764_v47 = vmul.f32 %v7160_v48, %v6866_v62  ;;  %v7263_v21 = vpop.eup %6146  ;;  %vm7320_vm10 = vmor %vm895_vm8, %vm896_vm9 }
 0x165   : > { %v891_v26 = vmul.f32 %v7239_v40, %v890_v55  ;;  %v878_v41 = vsel %vm877_vm4, %v7193_v35, %v874_v53  ;;  %vm906_vm12 = vweird.f32 %v7263_v21  ;;  %vm925_vm2 = vweird.f32 %v7286_v54 }
 0x166   : > { %v882_v32 = vmul.f32 0.5, %v881_v18  ;;  %5741 = vmatmul.msk.f32.gmra.mxu0 %vm459_vm0, %v1178_v19  ;;  %v7257_v11 = vadd.f32 1e-05, %v764_v47  ;;  %v1144_v35 = vmul.f32 %v878_v41, %v6887_v33  ;;  %v900_v18 = vmul.f32 %v7263_v21, %v7233_v51  ;;  %v1179_v47 = vld [vmem:[%s6720_s13 + $0x40] sm:$0xff]  ;;  %vm907_vm13 = vmor %vm905_vm11, %vm906_vm12 }
 0x167   : > { %v892_v34 = vmul.f32 0.5, %v891_v26 }
 0x168   : > { %v883_v48 = vsub.f32 1.5, %v882_v32  ;;  %6148 = vrsqrt.f32 %v7257_v11  ;;  %v901_v55 = vmul.f32 %v7263_v21, %v900_v18  ;;  %vm915_vm14 = vweird.f32 %v7257_v11 }
 0x169   : > { %v893_v53 = vsub.f32 1.5, %v892_v34  ;;  %6150 = vrsqrt.f32 %v7286_v54 }
 0x16a   : > { %v7236_v28 = vpop.xlane.xlu1 %720  ;;  %v884_v60 = vmul.f32 %v7215_v10, %v883_v48  ;;  %v902_v18 = vmul.f32 0.5, %v901_v55 }
 0x16b   : > { %v7222_v63 = vpop.xlane.xlu2 %708  ;;  %v7224_v42 = vpop.xlane.xlu0 %714 }
 0x16c   : > { %5769 = vmatmul.msk.f32.gmra.mxu1 %vm459_vm0, %v1142_v12  ;;  %v7261_v12 = vpop.f32.mrf.mxu1  ;;  %v888_v19 = vsel %vm7279_vm7, %v7215_v10, %v884_v60 }
 0x16e   : > { %5742 = vmatmul.msk.f32.gmra.mxu0 %vm459_vm0, %v1179_v47  ;;  %v7295_v48 = vpop.eup %6148 }
 0x16f   : > { %v910_v34 = vmul.f32 %v7295_v48, %v7257_v11  ;;  %v7335_v0 = vpop.eup %6150  ;;  %vm916_vm15 = vweird.f32 %v7295_v48  ;;  %v1182_v11 = vld [vmem:[%s6720_s13 + $0x58] sm:$0xff] }
 0x170   : > { %vm917_vm1 = vmor %vm915_vm14, %vm916_vm15  ;;  %vm926_vm3 = vweird.f32 %v7335_v0 }
 0x171   : > { %vm927_vm4 = vmor %vm925_vm2, %vm926_vm3 }
 0x172   : > { %v7267_v5 = vpop.xlane.xlu1 %729 }
 0x173   : > { %v7246_v8 = vpop.xlane.xlu2 %717  ;;  %v7248_v1 = vpop.xlane.xlu0 %723 }
 0x174   : > { %5770 = vmatmul.msk.f32.gmra.mxu1 %vm459_vm0, %v1143_v24  ;;  %v7301_v41 = vpop.f32.mrf.mxu1 }
 0x17a   : > { %v552_v60 = vpop.xlane.xlu1 %551 }
 0x17b   : > { %v7272_v43 = vpop.xlane.xlu2 %726  ;;  %v546_v14 = vpop.xlane.xlu0 %545  ;;  %v593_v24 = vmul.f32 %v6866_v62, %v552_v60 }
 0x17c   : > { %v591_v32 = vmul.f32 %v6866_v62, %v546_v14  ;;  %5771 = vmatmul.msk.f32.gmra.mxu1 %vm459_vm0, %v1144_v35  ;;  %v1145_v35 = vmul.f32 %v888_v19, %v6916_v57  ;;  %v1180_v19 = vld [vmem:[%s6720_s13 + $0x48] sm:$0xff] }
 0x17d   : > { %5743 = vmatmul.msk.f32.gmra.mxu0 %vm459_vm0, %v1180_v19 }
 0x17e   : > { %v7289_v33 = vsub.f32 %v7069_v22, %v591_v32  ;;  %v766_v22 = vmul.f32 %v7156_v30, %v6866_v62  ;;  %v894_v30 = vmul.f32 %v7239_v40, %v893_v53  ;;  %v911_v53 = vmul.f32 %v7295_v48, %v910_v34 }
 0x17f   : > { %v920_v34 = vmul.f32 %v7335_v0, %v7286_v54 }
 0x180   : > { %v655_v26 = vmul.f32 %v7289_v33, %v7289_v33  ;;  %v7327_v55 = vadd.f32 1e-05, %v766_v22 }
 0x182   : > { %v743_v10 = vsel %vm459_vm0, %v655_v26, 0.0  ;;  %v903_v26 = vsub.f32 1.5, %v902_v18  ;;  %6152 = vrsqrt.f32 %v7327_v55  ;;  %vm935_vm5 = vweird.f32 %v7327_v55 }
 0x183   : > { %v549_v38 = vpop.xlane.xlu2 %548  ;;  %v7307_v14 = vpop.xlane.xlu0 %732  ;;  %744 = vadd.xlane.f32.xlu0 %v743_v10  ;;  %v7338_v10 = vsub.f32 %v7059_v15, %v593_v24  ;;  %v912_v15 = vmul.f32 0.5, %v911_v53 }
 0x184   : > { %v592_v47 = vmul.f32 %v6866_v62, %v549_v38  ;;  %5772 = vmatmul.msk.f32.gmra.mxu1 %vm459_vm0, %v1145_v35  ;;  %v898_v38 = vsel %vm7320_vm10, %v7239_v40, %v894_v30  ;;  %v767_v40 = vmul.f32 %v7179_v49, %v6866_v62  ;;  %v904_v60 = vmul.f32 %v7263_v21, %v903_v26  ;;  %v7353_v30 = vpop.f32.mrf.mxu1 }
 0x185   : > { %v1146_v35 = vmul.f32 %v898_v38, %v6924_v61  ;;  %v657_v49 = vmul.f32 %v7338_v10, %v7338_v10  ;;  %v1181_v61 = vld [vmem:[%s6720_s13 + $0x50] sm:$0xff]  ;;  %v913_v19 = vsub.f32 1.5, %v912_v15  ;;  %v921_v26 = vmul.f32 %v7335_v0, %v920_v34 }
 0x186   : > { %v7325_v32 = vsub.f32 %v7090_v20, %v592_v47  ;;  %v7361_v24 = vadd.f32 1e-05, %v767_v40  ;;  %v908_v53 = vsel %vm907_vm13, %v7263_v21, %v904_v60  ;;  %5744 = vmatmul.msk.f32.gmra.mxu0 %vm459_vm0, %v1181_v61 }
 0x187   : > { %v1147_v21 = vmul.f32 %v908_v53, %v6913_v56 }
 0x188   : > { %v656_v20 = vmul.f32 %v7325_v32, %v7325_v32  ;;  %v7369_v38 = vpop.eup %6152  ;;  %6154 = vrsqrt.f32 %v7361_v24  ;;  %vm945_vm8 = vweird.f32 %v7361_v24 }
 0x189   : > { %vm936_vm6 = vweird.f32 %v7369_v38 }
 0x18a   : > { %v746_v22 = vsel %vm459_vm0, %v656_v20, 0.0  ;;  %v749_v20 = vsel %vm459_vm0, %v657_v49, 0.0  ;;  %v769_v49 = vmul.f32 %v7184_v9, %v6866_v62  ;;  %vm937_vm7 = vmor %vm935_vm5, %vm936_vm6 }
 0x18b   : > { %v555_v18 = vpop.xlane.xlu0 %554  ;;  %747 = vadd.xlane.f32.xlu0 %v746_v22  ;;  %v930_v22 = vmul.f32 %v7369_v38, %v7327_v55 }
 0x18c   : > { %v594_v47 = vmul.f32 %v6866_v62, %v555_v18  ;;  %5773 = vmatmul.msk.f32.gmra.mxu1 %vm459_vm0, %v1146_v35  ;;  %v922_v35 = vmul.f32 0.5, %v921_v26  ;;  %v914_v18 = vmul.f32 %v7295_v48, %v913_v19  ;;  %v7386_v15 = vpop.f32.mrf.mxu1 }
 0x18d   : > { %v931_v56 = vmul.f32 %v7369_v38, %v930_v22 }
 0x18e   : > { %v7364_v57 = vsub.f32 %v7105_v25, %v594_v47  ;;  %v768_v25 = vmul.f32 %v7200_v45, %v6866_v62  ;;  %v923_v45 = vsub.f32 1.5, %v922_v35  ;;  %v918_v60 = vsel %vm917_vm1, %v7295_v48, %v914_v18  ;;  %5745 = vmatmul.msk.f32.gmra.mxu0 %vm459_vm0, %v1182_v11  ;;  %v6155_v47 = vpop.eup %6154  ;;  %v1183_v48 = vld [vmem:[%s6720_s13 + $0x60] sm:$0xff]  ;;  %v1184_v18 = vld [vmem:[%s6720_s13 + $0x68] sm:$0xff] }
 0x18f   : > { %v1148_v61 = vmul.f32 %v918_v60, %v6937_v17  ;;  %v932_v19 = vmul.f32 0.5, %v931_v56  ;;  %v940_v26 = vmul.f32 %v6155_v47, %v7361_v24  ;;  %vm946_vm9 = vweird.f32 %v6155_v47 }
 0x190   : > { %v658_v51 = vmul.f32 %v7364_v57, %v7364_v57  ;;  %v7388_v34 = vadd.f32 1e-05, %v768_v25  ;;  %v924_v53 = vmul.f32 %v7335_v0, %v923_v45  ;;  %v771_v60 = vmul.f32 %v7222_v63, %v6866_v62  ;;  %vm947_vm10 = vmor %vm945_vm8, %vm946_vm9 }
 0x191   : > { %v933_v54 = vsub.f32 1.5, %v932_v19 }
 0x192   : > { %v752_v40 = vsel %vm459_vm0, %v658_v51, 0.0  ;;  %6156 = vrsqrt.f32 %v7388_v34  ;;  %v941_v51 = vmul.f32 %v6155_v47, %v940_v26  ;;  %v928_v9 = vsel %vm927_vm4, %v7335_v0, %v924_v53 }
 0x193   : > { %750 = vadd.xlane.f32.xlu0 %v749_v20  ;;  %753 = vadd.xlane.f32.xlu2 %v752_v40  ;;  %v7403_v20 = vadd.f32 1e-05, %v769_v49  ;;  %v1149_v40 = vmul.f32 %v928_v9, %v6945_v27  ;;  %v934_v0 = vmul.f32 %v7369_v38, %v933_v54  ;;  %v7433_v53 = vadd.f32 1e-05, %v771_v60 }
 0x194   : > { %5774 = vmatmul.msk.f32.gmra.mxu1 %vm459_vm0, %v1147_v21  ;;  %v7406_v25 = vpop.f32.mrf.mxu1  ;;  %v770_v21 = vmul.f32 %v7202_v44, %v6866_v62  ;;  %v942_v22 = vmul.f32 0.5, %v941_v51  ;;  %vm955_vm11 = vweird.f32 %v7388_v34 }
 0x195   : > { %6158 = vrsqrt.f32 %v7403_v20  ;;  %v938_v45 = vsel %vm937_vm7, %v7369_v38, %v934_v0  ;;  %v1185_v38 = vld [vmem:[%s6720_s13 + $0x70] sm:$0xff]  ;;  %vm965_vm14 = vweird.f32 %v7403_v20  ;;  %vm985_vm5 = vweird.f32 %v7433_v53 }
 0x196   : > { %5746 = vmatmul.msk.f32.gmra.mxu0 %vm459_vm0, %v1183_v48  ;;  %v7419_v11 = vadd.f32 1e-05, %v770_v21  ;;  %v943_v55 = vsub.f32 1.5, %v942_v22  ;;  %v1150_v49 = vmul.f32 %v938_v45, %v6934_v16  ;;  %v772_v16 = vmul.f32 %v7209_v36, %v6866_v62 }
 0x198   : > { %v6157_v17 = vpop.eup %6156  ;;  %6160 = vrsqrt.f32 %v7419_v11  ;;  %v944_v26 = vmul.f32 %v6155_v47, %v943_v55  ;;  %v773_v55 = vmul.f32 %v7224_v42, %v6866_v62  ;;  %vm975_vm2 = vweird.f32 %v7419_v11 }
 0x199   : > { %v950_v35 = vmul.f32 %v6157_v17, %v7388_v34  ;;  %vm956_vm12 = vweird.f32 %v6157_v17  ;;  %6162 = vrsqrt.f32 %v7433_v53 }
 0x19a   : > { %v948_v54 = vsel %vm947_vm10, %v6155_v47, %v944_v26  ;;  %vm957_vm13 = vmor %vm955_vm11, %vm956_vm12  ;;  %v1186_v47 = vld [vmem:[%s6720_s13 + $0x78] sm:$0xff] }
 0x19b   : > { %v951_v56 = vmul.f32 %v6157_v17, %v950_v35  ;;  %v6159_v44 = vpop.eup %6158  ;;  %v1151_v63 = vmul.f32 %v948_v54, %v6964_v46  ;;  %v7446_v35 = vadd.f32 1e-05, %v772_v16  ;;  %v1324_v46 = vpop.f32.mrf.mxu0 }
 0x19c   : > { %5775 = vmatmul.msk.f32.gmra.mxu1 %vm459_vm0, %v1148_v61  ;;  %v7424_v27 = vpop.f32.mrf.mxu1  ;;  %v960_v61 = vmul.f32 %v6159_v44, %v7403_v20  ;;  %vm966_vm15 = vweird.f32 %v6159_v44  ;;  %v7462_v20 = vadd.f32 1e-05, %v773_v55 }
 0x19d   : > { %v952_v19 = vmul.f32 0.5, %v951_v56  ;;  %6164 = vrsqrt.f32 %v7446_v35  ;;  %vm967_vm1 = vmor %vm965_vm14, %vm966_vm15  ;;  %vm995_vm8 = vweird.f32 %v7446_v35 }
 0x19e   : > { %5747 = vmatmul.msk.f32.gmra.mxu0 %vm459_vm0, %v1184_v18  ;;  %v961_v24 = vmul.f32 %v6159_v44, %v960_v61  ;;  %v6161_v51 = vpop.eup %6160  ;;  %6166 = vrsqrt.f32 %v7462_v20  ;;  %vm1005_vm11 = vweird.f32 %v7462_v20 }
 0x19f   : > { %v953_v48 = vsub.f32 1.5, %v952_v19  ;;  %v970_v21 = vmul.f32 %v6161_v51, %v7419_v11  ;;  %v7449_v18 = vpop.eup %6162  ;;  %vm976_vm3 = vweird.f32 %v6161_v51 }
 0x1a0   : > { %v962_v9 = vmul.f32 0.5, %v961_v24  ;;  %v980_v60 = vmul.f32 %v7449_v18, %v7433_v53  ;;  %vm977_vm4 = vmor %vm975_vm2, %vm976_vm3  ;;  %vm986_vm6 = vweird.f32 %v7449_v18 }
 0x1a1   : > { %v954_v22 = vmul.f32 %v6157_v17, %v953_v48  ;;  %v971_v0 = vmul.f32 %v6161_v51, %v970_v21  ;;  %vm7494_vm7 = vmor %vm985_vm5, %vm986_vm6 }
 0x1a2   : > { %v963_v34 = vsub.f32 1.5, %v962_v9  ;;  %v981_v26 = vmul.f32 %v7449_v18, %v980_v60 }
 0x1a3   : > { %v958_v36 = vsel %vm957_vm13, %v6157_v17, %v954_v22  ;;  %v972_v45 = vmul.f32 0.5, %v971_v0  ;;  %v1327_v48 = vpop.f32.mrf.mxu0 }
 0x1a4   : > { %5776 = vmatmul.msk.f32.gmra.mxu1 %vm459_vm0, %v1149_v40  ;;  %v7442_v40 = vpop.f32.mrf.mxu1  ;;  %v1152_v56 = vmul.f32 %v958_v36, %v6972_v52  ;;  %v964_v17 = vmul.f32 %v6159_v44, %v963_v34  ;;  %v7466_v52 = vpop.eup %6164 }
 0x1a5   : > { %v973_v19 = vsub.f32 1.5, %v972_v45  ;;  %v990_v54 = vmul.f32 %v7466_v52, %v7446_v35  ;;  %vm996_vm9 = vweird.f32 %v7466_v52 }
 0x1a6   : > { %5748 = vmatmul.msk.f32.gmra.mxu0 %vm459_vm0, %v1185_v38  ;;  %v968_v42 = vsel %vm967_vm1, %v6159_v44, %v964_v17  ;;  %v774_v38 = vmul.f32 %v7246_v8, %v6866_v62  ;;  %v982_v44 = vmul.f32 0.5, %v981_v26  ;;  %vm7525_vm10 = vmor %vm995_vm8, %vm996_vm9 }
 0x1a7   : > { %v1153_v24 = vmul.f32 %v968_v42, %v6961_v7  ;;  %v974_v16 = vmul.f32 %v6161_v51, %v973_v19  ;;  %v991_v11 = vmul.f32 %v7466_v52, %v990_v54  ;;  %v7483_v7 = vpop.eup %6166  ;;  %v776_v19 = vmul.f32 %v7248_v1, %v6866_v62  ;;  %v1190_v1 = vld [vmem:[%s6720_s13 + $0x98] sm:$0xff] }
 0x1a8   : > { %v7477_v9 = vadd.f32 1e-05, %v774_v38  ;;  %v983_v21 = vsub.f32 1.5, %v982_v44  ;;  %vm1006_vm12 = vweird.f32 %v7483_v7 }
 0x1a9   : > { %v978_v8 = vsel %vm977_vm4, %v6161_v51, %v974_v16  ;;  %v992_v0 = vmul.f32 0.5, %v991_v11  ;;  %v1000_v51 = vmul.f32 %v7483_v7, %v7462_v20  ;;  %v7534_v44 = vadd.f32 1e-05, %v776_v19  ;;  %vm7555_vm13 = vmor %vm1005_vm11, %vm1006_vm12 }
 0x1aa   : > { %6168 = vrsqrt.f32 %v7477_v9  ;;  %v1154_v34 = vmul.f32 %v978_v8, %v6992_v13  ;;  %v984_v36 = vmul.f32 %v7449_v18, %v983_v21  ;;  %vm1015_vm14 = vweird.f32 %v7477_v9 }
 0x1ab   : > { %v7499_v53 = vpop.f32.mrf.mxu0  ;;  %v993_v45 = vsub.f32 1.5, %v992_v0  ;;  %v1001_v13 = vmul.f32 %v7483_v7, %v1000_v51  ;;  %vm1035_vm6 = vweird.f32 %v7534_v44 }
 0x1ac   : > { %5777 = vmatmul.msk.f32.gmra.mxu1 %vm459_vm0, %v1150_v49  ;;  %v1187_v49 = vld [vmem:[%s6720_s13 + $0x80] sm:$0xff]  ;;  %v7460_v61 = vpop.f32.mrf.mxu1  ;;  %v988_v60 = vsel %vm7494_vm7, %v7449_v18, %v984_v36 }
 0x1ad   : > { %v1155_v42 = vmul.f32 %v988_v60, %v7004_v31  ;;  %v994_v38 = vmul.f32 %v7466_v52, %v993_v45 }
 0x1ae   : > { %5749 = vmatmul.msk.f32.gmra.mxu0 %vm459_vm0, %v1186_v47  ;;  %v775_v47 = vmul.f32 %v7236_v28, %v6866_v62 }
 0x1af   : > { %v998_v11 = vsel %vm7525_vm10, %v7466_v52, %v994_v38 }
 0x1b0   : > { %v7502_v28 = vadd.f32 1e-05, %v775_v47  ;;  %v7509_v17 = vpop.eup %6168  ;;  %v1156_v52 = vmul.f32 %v998_v11, %v6989_v4 }
 0x1b1   : > { %v1010_v54 = vmul.f32 %v7509_v17, %v7477_v9  ;;  %vm1016_vm15 = vweird.f32 %v7509_v17 }
 0x1b2   : > { %6170 = vrsqrt.f32 %v7502_v28  ;;  %vm7589_vm1 = vmor %vm1015_vm14, %vm1016_vm15  ;;  %vm1025_vm3 = vweird.f32 %v7502_v28 }
 0x1b3   : > { %6172 = vrsqrt.f32 %v7534_v44 }
 0x1b4   : > { %5778 = vmatmul.msk.f32.gmra.mxu1 %vm459_vm0, %v1151_v63  ;;  %v1188_v63 = vld [vmem:[%s6720_s13 + $0x88] sm:$0xff]  ;;  %v7480_v22 = vpop.f32.mrf.mxu1 }
 0x1b6   : > { %5750 = vmatmul.msk.f32.gmra.mxu0 %vm459_vm0, %v1187_v49  ;;  %v7514_v49 = vld [vmem:[%s9570_s4] ss:$0 sm:$0xff] }
 0x1b8   : > { %v7543_v21 = vpop.eup %6170 }
 0x1b9   : > { %v1020_v36 = vmul.f32 %v7543_v21, %v7502_v28  ;;  %v7568_v60 = vpop.eup %6172  ;;  %vm1026_vm4 = vweird.f32 %v7543_v21 }
 0x1ba   : > { %vm7630_vm5 = vmor %vm1025_vm3, %vm1026_vm4  ;;  %vm1036_vm9 = vweird.f32 %v7568_v60 }
 0x1bb   : > { %v1021_v19 = vmul.f32 %v7543_v21, %v1020_v36  ;;  %vm7671_vm10 = vmor %vm1035_vm6, %vm1036_vm9 }
 0x1bc   : > { %5779 = vmatmul.msk.f32.gmra.mxu1 %vm459_vm0, %v1152_v56  ;;  %v1189_v56 = vld [vmem:[%s6720_s13 + $0x90] sm:$0xff] }
 0x1be   : > { %5751 = vmatmul.msk.f32.gmra.mxu0 %vm459_vm0, %v1188_v63  ;;  %v1011_v63 = vmul.f32 %v7509_v17, %v1010_v54  ;;  %v778_v54 = vmul.f32 %v7267_v5, %v6866_v62 }
 0x1c0   : > { %v1012_v55 = vmul.f32 0.5, %v1011_v63  ;;  %v1022_v63 = vmul.f32 0.5, %v1021_v19 }
 0x1c4   : > { %5780 = vmatmul.msk.f32.gmra.mxu1 %vm459_vm0, %v1153_v24  ;;  %v1002_v24 = vmul.f32 0.5, %v1001_v13 }
 0x1c6   : > { %5752 = vmatmul.msk.f32.gmra.mxu0 %vm459_vm0, %v1189_v56  ;;  %v1003_v31 = vsub.f32 1.5, %v1002_v24 }
 0x1c8   : > { %v1004_v51 = vmul.f32 %v7483_v7, %v1003_v31 }
 0x1cc   : > { %5781 = vmatmul.msk.f32.gmra.mxu1 %vm459_vm0, %v1154_v34  ;;  %v777_v34 = vmul.f32 %v7272_v43, %v6866_v62  ;;  %v1191_v43 = vld [vmem:[%s6720_s13 + $0xa0] sm:$0xff] }
 0x1ce   : > { %5753 = vmatmul.msk.f32.gmra.mxu0 %vm459_vm0, %v1190_v1  ;;  %v1030_v1 = vmul.f32 %v7568_v60, %v7534_v44 }
 0x1d1   : > { %v1533_v26 = vpop.f32.mrf.mxu1 }
 0x1d2   : > { %v1534_v18 = vadd.f32 %v1533_v26, %v1324_v46  ;;  %v7536_v46 = vpop.f32.mrf.mxu0  ;;  %v1013_v26 = vsub.f32 1.5, %v1012_v55  ;;  %v779_v55 = vmul.f32 %v7307_v14, %v6866_v62 }
 0x1d4   : > { %v7530_v35 = vadd.f32 %v7514_v49, %v1534_v18  ;;  %5782 = vmatmul.msk.f32.gmra.mxu1 %vm459_vm0, %v1155_v42  ;;  %v1008_v18 = vsel %vm7555_vm13, %v7483_v7, %v1004_v51  ;;  %v1014_v5 = vmul.f32 %v7509_v17, %v1013_v26 }
 0x1d5   : > { %v1157_v31 = vmul.f32 %v1008_v18, %v7018_v39  ;;  %v7634_v18 = vadd.f32 1e-05, %v779_v55 }
 0x1d6   : > { %v1729_v8 = vmin.f32 %v7530_v35, 0.0  ;;  %v1857_v4 = vmul.f32 0.0625, %v7530_v35  ;;  %5754 = vmatmul.msk.f32.gmra.mxu0 %vm459_vm0, %v1191_v43  ;;  %v1018_v36 = vsel %vm7589_vm1, %v7509_v17, %v1014_v5  ;;  %vm1665_vm2 = vcmp.gt.f32.partialorder %v7530_v35, 0.0 }
 0x1d7   : > { %v1158_v14 = vmul.f32 %v1018_v36, %v7027_v6  ;;  %vm1065_vm3 = vweird.f32 %v7634_v18 }
 0x1d8   : > { %v1761_v20 = vmul.f32 1.442695, %v1729_v8 }
 0x1d9   : > { %v1536_v47 = vpop.f32.mrf.mxu1 }
 0x1da   : > { %v1537_v0 = vadd.f32 %v1536_v47, %v1327_v48  ;;  %v7564_v48 = vadd.f32 1e-05, %v777_v34  ;;  %6174 = vpow2.f32 %v1761_v20  ;;  %v7576_v24 = vpop.f32.mrf.mxu0  ;;  %v7597_v47 = vadd.f32 1e-05, %v778_v54  ;;  %v736_v54 = vpop.xlane.xlu2 %735 }
 0x1db   : > { %v1031_v34 = vmul.f32 %v7568_v60, %v1030_v1 }
 0x1dc   : > { %v7560_v45 = vadd.f32 %v7514_v49, %v1537_v0  ;;  %5783 = vmatmul.msk.f32.gmra.mxu1 %vm459_vm0, %v1156_v52  ;;  %6176 = vrsqrt.f32 %v7564_v48  ;;  %v1023_v0 = vsub.f32 1.5, %v1022_v63  ;;  %v1697_v52 = vadd.f32 1.0, %v7530_v35 }
 0x1dd   : > { %v1032_v17 = vmul.f32 0.5, %v1031_v34  ;;  %vm1045_vm11 = vweird.f32 %v7564_v48  ;;  %vm1055_vm15 = vweird.f32 %v7597_v47 }
 0x1de   : > { %v1858_v13 = vmul.f32 0.0625, %v7560_v45  ;;  %v1730_v42 = vmin.f32 %v7560_v45, 0.0  ;;  %v1024_v19 = vmul.f32 %v7543_v21, %v1023_v0  ;;  %vm1666_vm8 = vcmp.gt.f32.partialorder %v7560_v45, 0.0 }
 0x1e0   : > { %v6045_v38 = vpack.i.bf16 %v1857_v4, %v1858_v13  ;;  %v1763_v11 = vmul.f32 1.442695, %v1730_v42  ;;  %v1192_v13 = vld [vmem:[%s6720_s13 + $0xa8] sm:$0xff]  ;;  %v1028_v63 = vsel %vm7630_vm5, %v7543_v21, %v1024_v19 }
 0x1e1   : > { %v1539_v16 = vpop.f32.mrf.mxu1  ;;  %5755 = vmatmul.msk.f32.gmra.mxu0 %vm459_vm0, %v1192_v13 }
 0x1e2   : > { %v1540_v7 = vadd.f32 %v1539_v16, %v7499_v53  ;;  %6046 = vrot.lane.b32.xlu0 %v6045_v38, %s6524_s28  ;;  %v6175_v53 = vpop.eup %6174  ;;  %6178 = vpow2.f32 %v1763_v11  ;;  %v7619_v35 = vpop.f32.mrf.mxu0  ;;  %v1033_v38 = vsub.f32 1.5, %v1032_v17  ;;  %v780_v11 = vmul.f32 %v736_v54, %v6866_v62 }
 0x1e3   : > { %v7605_v51 = vpop.eup %6176  ;;  %6180 = vrsqrt.f32 %v7597_v47  ;;  %v7613_v43 = vsel %vm1665_vm2, %v1697_v52, %v6175_v53  ;;  %v1193_v52 = vld [vmem:[%s6720_s13 + $0xb0] sm:$0xff] }
 0x1e4   : > { %v7594_v8 = vadd.f32 %v7514_v49, %v1540_v7  ;;  %5784 = vmatmul.msk.f32.gmra.mxu1 %vm459_vm0, %v1157_v31  ;;  %9634 = vst [vmem:[#allocation18_spill] sm:$0xff] %v7613_v43  ;;  %v1040_v26 = vmul.f32 %v7605_v51, %v7564_v48  ;;  %v1698_v31 = vadd.f32 1.0, %v7560_v45  ;;  %v1159_v45 = vmul.f32 %v1028_v63, %v7015_v29 }
 0x1e5   : > { %v1034_v55 = vmul.f32 %v7568_v60, %v1033_v38  ;;  %vm1046_vm13 = vweird.f32 %v7605_v51 }
 0x1e6   : > { %v1731_v39 = vmin.f32 %v7594_v8, 0.0  ;;  %v1041_v28 = vmul.f32 %v7605_v51, %v1040_v26  ;;  %v1699_v7 = vadd.f32 1.0, %v7594_v8  ;;  %vm1667_vm7 = vcmp.gt.f32.partialorder %v7594_v8, 0.0  ;;  %vm7709_vm14 = vmor %vm1045_vm11, %vm1046_vm13 }
 0x1e7   : > { %v1859_v19 = vmul.f32 0.0625, %v7594_v8 }
 0x1e8   : > { %v1765_v56 = vmul.f32 1.442695, %v1731_v39  ;;  %v6179_v42 = vpop.eup %6178 }
 0x1e9   : > { %v1542_v20 = vpop.f32.mrf.mxu1  ;;  %v7639_v1 = vpop.eup %6180  ;;  %v7654_v39 = vsel %vm1666_vm8, %v1698_v31, %v6179_v42  ;;  %5756 = vmatmul.msk.f32.gmra.mxu0 %vm459_vm0, %v1193_v52  ;;  %v1038_v42 = vsel %vm7671_vm10, %v7568_v60, %v1034_v55 }
 0x1ea   : > { %6182 = vpow2.f32 %v1765_v56  ;;  %v1543_v4 = vadd.f32 %v1542_v20, %v7536_v46  ;;  %1925 = vrot.lane.b32.xlu0 %v7613_v43, %s6525_s29  ;;  %9637 = vst [vmem:[#allocation19_spill] sm:$0xff] %v7654_v39  ;;  %v1342_v0 = vpop.f32.mrf.mxu0  ;;  %v1050_v36 = vmul.f32 %v7639_v1, %v7597_v47  ;;  %v1042_v56 = vmul.f32 0.5, %v1041_v28  ;;  %v739_v20 = vpop.xlane.xlu1 %738 }
 0x1eb   : > { %6184 = vrsqrt.f32 %v7634_v18  ;;  %v781_v13 = vmul.f32 %v739_v20, %v6866_v62  ;;  %vm1056_vm1 = vweird.f32 %v7639_v1 }
 0x1ec   : > { %v1636_v6 = vadd.f32 %v7514_v49, %v1543_v4  ;;  %5785 = vmatmul.msk.f32.gmra.mxu1 %vm459_vm0, %v1158_v14  ;;  %v7679_v4 = vadd.f32 1e-05, %v780_v11  ;;  %v1051_v44 = vmul.f32 %v7639_v1, %v1050_v36  ;;  %v1043_v26 = vsub.f32 1.5, %v1042_v56  ;;  %vm7733_vm2 = vmor %vm1055_vm15, %vm1056_vm1 }
 0x1ed   : > { %v7697_v31 = vadd.f32 1e-05, %v781_v13 }
 0x1ee   : > { %v1732_v16 = vmin.f32 %v1636_v6, 0.0  ;;  %v1860_v17 = vmul.f32 0.0625, %v1636_v6  ;;  %v1700_v46 = vadd.f32 1.0, %v1636_v6  ;;  %vm1668_vm12 = vcmp.gt.f32.partialorder %v1636_v6, 0.0 }
 0x1ef   : > { %v1160_v6 = vmul.f32 %v1038_v42, %v7044_v59  ;;  %v742_v59 = vpop.xlane.xlu2 %741  ;;  %vm1075_vm8 = vweird.f32 %v7679_v4 }
 0x1f0   : > { %v6183_v5 = vpop.eup %6182  ;;  %v1767_v9 = vmul.f32 1.442695, %v1732_v16  ;;  %v6050_v16 = vpack.i.bf16 %v1859_v19, %v1860_v17  ;;  %v782_v13 = vmul.f32 %v742_v59, %v6866_v62 }
 0x1f1   : > { %v1545_v53 = vpop.f32.mrf.mxu1  ;;  %v7652_v34 = vsel %vm1667_vm7, %v1699_v7, %v6183_v5  ;;  %v7681_v14 = vpop.eup %6184  ;;  %v1052_v5 = vmul.f32 0.5, %v1051_v44 }
 0x1f2   : > { %6186 = vpow2.f32 %v1767_v9  ;;  %v1546_v21 = vadd.f32 %v1545_v53, %v7576_v24  ;;  %1929 = vrot.lane.b32.xlu1 %v7652_v34, %s6525_s29  ;;  %1927 = vrot.lane.b32.xlu0 %v7654_v39, %s6525_s29  ;;  %v1060_v8 = vmul.f32 %v7681_v14, %v7634_v18  ;;  %v7704_v63 = vpop.f32.mrf.mxu0  ;;  %v1044_v9 = vmul.f32 %v7605_v51, %v1043_v26 }
 0x1f3   : > { %6188 = vrsqrt.f32 %v7679_v4  ;;  %v1053_v48 = vsub.f32 1.5, %v1052_v5  ;;  %vm1066_vm4 = vweird.f32 %v7681_v14 }
 0x1f4   : > { %v7676_v29 = vadd.f32 %v7514_v49, %v1546_v21  ;;  %5786 = vmatmul.msk.f32.gmra.mxu1 %vm459_vm0, %v1159_v45  ;;  %v1061_v21 = vmul.f32 %v7681_v14, %v1060_v8  ;;  %6190 = vrsqrt.f32 %v7697_v31  ;;  %v1048_v56 = vsel %vm7709_vm14, %v7605_v51, %v1044_v9  ;;  %vm7767_vm7 = vmor %vm1065_vm3, %vm1066_vm4 }
 0x1f5   : > { %v1161_v51 = vmul.f32 %v1048_v56, %v7053_v3 }
 0x1f6   : > { %v1733_v54 = vmin.f32 %v7676_v29, 0.0  ;;  %v1861_v52 = vmul.f32 0.0625, %v7676_v29  ;;  %v1062_v17 = vmul.f32 0.5, %v1061_v21  ;;  %v745_v26 = vpop.xlane.xlu0 %744  ;;  %v1701_v9 = vadd.f32 1.0, %v7676_v29 }
 0x1f7   : > { %vm1669_vm6 = vcmp.gt.f32.partialorder %v7676_v29, 0.0  ;;  %v783_v56 = vmul.f32 %v745_v26, %v6866_v62 }
 0x1f8   : > { %v6187_v38 = vpop.eup %6186  ;;  %v1769_v53 = vmul.f32 1.442695, %v1733_v54  ;;  %v1063_v8 = vsub.f32 1.5, %v1062_v17 }
 0x1f9   : > { %v1548_v28 = vpop.f32.mrf.mxu1  ;;  %v7695_v7 = vsel %vm1668_vm12, %v1700_v46, %v6187_v38  ;;  %v7718_v55 = vpop.eup %6188  ;;  %v1054_v38 = vmul.f32 %v7639_v1, %v1053_v48  ;;  %vm1085_vm12 = vweird.f32 %v7697_v31 }
 0x1fa   : > { %v1549_v60 = vadd.f32 %v1548_v28, %v7619_v35  ;;  %6051 = vrot.lane.b32.xlu0 %v6050_v16, %s6524_s28  ;;  %1931 = vrot.lane.b32.xlu2 %v7695_v7, %s6525_s29  ;;  %6192 = vpow2.f32 %v1769_v53  ;;  %v1070_v44 = vmul.f32 %v7718_v55, %v7679_v4  ;;  %v1348_v42 = vpop.f32.mrf.mxu0  ;;  %v7731_v47 = vpop.eup %6190  ;;  %v7739_v28 = vadd.f32 1e-05, %v782_v13 }
 0x1fb   : > { %v1058_v11 = vsel %vm7733_vm2, %v7639_v1, %v1054_v38  ;;  %v1064_v59 = vmul.f32 %v7681_v14, %v1063_v8  ;;  %vm1076_vm9 = vweird.f32 %v7718_v55  ;;  %vm1086_vm13 = vweird.f32 %v7731_v47 }
 0x1fc   : > { %v1638_v35 = vadd.f32 %v7514_v49, %v1549_v60  ;;  %5787 = vmatmul.msk.f32.gmra.mxu1 %vm459_vm0, %v1160_v6  ;;  %v1071_v3 = vmul.f32 %v7718_v55, %v1070_v44  ;;  %v1080_v6 = vmul.f32 %v7731_v47, %v7697_v31  ;;  %v1162_v1 = vmul.f32 %v1058_v11, %v7041_v58  ;;  %vm7799_vm11 = vmor %vm1075_vm8, %vm1076_vm9 }
 0x1fd   : > { %v7775_v58 = vadd.f32 1e-05, %v783_v56  ;;  %v1068_v18 = vsel %vm7767_vm7, %v7681_v14, %v1064_v59  ;;  %vm7827_vm15 = vmor %vm1085_vm12, %vm1086_vm13  ;;  %vm1095_vm2 = vweird.f32 %v7739_v28 }
 0x1fe   : > { %v1734_v45 = vmin.f32 %v1638_v35, 0.0  ;;  %v1862_v36 = vmul.f32 0.0625, %v1638_v35  ;;  %v1702_v5 = vadd.f32 1.0, %v1638_v35  ;;  %vm1670_vm5 = vcmp.gt.f32.partialorder %v1638_v35, 0.0 }
 0x1ff   : > { %v1072_v48 = vmul.f32 0.5, %v1071_v3  ;;  %v1081_v13 = vmul.f32 %v7731_v47, %v1080_v6  ;;  %v1163_v6 = vmul.f32 %v1068_v18, %v7078_v2 }
 0x200   : > { %v1771_v20 = vmul.f32 1.442695, %v1734_v45  ;;  %v6055_v24 = vpack.i.bf16 %v1861_v52, %v1862_v36 }
 0x201   : > { %v1551_v19 = vpop.f32.mrf.mxu1 }
 0x202   : > { %6194 = vpow2.f32 %v1771_v20  ;;  %v1552_v46 = vadd.f32 %v1551_v19, %v1342_v0  ;;  %6056 = vrot.lane.b32.xlu2 %v6055_v24, %s6524_s28  ;;  %v6193_v0 = vpop.eup %6192  ;;  %v1351_v29 = vpop.f32.mrf.mxu0  ;;  %v1073_v19 = vsub.f32 1.5, %v1072_v48 }
 0x203   : > { %6196 = vrsqrt.f32 %v7739_v28  ;;  %v7755_v36 = vsel %vm1669_vm6, %v1701_v9, %v6193_v0  ;;  %v748_v24 = vpop.xlane.xlu0 %747  ;;  %v1082_v9 = vmul.f32 0.5, %v1081_v13  ;;  %vm1105_vm6 = vweird.f32 %v7775_v58 }
 0x204   : > { %v1639_v16 = vadd.f32 %v7514_v49, %v1552_v46  ;;  %5788 = vmatmul.msk.f32.gmra.mxu1 %vm459_vm0, %v1161_v51  ;;  %v784_v54 = vmul.f32 %v748_v24, %v6866_v62  ;;  %v1074_v11 = vmul.f32 %v7718_v55, %v1073_v19 }
 0x206   : > { %v1735_v60 = vmin.f32 %v1639_v16, 0.0  ;;  %v1703_v46 = vadd.f32 1.0, %v1639_v16  ;;  %v1863_v51 = vmul.f32 0.0625, %v1639_v16  ;;  %vm1671_vm10 = vcmp.gt.f32.partialorder %v1639_v16, 0.0 }
 0x207   : > { %v1078_v56 = vsel %vm7799_vm11, %v7718_v55, %v1074_v11 }
 0x208   : > { %v6195_v53 = vpop.eup %6194  ;;  %v1773_v21 = vmul.f32 1.442695, %v1735_v60  ;;  %v1164_v55 = vmul.f32 %v1078_v56, %v7098_v37 }
 0x209   : > { %v1554_v45 = vpop.f32.mrf.mxu1  ;;  %v7753_v52 = vsel %vm1670_vm5, %v1702_v5, %v6195_v53  ;;  %v7780_v44 = vpop.eup %6196  ;;  %v7805_v53 = vadd.f32 1e-05, %v784_v54 }
 0x20a   : > { %6198 = vpow2.f32 %v1773_v21  ;;  %1935 = vrot.lane.b32.xlu0 %v7753_v52, %s6525_s29  ;;  %1933 = vrot.lane.b32.xlu2 %v7755_v36, %s6525_s29  ;;  %v1555_v20 = vadd.f32 %v1554_v45, %v7704_v63  ;;  %v1354_v5 = vpop.f32.mrf.mxu0  ;;  %v1090_v16 = vmul.f32 %v7780_v44, %v7739_v28  ;;  %v1083_v45 = vsub.f32 1.5, %v1082_v9 }
 0x20b   : > { %6200 = vrsqrt.f32 %v7775_v58  ;;  %v751_v21 = vpop.xlane.xlu0 %750  ;;  %vm1096_vm3 = vweird.f32 %v7780_v44  ;;  %vm1115_vm9 = vweird.f32 %v7805_v53 }
 0x20c   : > { %5789 = vmatmul.msk.f32.gmra.mxu1 %vm459_vm0, %v1162_v1  ;;  %v1640_v17 = vadd.f32 %v7514_v49, %v1555_v20  ;;  %v1091_v48 = vmul.f32 %v7780_v44, %v1090_v16  ;;  %v785_v24 = vmul.f32 %v751_v21, %v6866_v62  ;;  %vm7854_vm4 = vmor %vm1095_vm2, %vm1096_vm3 }
 0x20e   : > { %v1736_v26 = vmin.f32 %v1640_v17, 0.0  ;;  %v1864_v63 = vmul.f32 0.0625, %v1640_v17  ;;  %v1704_v35 = vadd.f32 1.0, %v1640_v17  ;;  %vm1672_vm14 = vcmp.gt.f32.partialorder %v1640_v17, 0.0 }
 0x20f   : > { %v7833_v37 = vadd.f32 1e-05, %v785_v24 }
 0x210   : > { %v6199_v38 = vpop.eup %6198  ;;  %v1775_v8 = vmul.f32 1.442695, %v1736_v26  ;;  %v6060_v60 = vpack.i.bf16 %v1863_v51, %v1864_v63  ;;  %v1092_v51 = vmul.f32 0.5, %v1091_v48 }
 0x211   : > { %v1557_v0 = vpop.f32.mrf.mxu1  ;;  %v7785_v3 = vsel %vm1671_vm10, %v1703_v46, %v6199_v38  ;;  %v7811_v4 = vpop.eup %6200  ;;  %v1084_v46 = vmul.f32 %v7731_v47, %v1083_v45  ;;  %vm1125_vm13 = vweird.f32 %v7833_v37 }
 0x212   : > { %v1558_v14 = vadd.f32 %v1557_v0, %v1348_v42  ;;  %1937 = vrot.lane.b32.xlu1 %v7785_v3, %s6525_s29  ;;  %6202 = vpow2.f32 %v1775_v8  ;;  %6061 = vrot.lane.b32.xlu0 %v6060_v60, %s6524_s28  ;;  %v1357_v26 = vpop.f32.mrf.mxu0  ;;  %v1100_v63 = vmul.f32 %v7811_v4, %v7775_v58  ;;  %v754_v38 = vpop.xlane.xlu2 %753  ;;  %vm1106_vm7 = vweird.f32 %v7811_v4 }
 0x213   : > { %6204 = vrsqrt.f32 %v7805_v53  ;;  %v1088_v9 = vsel %vm7827_vm15, %v7731_v47, %v1084_v46  ;;  %v786_v16 = vmul.f32 %v754_v38, %v6866_v62  ;;  %vm7882_vm8 = vmor %vm1105_vm6, %vm1106_vm7 }
 0x214   : > { %v1641_v2 = vadd.f32 %v7514_v49, %v1558_v14  ;;  %5790 = vmatmul.msk.f32.gmra.mxu1 %vm459_vm0, %v1163_v6  ;;  %v1093_v14 = vsub.f32 1.5, %v1092_v51  ;;  %v1101_v6 = vmul.f32 %v7811_v4, %v1100_v63  ;;  %v1165_v47 = vmul.f32 %v1088_v9, %v7072_v23 }
 0x216   : > { %v1737_v59 = vmin.f32 %v1641_v2, 0.0  ;;  %v1865_v8 = vmul.f32 0.0625, %v1641_v2  ;;  %v1705_v31 = vadd.f32 1.0, %v1641_v2  ;;  %vm1673_vm1 = vcmp.gt.f32.partialorder %v1641_v2, 0.0 }
 0x217   : > { %v1094_v56 = vmul.f32 %v7780_v44, %v1093_v14  ;;  %v1102_v28 = vmul.f32 0.5, %v1101_v6 }
 0x218   : > { %v1777_v1 = vmul.f32 1.442695, %v1737_v59  ;;  %v6203_v20 = vpop.eup %6202 }
 0x219   : > { %v1560_v13 = vpop.f32.mrf.mxu1  ;;  %v7817_v18 = vsel %vm1672_vm14, %v1704_v35, %v6203_v20  ;;  %v7835_v60 = vpop.eup %6204  ;;  %v7858_v20 = vadd.f32 1e-05, %v786_v16  ;;  %v1103_v23 = vsub.f32 1.5, %v1102_v28 }
 0x21a   : > { %6206 = vpow2.f32 %v1777_v1  ;;  %v1561_v19 = vadd.f32 %v1560_v13, %v1351_v29  ;;  %1939 = vrot.lane.b32.xlu1 %v7817_v18, %s6525_s29  ;;  %v1360_v2 = vpop.f32.mrf.mxu0  ;;  %v1110_v1 = vmul.f32 %v7835_v60, %v7805_v53  ;;  %vm1116_vm10 = vweird.f32 %v7835_v60 }
 0x21b   : > { %6208 = vrsqrt.f32 %v7833_v37  ;;  %vm7906_vm11 = vmor %vm1115_vm9, %vm1116_vm10 }
 0x21c   : > { %v1642_v29 = vadd.f32 %v7514_v49, %v1561_v19  ;;  %5791 = vmatmul.msk.f32.gmra.mxu1 %vm459_vm0, %v1164_v55  ;;  %v1111_v13 = vmul.f32 %v7835_v60, %v1110_v1  ;;  %v1098_v55 = vsel %vm7854_vm4, %v7780_v44, %v1094_v56 }
 0x21e   : > { %v1738_v54 = vmin.f32 %v1642_v29, 0.0  ;;  %v1866_v0 = vmul.f32 0.0625, %v1642_v29  ;;  %v1706_v19 = vadd.f32 1.0, %v1642_v29  ;;  %vm1674_vm5 = vcmp.gt.f32.partialorder %v1642_v29, 0.0 }
 0x220   : > { %v6207_v11 = vpop.eup %6206  ;;  %v1779_v42 = vmul.f32 1.442695, %v1738_v54  ;;  %v6065_v21 = vpack.i.bf16 %v1865_v8, %v1866_v0  ;;  %v1166_v54 = vmul.f32 %v1098_v55, %v7109_v50  ;;  %v1104_v8 = vmul.f32 %v7811_v4, %v1103_v23 }
 0x221   : > { %v1563_v59 = vpop.f32.mrf.mxu1  ;;  %v7845_v45 = vsel %vm1673_vm1, %v1705_v31, %v6207_v11  ;;  %v7864_v24 = vpop.eup %6208  ;;  %v1112_v0 = vmul.f32 0.5, %v1111_v13  ;;  %vm1135_vm1 = vweird.f32 %v7858_v20 }
 0x222   : > { %6210 = vpow2.f32 %v1779_v42  ;;  %v1564_v48 = vadd.f32 %v1563_v59, %v1354_v5  ;;  %1941 = vrot.lane.b32.xlu0 %v7845_v45, %s6525_s29  ;;  %6066 = vrot.lane.b32.xlu2 %v6065_v21, %s6524_s28  ;;  %v1363_v44 = vpop.f32.mrf.mxu0  ;;  %v1120_v29 = vmul.f32 %v7864_v24, %v7833_v37  ;;  %v1108_v16 = vsel %vm7882_vm8, %v7811_v4, %v1104_v8 }
 0x223   : > { %6212 = vrsqrt.f32 %v7858_v20  ;;  %v1113_v9 = vsub.f32 1.5, %v1112_v0  ;;  %v1167_v56 = vmul.f32 %v1108_v16, %v7289_v33  ;;  %vm1126_vm14 = vweird.f32 %v7864_v24 }
 0x224   : > { %v7861_v5 = vadd.f32 %v7514_v49, %v1564_v48  ;;  %5792 = vmatmul.msk.f32.gmra.mxu1 %vm459_vm0, %v1165_v47  ;;  %v1121_v11 = vmul.f32 %v7864_v24, %v1120_v29  ;;  %vm7926_vm15 = vmor %vm1125_vm13, %vm1126_vm14 }
 0x225   : > { %v1114_v4 = vmul.f32 %v7835_v60, %v1113_v9 }
 0x226   : > { %v1739_v51 = vmin.f32 %v7861_v5, 0.0  ;;  %v1867_v50 = vmul.f32 0.0625, %v7861_v5  ;;  %v1122_v1 = vmul.f32 0.5, %v1121_v11  ;;  %v1707_v33 = vadd.f32 1.0, %v7861_v5 }
 0x227   : > { %vm1675_vm12 = vcmp.gt.f32.partialorder %v7861_v5, 0.0 }
 0x228   : > { %v6211_v46 = vpop.eup %6210  ;;  %v1781_v14 = vmul.f32 1.442695, %v1739_v51  ;;  %v1123_v55 = vsub.f32 1.5, %v1122_v1 }
 0x229   : > { %v1566_v63 = vpop.f32.mrf.mxu1  ;;  %v7874_v17 = vsel %vm1674_vm5, %v1706_v19, %v6211_v46  ;;  %v1118_v46 = vsel %vm7906_vm11, %v7835_v60, %v1114_v4 }
 0x22a   : > { %v1567_v38 = vadd.f32 %v1566_v63, %v1357_v26  ;;  %1943 = vrot.lane.b32.xlu1 %v7874_v17, %s6525_s29  ;;  %v7890_v26 = vpop.eup %6212  ;;  %6214 = vpow2.f32 %v1781_v14  ;;  %v1366_v28 = vpop.f32.mrf.mxu0  ;;  %v1168_v0 = vmul.f32 %v1118_v46, %v7325_v32  ;;  %v1124_v29 = vmul.f32 %v7864_v24, %v1123_v55 }
 0x22b   : > { %v1130_v59 = vmul.f32 %v7890_v26, %v7858_v20  ;;  %vm1136_vm2 = vweird.f32 %v7890_v26 }
 0x22c   : > { %v7887_v6 = vadd.f32 %v7514_v49, %v1567_v38  ;;  %5793 = vmatmul.msk.f32.gmra.mxu1 %vm459_vm0, %v1166_v54  ;;  %v1128_v11 = vsel %vm7926_vm15, %v7864_v24, %v1124_v29  ;;  %vm7946_vm5 = vmor %vm1135_vm1, %vm1136_vm2 }
 0x22d   : > { %v1131_v13 = vmul.f32 %v7890_v26, %v1130_v59 }
 0x22e   : > { %v1868_v31 = vmul.f32 0.0625, %v7887_v6  ;;  %v1740_v42 = vmin.f32 %v7887_v6, 0.0  ;;  %v1708_v32 = vadd.f32 1.0, %v7887_v6  ;;  %vm1676_vm3 = vcmp.gt.f32.partialorder %v7887_v6, 0.0 }
 0x22f   : > { %v1132_v63 = vmul.f32 0.5, %v1131_v13  ;;  %v1169_v6 = vmul.f32 %v1128_v11, %v7338_v10 }
 0x230   : > { %v6070_v21 = vpack.i.bf16 %v1867_v50, %v1868_v31  ;;  %v1783_v53 = vmul.f32 1.442695, %v1740_v42 }
 0x231   : > { %v1569_v48 = vpop.f32.mrf.mxu1  ;;  %v1133_v58 = vsub.f32 1.5, %v1132_v63 }
 0x232   : > { %v1570_v47 = vadd.f32 %v1569_v48, %v1360_v2  ;;  %6071 = vrot.lane.b32.xlu0 %v6070_v21, %s6524_s28  ;;  %v6215_v2 = vpop.eup %6214  ;;  %6216 = vpow2.f32 %v1783_v53  ;;  %v1369_v60 = vpop.f32.mrf.mxu0 }
 0x233   : > { %v7920_v54 = vsel %vm1675_vm12, %v1707_v33, %v6215_v2  ;;  %v1134_v59 = vmul.f32 %v7890_v26, %v1133_v58 }
 0x234   : > { %v1645_v23 = vadd.f32 %v7514_v49, %v1570_v47  ;;  %5794 = vmatmul.msk.f32.gmra.mxu1 %vm459_vm0, %v1167_v56 }
 0x236   : > { %v1741_v19 = vmin.f32 %v1645_v23, 0.0  ;;  %v1869_v50 = vmul.f32 0.0625, %v1645_v23  ;;  %v1709_v9 = vadd.f32 1.0, %v1645_v23  ;;  %vm1677_vm4 = vcmp.gt.f32.partialorder %v1645_v23, 0.0 }
 0x238   : > { %v1785_v51 = vmul.f32 1.442695, %v1741_v19  ;;  %v6217_v14 = vpop.eup %6216 }
 0x239   : > { %v1572_v38 = vpop.f32.mrf.mxu1  ;;  %v7940_v47 = vsel %vm1676_vm3, %v1708_v32, %v6217_v14 }
 0x23a   : > { %6218 = vpow2.f32 %v1785_v51  ;;  %v1573_v8 = vadd.f32 %v1572_v38, %v1363_v44  ;;  %1945 = vrot.lane.b32.xlu0 %v7920_v54, %s6525_s29  ;;  %v7956_v1 = vpop.f32.mrf.mxu0 }
 0x23c   : > { %v1646_v37 = vadd.f32 %v7514_v49, %v1573_v8  ;;  %5795 = vmatmul.msk.f32.gmra.mxu1 %vm459_vm0, %v1168_v0 }
 0x23e   : > { %v1742_v44 = vmin.f32 %v1646_v37, 0.0  ;;  %v1870_v31 = vmul.f32 0.0625, %v1646_v37  ;;  %v1710_v53 = vadd.f32 1.0, %v1646_v37  ;;  %vm1678_vm6 = vcmp.gt.f32.partialorder %v1646_v37, 0.0 }
 0x240   : > { %v6219_v16 = vpop.eup %6218  ;;  %v1787_v42 = vmul.f32 1.442695, %v1742_v44  ;;  %v6075_v21 = vpack.i.bf16 %v1869_v50, %v1870_v31 }
 0x241   : > { %v1575_v48 = vpop.f32.mrf.mxu1  ;;  %v7942_v56 = vsel %vm1677_vm4, %v1709_v9, %v6219_v16 }
 0x242   : > { %6220 = vpow2.f32 %v1787_v42  ;;  %v1576_v24 = vadd.f32 %v1575_v48, %v1366_v28  ;;  %6076 = vrot.lane.b32.xlu1 %v6075_v21, %s6524_s28  ;;  %1947 = vrot.lane.b32.xlu0 %v7940_v47, %s6525_s29  ;;  %v1138_v28 = vsel %vm7946_vm5, %v7890_v26, %v1134_v59  ;;  %v7970_v26 = vpop.f32.mrf.mxu0  ;;  %vm2541_vm5 = vcmask 130048  }
 0x243   : > { %1949 = vrot.lane.b32.xlu2 %v7942_v56, %s6525_s29  ;;  %v1170_v10 = vmul.f32 %v1138_v28, %v7364_v57 }
 0x244   : > { %v1647_v20 = vadd.f32 %v7514_v49, %v1576_v24  ;;  %5796 = vmatmul.msk.f32.gmra.mxu1 %vm459_vm0, %v1169_v6 }
 0x246   : > { %v1743_v35 = vmin.f32 %v1647_v20, 0.0  ;;  %v1871_v51 = vmul.f32 0.0625, %v1647_v20  ;;  %v1711_v38 = vadd.f32 1.0, %v1647_v20  ;;  %vm1679_vm7 = vcmp.gt.f32.partialorder %v1647_v20, 0.0 }
 0x248   : > { %v6221_v23 = vpop.eup %6220  ;;  %v1789_v13 = vmul.f32 1.442695, %v1743_v35 }
 0x249   : > { %v1578_v2 = vpop.f32.mrf.mxu1  ;;  %v7964_v19 = vsel %vm1678_vm6, %v1710_v53, %v6221_v23 }
 0x24a   : > { %9660 = vst [vmem:[#allocation20_spill] sm:$0xff] %v7964_v19  ;;  %6222 = vpow2.f32 %v1789_v13  ;;  %v1579_v55 = vadd.f32 %v1578_v2, %v1369_v60  ;;  %v1378_v50 = vpop.f32.mrf.mxu0 }
 0x24b   : > { %1951 = vrot.lane.b32.xlu2 %v7964_v19, %s6525_s29 }
 0x24c   : > { %v1648_v33 = vadd.f32 %v7514_v49, %v1579_v55  ;;  %5797 = vmatmul.msk.f32.gmra.mxu1 %vm459_vm0, %v1170_v10 }
 0x24e   : > { %v1744_v46 = vmin.f32 %v1648_v33, 0.0  ;;  %v1872_v63 = vmul.f32 0.0625, %v1648_v33  ;;  %v1712_v44 = vadd.f32 1.0, %v1648_v33  ;;  %vm1680_vm8 = vcmp.gt.f32.partialorder %v1648_v33, 0.0 }
 0x250   : > { %v6223_v8 = vpop.eup %6222  ;;  %v1791_v57 = vmul.f32 1.442695, %v1744_v46  ;;  %v6080_v0 = vpack.i.bf16 %v1871_v51, %v1872_v63 }
 0x251   : > { %v7972_v29 = vpop.f32.mrf.mxu1  ;;  %v7974_v60 = vsel %vm1679_vm7, %v1711_v38, %v6223_v8 }
 0x252   : > { %6224 = vpow2.f32 %v1791_v57  ;;  %6081 = vrot.lane.b32.xlu1 %v6080_v0, %s6524_s28  ;;  %1953 = vrot.lane.b32.xlu0 %v7974_v60, %s6525_s29  ;;  %v1381_v48 = vpop.f32.mrf.mxu0 }
 0x254   : > { %v7979_v5 = vpop.permute.xlu2 %1931  ;;  %v6047_v37 = vpop.permute.xlu0 %6046 }
 0x255   : > { %v6048_v58 = vunpack.i.l.bf16 %v6047_v37  ;;  %v6049_v14 = vunpack.i.h.bf16 %v6047_v37 }
 0x257   : > { %2568 = vmatpush.msra.mxu2 %v6048_v58 }
 0x258   : > { %v6225_v31 = vpop.eup %6224 }
 0x259   : > { %v7981_v32 = vpop.f32.mrf.mxu1  ;;  %2569 = vmatpush.msra.mxu2 %v6049_v14  ;;  %v7983_v9 = vsel %vm1680_vm8, %v1712_v44, %v6225_v31 }
 0x25a   : > { %1955 = vrot.lane.b32.xlu1 %v7983_v9, %s6525_s29  ;;  %v1384_v23 = vpop.f32.mrf.mxu0 }
 0x25c   : > { %v6057_v11 = vpop.permute.xlu2 %6056  ;;  %v7987_v16 = vpop.permute.xlu0 %1925 }
 0x25d   : > { %v6058_v42 = vunpack.i.l.bf16 %v6057_v11  ;;  %v6059_v21 = vunpack.i.h.bf16 %v6057_v11 }
 0x25f   : > { %2666 = vmatpush.msrb.mxu2 %v6058_v42 }
 0x261   : > { %v1587_v59 = vpop.f32.mrf.mxu1  ;;  %2667 = vmatpush.msrb.mxu2 %v6059_v21 }
 0x262   : > { %v1588_v4 = vadd.f32 %v1587_v59, %v1378_v50  ;;  %v1387_v58 = vpop.f32.mrf.mxu0 }
 0x264   : > { %v1651_v24 = vadd.f32 %v7514_v49, %v1588_v4  ;;  %v7990_v6 = vpop.permute.xlu0 %1927 }
 0x266   : > { %v1747_v20 = vmin.f32 %v1651_v24, 0.0  ;;  %v1875_v33 = vmul.f32 0.0625, %v1651_v24  ;;  %v1715_v51 = vadd.f32 1.0, %v1651_v24  ;;  %vm1683_vm9 = vcmp.gt.f32.partialorder %v1651_v24, 0.0 }
 0x268   : > { %v1797_v28 = vmul.f32 1.442695, %v1747_v20 }
 0x269   : > { %v1590_v35 = vpop.f32.mrf.mxu1 }
 0x26a   : > { %6226 = vpow2.f32 %v1797_v28  ;;  %v1591_v53 = vadd.f32 %v1590_v35, %v1381_v48  ;;  %v1390_v20 = vpop.f32.mrf.mxu0  ;;  %v1582_v28 = vadd.f32 %v7972_v29, %v7956_v1 }
 0x26c   : > { %v1652_v13 = vadd.f32 %v7514_v49, %v1591_v53  ;;  %v6052_v10 = vpop.permute.xlu0 %6051 }
 0x26d   : > { %v6053_v55 = vunpack.i.l.bf16 %v6052_v10  ;;  %v6054_v8 = vunpack.i.h.bf16 %v6052_v10 }
 0x26e   : > { %v1748_v2 = vmin.f32 %v1652_v13, 0.0  ;;  %v1876_v46 = vmul.f32 0.0625, %v1652_v13  ;;  %v1716_v44 = vadd.f32 1.0, %v1652_v13  ;;  %vm1684_vm10 = vcmp.gt.f32.partialorder %v1652_v13, 0.0 }
 0x26f   : > { %2617 = vmatpush.msra.mxu3 %v6053_v55 }
 0x270   : > { %v6227_v63 = vpop.eup %6226  ;;  %v1799_v38 = vmul.f32 1.442695, %v1748_v2  ;;  %v6085_v57 = vpack.i.bf16 %v1875_v33, %v1876_v46 }
 0x271   : > { %v1593_v0 = vpop.f32.mrf.mxu1  ;;  %v7993_v37 = vsel %vm1683_vm9, %v1715_v51, %v6227_v63  ;;  %2618 = vmatpush.msra.mxu3 %v6054_v8 }
 0x272   : > { %6228 = vpow2.f32 %v1799_v38  ;;  %6086 = vrot.lane.b32.xlu0 %v6085_v57, %s6524_s28  ;;  %1961 = vrot.lane.b32.xlu2 %v7993_v37, %s6525_s29  ;;  %v1594_v14 = vadd.f32 %v1593_v0, %v1384_v23 }
 0x274   : > { %v8001_v42 = vadd.f32 %v7514_v49, %v1594_v14 }
 0x276   : > { %v8011_v4 = vmul.f32 0.0625, %v8001_v42  ;;  %vm1685_vm2 = vcmp.gt.f32.partialorder %v8001_v42, 0.0 }
 0x278   : > { %v6229_v50 = vpop.eup %6228 }
 0x279   : > { %v1596_v31 = vpop.f32.mrf.mxu1  ;;  %v7998_v11 = vsel %vm1684_vm10, %v1716_v44, %v6229_v50  ;;  %vm3814_vm10 = vcmask 523520  }
 0x27a   : > { %v1597_v21 = vadd.f32 %v1596_v31, %v1387_v58  ;;  %1963 = vrot.lane.b32.xlu2 %v7998_v11, %s6525_s29 }
 0x27c   : > { %v8006_v59 = vadd.f32 %v7514_v49, %v1597_v21  ;;  %v8008_v48 = vpop.permute.xlu0 %1935  ;;  %v8023_v49 = vld [vmem:[%s9570_s4] ss:$0 sm:$0xff] }
 0x27d   : > { %v1649_v13 = vadd.f32 %v8023_v49, %v1582_v28 }
 0x27e   : > { %v8014_v24 = vmul.f32 0.0625, %v8006_v59  ;;  %vm1686_vm3 = vcmp.gt.f32.partialorder %v8006_v59, 0.0 }
 0x27f   : > { %v1745_v46 = vmin.f32 %v1649_v13, 0.0  ;;  %vm1681_vm13 = vcmp.gt.f32.partialorder %v1649_v13, 0.0 }
 0x281   : > { %v1599_v53 = vpop.f32.mrf.mxu1  ;;  %v1793_v38 = vmul.f32 1.442695, %v1745_v46 }
 0x282   : > { %v1600_v23 = vadd.f32 %v1599_v53, %v1390_v20 }
 0x284   : > { %v1655_v10 = vadd.f32 %v8023_v49, %v1600_v23  ;;  %v6062_v2 = vpop.permute.xlu0 %6061  ;;  %v1713_v23 = vadd.f32 1.0, %v1649_v13 }
 0x285   : > { %v6063_v33 = vunpack.i.l.bf16 %v6062_v2  ;;  %v6064_v1 = vunpack.i.h.bf16 %v6062_v2 }
 0x286   : > { %v1751_v55 = vmin.f32 %v1655_v10, 0.0  ;;  %v1879_v0 = vmul.f32 0.0625, %v1655_v10  ;;  %v1719_v14 = vadd.f32 1.0, %v1655_v10  ;;  %vm1687_vm11 = vcmp.gt.f32.partialorder %v1655_v10, 0.0 }
 0x287   : > { %2715 = vmatpush.msrb.mxu3 %v6063_v33 }
 0x288   : > { %v1805_v51 = vmul.f32 1.442695, %v1751_v55 }
 0x289   : > { %v1602_v29 = vpop.f32.mrf.mxu1  ;;  %2716 = vmatpush.msrb.mxu3 %v6064_v1 }
 0x28a   : > { %6230 = vpow2.f32 %v1805_v51  ;;  %v1603_v63 = vadd.f32 %v1602_v29, %v7261_v12  ;;  %v1585_v12 = vadd.f32 %v7981_v32, %v7970_v26  ;;  %v1873_v32 = vmul.f32 0.0625, %v1649_v13 }
 0x28b   : > { %6232 = vpow2.f32 %v1793_v38 }
 0x28c   : > { %v1656_v8 = vadd.f32 %v8023_v49, %v1603_v63  ;;  %v1650_v10 = vadd.f32 %v8023_v49, %v1585_v12 }
 0x28e   : > { %v1752_v57 = vmin.f32 %v1656_v8, 0.0  ;;  %v1880_v58 = vmul.f32 0.0625, %v1656_v8  ;;  %v1720_v53 = vadd.f32 1.0, %v1656_v8  ;;  %vm1688_vm12 = vcmp.gt.f32.partialorder %v1656_v8, 0.0 }
 0x28f   : > { %v1874_v26 = vmul.f32 0.0625, %v1650_v10  ;;  %v1746_v12 = vmin.f32 %v1650_v10, 0.0  ;;  %vm1682_vm1 = vcmp.gt.f32.partialorder %v1650_v10, 0.0 }
 0x290   : > { %v6231_v44 = vpop.eup %6230  ;;  %v1807_v50 = vmul.f32 1.442695, %v1752_v57  ;;  %v6090_v31 = vpack.i.bf16 %v1879_v0, %v1880_v58 }
 0x291   : > { %v8029_v21 = vpop.f32.mrf.mxu1  ;;  %v8031_v20 = vsel %vm1687_vm11, %v1719_v14, %v6231_v44  ;;  %v6233_v28 = vpop.eup %6232  ;;  %v6100_v51 = vpack.i.bf16 %v1873_v32, %v1874_v26  ;;  %v1749_v32 = vmin.f32 %v8001_v42, 0.0 }
 0x292   : > { %6234 = vpow2.f32 %v1807_v50  ;;  %1969 = vrot.lane.b32.xlu0 %v8031_v20, %s6525_s29  ;;  %6091 = vrot.lane.b32.xlu2 %v6090_v31, %s6524_s28  ;;  %v8043_v46 = vsel %vm1681_vm13, %v1713_v23, %v6233_v28 }
 0x293   : > { %9661 = vst [vmem:[#allocation21_spill] sm:$0xff] %v8043_v46 }
 0x298   : > { %v6235_v2 = vpop.eup %6234 }
 0x299   : > { %v8039_v55 = vpop.f32.mrf.mxu1  ;;  %v8041_v33 = vsel %vm1688_vm12, %v1720_v53, %v6235_v2 }
 0x29a   : > { %1971 = vrot.lane.b32.xlu1 %v8041_v33, %s6525_s29  ;;  %1957 = vrot.lane.b32.xlu2 %v8043_v46, %s6525_s29  ;;  %v1609_v35 = vadd.f32 %v8039_v55, %v7353_v30 }
 0x2a1   : > { %v1611_v1 = vpop.f32.mrf.mxu1 }
 0x2a2   : > { %v1612_v29 = vadd.f32 %v1611_v1, %v7386_v15  ;;  %6101 = vrot.lane.b32.xlu2 %v6100_v51, %s6524_s28 }
 0x2a4   : > { %v1659_v63 = vadd.f32 %v8023_v49, %v1612_v29  ;;  %v1801_v29 = vmul.f32 1.442695, %v1749_v32 }
 0x2a6   : > { %v1755_v38 = vmin.f32 %v1659_v63, 0.0  ;;  %v1883_v44 = vmul.f32 0.0625, %v1659_v63  ;;  %v1723_v13 = vadd.f32 1.0, %v1659_v63  ;;  %vm1691_vm14 = vcmp.gt.f32.partialorder %v1659_v63, 0.0 }
 0x2a8   : > { %v1813_v8 = vmul.f32 1.442695, %v1755_v38  ;;  %v1714_v38 = vadd.f32 1.0, %v1650_v10 }
 0x2a9   : > { %v1614_v57 = vpop.f32.mrf.mxu1 }
 0x2aa   : > { %6236 = vpow2.f32 %v1813_v8  ;;  %v1615_v0 = vadd.f32 %v1614_v57, %v7406_v25  ;;  %v1795_v25 = vmul.f32 1.442695, %v1746_v12  ;;  %v1750_v8 = vmin.f32 %v8006_v59, 0.0 }
 0x2ac   : > { %v1660_v58 = vadd.f32 %v8023_v49, %v1615_v0 }
 0x2ae   : > { %v1756_v14 = vmin.f32 %v1660_v58, 0.0  ;;  %v1884_v50 = vmul.f32 0.0625, %v1660_v58  ;;  %v1724_v2 = vadd.f32 1.0, %v1660_v58  ;;  %vm1692_vm15 = vcmp.gt.f32.partialorder %v1660_v58, 0.0 }
 0x2af   : > { %v1803_v58 = vmul.f32 1.442695, %v1750_v8  ;;  %v1930_v8 = vpop.permute.xlu1 %1929 }
 0x2b0   : > { %v6237_v31 = vpop.eup %6236  ;;  %v1815_v28 = vmul.f32 1.442695, %v1756_v14  ;;  %v6095_v15 = vpack.i.bf16 %v1883_v44, %v1884_v50 }
 0x2b1   : > { %v8054_v53 = vpop.f32.mrf.mxu1  ;;  %v8056_v23 = vsel %vm1691_vm14, %v1723_v13, %v6237_v31  ;;  %v1717_v31 = vadd.f32 1.0, %v8001_v42 }
 0x2b2   : > { %6238 = vpow2.f32 %v1815_v28  ;;  %6096 = vrot.lane.b32.xlu1 %v6095_v15, %s6524_s28  ;;  %1977 = vrot.lane.b32.xlu0 %v8056_v23, %s6525_s29 }
 0x2b3   : > { %6240 = vpow2.f32 %v1795_v25  ;;  %v1718_v25 = vadd.f32 1.0, %v8006_v59 }
 0x2b4   : > { %6242 = vpow2.f32 %v1801_v29 }
 0x2b5   : > { %6244 = vpow2.f32 %v1803_v58 }
 0x2b8   : > { %v6239_v26 = vpop.eup %6238 }
 0x2b9   : > { %v8062_v51 = vpop.f32.mrf.mxu1  ;;  %v8064_v1 = vsel %vm1692_vm15, %v1724_v2, %v6239_v26  ;;  %v6241_v63 = vpop.eup %6240 }
 0x2ba   : > { %1979 = vrot.lane.b32.xlu0 %v8064_v1, %s6525_s29  ;;  %v8069_v0 = vsel %vm1682_vm1, %v1714_v38, %v6241_v63  ;;  %v6243_v50 = vpop.eup %6242 }
 0x2bb   : > { %9662 = vst [vmem:[#allocation22_spill] sm:$0xff] %v8069_v0  ;;  %v8077_v28 = vsel %vm1685_vm2, %v1717_v31, %v6243_v50  ;;  %v6245_v15 = vpop.eup %6244 }
 0x2bc   : > { %v8087_v42 = vsel %vm1686_vm3, %v1718_v25, %v6245_v15 }
 0x2bd   : > { %9663 = vst [vmem:[#allocation23_spill] sm:$0xff] %v8087_v42 }
 0x2c1   : > { %v1623_v57 = vpop.f32.mrf.mxu1 }
 0x2c2   : > { %v1624_v14 = vadd.f32 %v1623_v57, %v7460_v61  ;;  %1959 = vrot.lane.b32.xlu0 %v8069_v0, %s6525_s29  ;;  %v1942_v57 = vpop.permute.xlu0 %1941 }
 0x2c4   : > { %v1663_v44 = vadd.f32 %v8023_v49, %v1624_v14  ;;  %v1938_v14 = vpop.permute.xlu1 %1937 }
 0x2c6   : > { %v1759_v13 = vmin.f32 %v1663_v44, 0.0  ;;  %v1727_v2 = vadd.f32 1.0, %v1663_v44  ;;  %vm1695_vm4 = vcmp.gt.f32.partialorder %v1663_v44, 0.0  ;;  %v1887_v63 = vmul.f32 0.0625, %v1663_v44 }
 0x2c8   : > { %v1821_v12 = vmul.f32 1.442695, %v1759_v13  ;;  %v1934_v13 = vpop.permute.xlu2 %1933 }
 0x2c9   : > { %v1626_v10 = vpop.f32.mrf.mxu1 }
 0x2ca   : > { %6246 = vpow2.f32 %v1821_v12  ;;  %1965 = vrot.lane.b32.xlu0 %v8077_v28, %s6525_s29  ;;  %v1627_v61 = vadd.f32 %v1626_v10, %v7480_v22  ;;  %v6072_v59 = vpop.permute.xlu0 %6071 }
 0x2cc   : > { %v8084_v32 = vadd.f32 %v8023_v49, %v1627_v61  ;;  %v1940_v50 = vpop.permute.xlu1 %1939 }
 0x2ce   : > { %v1888_v22 = vmul.f32 0.0625, %v8084_v32  ;;  %vm1696_vm6 = vcmp.gt.f32.partialorder %v8084_v32, 0.0 }
 0x2d0   : > { %v6247_v26 = vpop.eup %6246  ;;  %v6105_v38 = vpack.i.bf16 %v1887_v63, %v1888_v22  ;;  %v8099_v44 = vpop.permute.xlu2 %6066 }
 0x2d1   : > { %v8089_v29 = vsel %vm1695_vm4, %v1727_v2, %v6247_v26 }
 0x2d2   : > { %1967 = vrot.lane.b32.xlu0 %v8087_v42, %s6525_s29  ;;  %1985 = vrot.lane.b32.xlu2 %v8089_v29, %s6525_s29  ;;  %v1946_v58 = vpop.permute.xlu0 %1945 }
 0x2d4   : > { %v1944_v12 = vpop.permute.xlu1 %1943 }
 0x2d8   : > { %v1950_v61 = vpop.permute.xlu2 %1949 }
 0x2da   : > { %6106 = vrot.lane.b32.xlu0 %v6105_v38, %s6524_s28  ;;  %v1948_v31 = vpop.permute.xlu0 %1947 }
 0x2dc   : > { %v8101_v10 = vpop.permute.xlu1 %6076 }
 0x2e0   : > { %v1952_v25 = vpop.permute.xlu2 %1951 }
 0x2e2   : > { %v1954_v15 = vpop.permute.xlu0 %1953 }
 0x2e7   : > { %2053 = vxpose.xlu1.b32.start [1/2] (short) (narrow) %v1930_v8, 32 }
 0x2e8   : > { %v1962_v26 = vpop.permute.xlu2 %1961 }
 0x2ea   : > { %v8107_v22 = vpop.permute.xlu0 %6086 }
 0x2ef   : > { %2054 = vxpose.xlu1.b32.end [2/2] (short) (narrow) %v7979_v5, 32  ;;  %v8104_v5 = vpop.permute.xlu1 %6081 }
 0x2f7   : > { %v1956_v2 = vpop.permute.xlu1 %1955 }
 0x2f8   : > { %2117 = vxpose.xlu2.b32.start [1/2] (short) (narrow) %v1938_v14, 32 }
 0x2fc   : > { %2181 = vxpose.xlu0.b32.start [1/2] (short) (narrow) %v1946_v58, 32 }
 0x300   : > { %2118 = vxpose.xlu2.b32.end [2/2] (short) (narrow) %v1940_v50, 32 }
 0x304   : > { %2182 = vxpose.xlu0.b32.end [2/2] (short) (narrow) %v1948_v31, 32  ;;  %v1970_v63 = vpop.permute.xlu0 %1969 }
 0x307   : > { %2021 = vxpose.xlu1.b32.start [1/2] (short) (narrow) %v7987_v16, 32  ;;  %v1964_v16 = vpop.permute.xlu2 %1963 }
 0x30f   : > { %2022 = vxpose.xlu1.b32.end [2/2] (short) (narrow) %v7990_v6, 32  ;;  %v1972_v6 = vpop.permute.xlu1 %1971  ;;  %v8109_v8 = vpop.permute.xlu2 %6091 }
 0x317   : > { %v1958_v58 = vpop.permute.xlu2 %1957 }
 0x318   : > { %2245 = vxpose.xlu2.b32.start [1/2] (short) (narrow) %v1954_v15, 32  ;;  %v6074_v15 = vunpack.i.h.bf16 %v6072_v59 }
 0x31c   : > { %2085 = vxpose.xlu0.b32.start [1/2] (short) (narrow) %v1934_v13, 32 }
 0x31f   : > { %v8111_v50 = vpop.permute.xlu2 %6101 }
 0x320   : > { %2246 = vxpose.xlu2.b32.end [2/2] (short) (narrow) %v1956_v2, 32 }
 0x324   : > { %2086 = vxpose.xlu0.b32.end [2/2] (short) (narrow) %v8008_v48, 32  ;;  %v1978_v38 = vpop.permute.xlu0 %1977  ;;  %v8113_v13 = vpop.permute.xlu1 %6096 }
 0x327   : > { %2309 = vxpose.xlu1.b32.start [1/2] (short) (narrow) %v1962_v26, 32 }
 0x32c   : > { %v1980_v14 = vpop.permute.xlu0 %1979 }
 0x32f   : > { %2310 = vxpose.xlu1.b32.end [2/2] (short) (narrow) %v1964_v16, 32 }
 0x334   : > { %v1960_v48 = vpop.permute.xlu0 %1959 }
 0x338   : > { %2149 = vxpose.xlu2.b32.start [1/2] (short) (narrow) %v1942_v57, 32  ;;  %v1986_v57 = vpop.permute.xlu2 %1985 }
 0x33c   : > { %2373 = vxpose.xlu0.b32.start [1/2] (short) (narrow) %v1970_v63, 32  ;;  %v8115_v31 = vpop.permute.xlu0 %1965 }
 0x340   : > { %2150 = vxpose.xlu2.b32.end [2/2] (short) (narrow) %v1944_v12, 32  ;;  %v6073_v12 = vunpack.i.l.bf16 %v6072_v59  ;;  %v1606_v59 = vadd.f32 %v8029_v21, %v7301_v41  ;;  %v6084_v41 = vunpack.i.h.bf16 %v8104_v5 }
 0x344   : > { %2374 = vxpose.xlu0.b32.end [2/2] (short) (narrow) %v1972_v6, 32 }
 0x347   : > { %2213 = vxpose.xlu1.b32.start [1/2] (short) (narrow) %v1950_v61, 32 }
 0x34f   : > { %2214 = vxpose.xlu1.b32.end [2/2] (short) (narrow) %v1952_v25, 32  ;;  %v8118_v25 = vpop.permute.xlu0 %1967 }
 0x357   : > { %v8121_v16 = vpop.permute.xlu0 %6106 }
 0x358   : > { %2437 = vxpose.xlu2.b32.start [1/2] (short) (narrow) %v1978_v38, 32 }
 0x35c   : > { %2277 = vxpose.xlu0.b32.start [1/2] (short) (narrow) %v1958_v58, 32  ;;  %v1760_v58 = vmin.f32 %v8084_v32, 0.0 }
 0x360   : > { %2438 = vxpose.xlu2.b32.end [2/2] (short) (narrow) %v1980_v14, 32 }
 0x364   : > { %2278 = vxpose.xlu0.b32.end [2/2] (short) (narrow) %v1960_v48, 32 }
 0x37c   : > { %2501 = vxpose.xlu0.b32.start [1/2] (short) (narrow) %v1986_v57, 32 }
 0x38b   : > { %v2069_v61 = vpop.trf.xlu1 }
 0x38c   : > { %5802 = vmatmul.msk.f32.vlgmr.msra.gmra.mxu3 %vm2541_vm5, %v2069_v61  ;;  %v1657_v61 = vadd.f32 %v8023_v49, %v1606_v59 }
 0x38d   : > { %2813 = vmatpush.msra.mxu3 %v6073_v12  ;;  %v6068_v12 = vunpack.i.l.bf16 %v8099_v44 }
 0x38e   : > { %v1753_v21 = vmin.f32 %v1657_v61, 0.0  ;;  %vm1689_vm7 = vcmp.gt.f32.partialorder %v1657_v61, 0.0 }
 0x38f   : > { %2814 = vmatpush.msra.mxu3 %v6074_v15  ;;  %v6083_v15 = vunpack.i.l.bf16 %v8104_v5  ;;  %v1728_v5 = vadd.f32 1.0, %v8084_v32 }
 0x390   : > { %v1809_v62 = vmul.f32 1.442695, %v1753_v21 }
 0x391   : > { %v2133_v26 = vpop.trf.xlu2 }
 0x393   : > { %v2070_v2 = vpop.trf.xlu1 }
 0x394   : > { %5803 = vmatmul.msk.f32.gmra.mxu3 %vm2541_vm5, %v2070_v2  ;;  %v1823_v2 = vmul.f32 1.442695, %v1760_v58 }
 0x396   : > { %6248 = vpow2.f32 %v1823_v2 }
 0x397   : > { %6250 = vpow2.f32 %v1809_v62 }
 0x399   : > { %v2134_v6 = vpop.trf.xlu2 }
 0x39b   : > { %v2071_v63 = vpop.trf.xlu1 }
 0x39c   : > { %5804 = vmatmul.msk.f32.gmra.mxu3 %vm2541_vm5, %v2071_v63 }
 0x3a0   : > { %v8124_v38 = vpop.trf.xlu0 }
 0x3a1   : > { %v2135_v48 = vpop.trf.xlu2 }
 0x3a3   : > { %v2072_v14 = vpop.trf.xlu1 }
 0x3a4   : > { %5805 = vmatmul.msk.f32.gmra.mxu3 %vm2541_vm5, %v2072_v14  ;;  %v6069_v14 = vunpack.i.h.bf16 %v8099_v44  ;;  %v6249_v44 = vpop.eup %6248 }
 0x3a5   : > { %v8148_v30 = vsel %vm1696_vm6, %v1728_v5, %v6249_v44 }
 0x3a8   : > { %v8130_v57 = vpop.trf.xlu0 }
 0x3a9   : > { %v2136_v58 = vpop.trf.xlu2 }
 0x3ab   : > { %v2037_v63 = vpop.trf.xlu1 }
 0x3ac   : > { %5798 = vmatmul.msk.f32.vlgmr.msra.gmra.mxu2 %vm2541_vm5, %v2037_v63  ;;  %5810 = vmatmul.msk.f32.vlgmr.msrb.gmra.mxu3 %vm2541_vm5, %v2133_v26  ;;  %v1658_v63 = vadd.f32 %v8023_v49, %v1609_v35 }
 0x3ad   : > { %2764 = vmatpush.msra.mxu2 %v6068_v12  ;;  %2911 = vmatpush.msrb.mxu3 %v6083_v15 }
 0x3ae   : > { %v1754_v12 = vmin.f32 %v1658_v63, 0.0  ;;  %v1722_v44 = vadd.f32 1.0, %v1658_v63  ;;  %vm1690_vm8 = vcmp.gt.f32.partialorder %v1658_v63, 0.0 }
 0x3af   : > { %2765 = vmatpush.msra.mxu2 %v6069_v14  ;;  %2912 = vmatpush.msrb.mxu3 %v6084_v41  ;;  %v1721_v14 = vadd.f32 1.0, %v1657_v61 }
 0x3b0   : > { %v8141_v59 = vpop.trf.xlu0  ;;  %v1811_v15 = vmul.f32 1.442695, %v1754_v12  ;;  %v6078_v12 = vunpack.i.l.bf16 %v8101_v10 }
 0x3b1   : > { %v8152_v2 = vpop.trf.xlu2 }
 0x3b2   : > { %6252 = vpow2.f32 %v1811_v15 }
 0x3b3   : > { %v2038_v26 = vpop.trf.xlu1 }
 0x3b4   : > { %5799 = vmatmul.msk.f32.gmra.mxu2 %vm2541_vm5, %v2038_v26  ;;  %5811 = vmatmul.msk.f32.gmra.mxu3 %vm2541_vm5, %v2134_v6  ;;  %v6251_v6 = vpop.eup %6250 }
 0x3b5   : > { %v8156_v62 = vsel %vm1689_vm7, %v1721_v14, %v6251_v6  ;;  %v1881_v6 = vmul.f32 0.0625, %v1657_v61 }
 0x3b8   : > { %v2200_v55 = vpop.trf.xlu0  ;;  %v6253_v21 = vpop.eup %6252 }
 0x3b9   : > { %1987 = vrot.lane.b32.xlu1 %v8148_v30, %s6525_s29  ;;  %v8162_v26 = vpop.trf.xlu2  ;;  %v8166_v5 = vsel %vm1690_vm8, %v1722_v44, %v6253_v21 }
 0x3bb   : > { %v2039_v35 = vpop.trf.xlu1 }
 0x3bc   : > { %5800 = vmatmul.msk.f32.gmra.mxu2 %vm2541_vm5, %v2039_v35  ;;  %5812 = vmatmul.msk.f32.gmra.mxu3 %vm2541_vm5, %v2135_v48  ;;  %v1621_v48 = vadd.f32 %v8062_v51, %v7442_v40  ;;  %v6088_v35 = vunpack.i.l.bf16 %v8107_v22  ;;  %v6079_v40 = vunpack.i.h.bf16 %v8101_v10  ;;  %v6089_v51 = vunpack.i.h.bf16 %v8107_v22 }
 0x3bd   : > { %v9664_v22 = vpack.i.bf16 %v8011_v4, %v8014_v24 }
 0x3be   : > { %v1662_v15 = vadd.f32 %v8023_v49, %v1621_v48  ;;  %v1618_v48 = vadd.f32 %v8054_v53, %v7424_v27 }
 0x3c0   : > { %v2101_v41 = vpop.trf.xlu0  ;;  %vm1694_vm9 = vcmp.gt.f32.partialorder %v1662_v15, 0.0  ;;  %v1886_v24 = vmul.f32 0.0625, %v1662_v15 }
 0x3c1   : > { %1973 = vrot.lane.b32.xlu1 %v8156_v62, %s6525_s29  ;;  %v2263_v44 = vpop.trf.xlu2 }
 0x3c3   : > { %v2040_v32 = vpop.trf.xlu1 }
 0x3c4   : > { %5801 = vmatmul.msk.f32.gmra.mxu2 %vm2541_vm5, %v2040_v32  ;;  %5813 = vmatmul.msk.f32.gmra.mxu3 %vm2541_vm5, %v2136_v58  ;;  %v1882_v58 = vmul.f32 0.0625, %v1658_v63  ;;  %v1758_v32 = vmin.f32 %v1662_v15, 0.0 }
 0x3c6   : > { %v6115_v21 = vpack.i.bf16 %v1881_v6, %v1882_v58  ;;  %v1819_v63 = vmul.f32 1.442695, %v1758_v32 }
 0x3c8   : > { %v2102_v14 = vpop.trf.xlu0  ;;  %6254 = vpow2.f32 %v1819_v63 }
 0x3c9   : > { %1975 = vrot.lane.b32.xlu1 %v8166_v5, %s6525_s29 }
 0x3cb   : > { %v2325_v61 = vpop.trf.xlu1 }
 0x3cc   : > { %5806 = vmatmul.msk.f32.vlgmr.msrb.gmra.mxu2 %vm2541_vm5, %v2101_v41  ;;  %5818 = vmatmul.msk.f32.vlgmr.msra.gmra.mxu3 %vm2541_vm5, %v8124_v38  ;;  %v2264_v38 = vpop.trf.xlu2 }
 0x3cd   : > { %2862 = vmatpush.msrb.mxu2 %v6078_v12  ;;  %3009 = vmatpush.msra.mxu3 %v6088_v35  ;;  %v1726_v12 = vadd.f32 1.0, %v1662_v15  ;;  %v8194_v35 = vadd.f32 %v8023_v49, %v1618_v48  ;;  %v6103_v49 = vunpack.i.l.bf16 %v8111_v50  ;;  %v6094_v15 = vunpack.i.h.bf16 %v8109_v8 }
 0x3ce   : > { %v6255_v41 = vpop.eup %6254 }
 0x3cf   : > { %2863 = vmatpush.msrb.mxu2 %v6079_v40  ;;  %3010 = vmatpush.msra.mxu3 %v6089_v51  ;;  %v6093_v40 = vunpack.i.l.bf16 %v8109_v8  ;;  %v6104_v51 = vunpack.i.h.bf16 %v8111_v50  ;;  %vm1693_vm11 = vcmp.gt.f32.partialorder %v8194_v35, 0.0 }
 0x3d0   : > { %v2103_v10 = vpop.trf.xlu0 }
 0x3d1   : > { %6116 = vrot.lane.b32.xlu1 %v6115_v21, %s6524_s28  ;;  %v6098_v21 = vunpack.i.l.bf16 %v8113_v13 }
 0x3d3   : > { %v2326_v27 = vpop.trf.xlu1 }
 0x3d4   : > { %5807 = vmatmul.msk.f32.gmra.mxu2 %vm2541_vm5, %v2102_v14  ;;  %5819 = vmatmul.msk.f32.gmra.mxu3 %vm2541_vm5, %v8130_v57  ;;  %v8191_v57 = vsel %vm1694_vm9, %v1726_v12, %v6255_v41  ;;  %v2165_v58 = vpop.trf.xlu2 }
 0x3d5   : > { %9665 = vst [vmem:[#allocation24_spill] sm:$0xff] %v8191_v57 }
 0x3d8   : > { %v2104_v4 = vpop.trf.xlu0 }
 0x3d9   : > { %6111 = vrot.lane.b32.xlu2 %v9664_v22, %s6524_s28 }
 0x3db   : > { %v2327_v6 = vpop.trf.xlu1 }
 0x3dc   : > { %5808 = vmatmul.msk.f32.gmra.mxu2 %vm2541_vm5, %v2103_v10  ;;  %5820 = vmatmul.msk.f32.gmra.mxu3 %vm2541_vm5, %v8141_v59  ;;  %v1885_v59 = vmul.f32 0.0625, %v8194_v35 }
 0x3de   : > { %v6120_v53 = vpack.i.bf16 %v1885_v59, %v1886_v24 }
 0x3e0   : > { %v2389_v50 = vpop.trf.xlu0 }
 0x3e1   : > { %1983 = vrot.lane.b32.xlu2 %v8191_v57, %s6525_s29 }
 0x3e3   : > { %v2328_v32 = vpop.trf.xlu1 }
 0x3e4   : > { %5809 = vmatmul.msk.f32.gmra.mxu2 %vm2541_vm5, %v2104_v4  ;;  %5821 = vmatmul.msk.f32.gmra.mxu3 %vm2541_vm5, %v2200_v55  ;;  %v2166_v55 = vpop.trf.xlu2 }
 0x3e9   : > { %6121 = vrot.lane.b32.xlu2 %v6120_v53, %s6524_s28  ;;  %v6108_v53 = vunpack.i.l.bf16 %v8121_v16  ;;  %s5619_s28 = scalar_lea.hbm %s9687_s26, %s5969_s25 }
 0x3ea   : > { %s5622_s13 = sshll.u32 %s5619_s28, 4  ;;  %s5623_s13 = int_to_ptr.hbm [resolvable:$true] %s5622_s13 }
 0x3eb   : > { %s6463_s12 = sshra.s32 %s5623_s13, 4  ;;  %s6464_s12 = int_to_ptr.hbm [resolvable:$true] %s6463_s12 }
 0x3ec   : > { %5814 = vmatmul.msk.f32.vlgmr.msra.gmra.mxu2 %vm2541_vm5, %v2165_v58  ;;  %5826 = vmatmul.msk.f32.vlgmr.msrb.gmra.mxu3 %vm2541_vm5, %v8152_v2  ;;  %v2167_v14 = vpop.trf.xlu2  ;;  %v2229_v2 = vpop.trf.xlu1  ;;  %s6465_s20 = scalar_lea.hbm %s6464_s12, 256  ;;  %p6470_p10 = scmp.lt.s32.totalorder %s6464_s12, %s9687_s26 }
 0x3ed   : > { %2960 = vmatpush.msra.mxu2 %v6103_v49  ;;  %3107 = vmatpush.msrb.mxu3 %v6093_v40  ;;  %v6109_v49 = vunpack.i.h.bf16 %v8121_v16  ;;  %p6466_p6 = scmp.ne.s32.totalorder %s6464_s12, %s6465_s20  ;;  %p6471_p2 = scmp.lt.s32.totalorder %s6469_s21, %s6465_s20 }
 0x3ef   : > { %2961 = vmatpush.msra.mxu2 %v6104_v51  ;;  %3108 = vmatpush.msrb.mxu3 %v6094_v15  ;;  %p6467_p13 = pnand %p6466_p6, %p6633_p11  ;;  %p6472_p9 = por %p6471_p2, %p6470_p10 }
 0x3f1   : > { %p6468_p3 = pneg %p6467_p13 }
 0x3f3   : > { %p6473_p0 = pnand %p6472_p9, %p6468_p3 }
 0x3f4   : > { %5815 = vmatmul.msk.f32.gmra.mxu2 %vm2541_vm5, %v2166_v55  ;;  %5827 = vmatmul.msk.f32.gmra.mxu3 %vm2541_vm5, %v8162_v26  ;;  %v2168_v8 = vpop.trf.xlu2  ;;  %v6099_v26 = vunpack.i.h.bf16 %v8113_v13  ;;  %v2230_v10 = vpop.trf.xlu1 }
 0x3fc   : > { %5816 = vmatmul.msk.f32.gmra.mxu2 %vm2541_vm5, %v2167_v14  ;;  %5828 = vmatmul.msk.f32.gmra.mxu3 %vm2541_vm5, %v2263_v44  ;;  %v8217_v63 = vpop.trf.xlu2  ;;  %v2390_v44 = vpop.trf.xlu0 }
 0x3fd   : > { %v2231_v12 = vpop.trf.xlu1 }
 0x404   : > { %5817 = vmatmul.msk.f32.gmra.mxu2 %vm2541_vm5, %v2168_v8  ;;  %5829 = vmatmul.msk.f32.gmra.mxu3 %vm2541_vm5, %v2264_v38  ;;  %v8226_v38 = vpop.trf.xlu2  ;;  %v2391_v41 = vpop.trf.xlu0 }
 0x405   : > { %v2232_v24 = vpop.trf.xlu1 }
 0x40c   : > { %5822 = vmatmul.msk.f32.vlgmr.msrb.gmra.mxu2 %vm2541_vm5, %v2229_v2  ;;  %5834 = vmatmul.msk.f32.vlgmr.msra.gmra.mxu3 %vm2541_vm5, %v2325_v61  ;;  %v2455_v61 = vpop.trf.xlu2  ;;  %v2392_v4 = vpop.trf.xlu0 }
 0x40d   : > { %3205 = vmatpush.msra.mxu3 %v6098_v21 }
 0x40f   : > { %3206 = vmatpush.msra.mxu3 %v6099_v26  ;;  %v8222_v22 = vpop.f32.mrf.mxu3 }
 0x414   : > { %5823 = vmatmul.msk.f32.gmra.mxu2 %vm2541_vm5, %v2230_v10  ;;  %5835 = vmatmul.msk.f32.gmra.mxu3 %vm2541_vm5, %v2326_v27  ;;  %v2456_v59 = vpop.trf.xlu2  ;;  %v2293_v27 = vpop.trf.xlu0 }
 0x417   : > { %v2623_v48 = vpop.f32.mrf.mxu3 }
 0x41c   : > { %5824 = vmatmul.msk.f32.gmra.mxu2 %vm2541_vm5, %v2231_v12  ;;  %5836 = vmatmul.msk.f32.gmra.mxu3 %vm2541_vm5, %v2327_v6 }
 0x41f   : > { %v2626_v13 = vpop.f32.mrf.mxu3 }
 0x424   : > { %5825 = vmatmul.msk.f32.gmra.mxu2 %vm2541_vm5, %v2232_v24  ;;  %5837 = vmatmul.msk.f32.gmra.mxu3 %vm2541_vm5, %v2328_v32 }
 0x427   : > { %v2629_v58 = vpop.f32.mrf.mxu3 }
 0x42b   : > { %v1988_v40 = vpop.permute.xlu1 %1987 }
 0x42c   : > { %2502 = vxpose.xlu0.b32.end [2/2] (short) (narrow) %v1988_v40, 32  ;;  %5842 = vmatmul.msk.f32.vlgmr.msrb.gmra.mxu3 %vm2541_vm5, %v2389_v50  ;;  %v8273_v40 = vld [vmem:[%s9571_s5] sm:$0xff] }
 0x42d   : > { %3303 = vmatpush.msrb.mxu3 %v6108_v53  ;;  %5830 = vmatmul.msk.f32.vlgmr.msra.gmra.mxu2 %vm2541_vm5, %v2293_v27  ;;  %v8253_v27 = vld [vmem:[%s9571_s5 + $0x18] sm:$0xff] }
 0x42f   : > { %3304 = vmatpush.msrb.mxu3 %v6109_v49  ;;  %v8236_v15 = vpop.f32.mrf.mxu2  ;;  %v8238_v51 = vpop.f32.mrf.mxu3 }
 0x433   : > { %v1974_v55 = vpop.permute.xlu1 %1973  ;;  %v6112_v6 = vpop.permute.xlu2 %6111 }
 0x434   : > { %v6113_v14 = vunpack.i.l.bf16 %v6112_v6  ;;  %2405 = vxpose.xlu1.b32.start [1/2] (short) (narrow) %v1974_v55, 32  ;;  %5843 = vmatmul.msk.f32.gmra.mxu3 %vm2541_vm5, %v2390_v44  ;;  %v6114_v32 = vunpack.i.h.bf16 %v6112_v6 }
 0x436   : > { %3058 = vmatpush.msrb.mxu2 %v6113_v14 }
 0x437   : > { %v8241_v8 = vpop.f32.mrf.mxu2  ;;  %v2721_v2 = vpop.f32.mrf.mxu3 }
 0x438   : > { %3059 = vmatpush.msrb.mxu2 %v6114_v32 }
 0x43b   : > { %v1976_v16 = vpop.permute.xlu1 %1975 }
 0x43c   : > { %2406 = vxpose.xlu1.b32.end [2/2] (short) (narrow) %v1976_v16, 32  ;;  %5844 = vmatmul.msk.f32.gmra.mxu3 %vm2541_vm5, %v2391_v41  ;;  %v8258_v41 = vld [vmem:[%s9571_s5 + $0x10] sm:$0xff] }
 0x43d   : > { %v3324_v53 = vmul.f32 %v2626_v13, %v8258_v41 }
 0x43f   : > { %v8244_v50 = vpop.f32.mrf.mxu2  ;;  %v2724_v21 = vpop.f32.mrf.mxu3 }
 0x443   : > { %v6117_v26 = vpop.permute.xlu1 %6116 }
 0x444   : > { %v6118_v10 = vunpack.i.l.bf16 %v6117_v26  ;;  %2341 = vxpose.xlu0.b32.start [1/2] (short) (narrow) %v8115_v31, 32  ;;  %5845 = vmatmul.msk.f32.gmra.mxu3 %vm2541_vm5, %v2392_v4  ;;  %v6119_v44 = vunpack.i.h.bf16 %v6117_v26  ;;  %v3325_v31 = vmul.f32 %v2629_v58, %v8253_v27  ;;  %v8264_v4 = vld [vmem:[%s9571_s5 + $0x8] sm:$0xff] }
 0x445   : > { %v3323_v58 = vmul.f32 %v2623_v48, %v8264_v4 }
 0x446   : > { %3156 = vmatpush.msra.mxu2 %v6118_v10 }
 0x447   : > { %v8248_v12 = vpop.f32.mrf.mxu2  ;;  %v2727_v24 = vpop.f32.mrf.mxu3 }
 0x448   : > { %3157 = vmatpush.msra.mxu2 %v6119_v44  ;;  %v3333_v26 = vmul.f32 %v2727_v24, %v8253_v27  ;;  %v3332_v44 = vmul.f32 %v2724_v21, %v8258_v41  ;;  %v3330_v24 = vmul.f32 %v8238_v51, %v8273_v40 }
 0x44c   : > { %2342 = vxpose.xlu0.b32.end [2/2] (short) (narrow) %v8118_v25, 32  ;;  %5850 = vmatmul.msk.f32.vlgmr.msra.gmra.mxu3 %vm2541_vm5, %v8217_v63  ;;  %v3322_v25 = vmul.f32 %v8222_v22, %v8273_v40 }
 0x44d   : > { %3425 = vmatpush.msra.mxu3 %v3325_v31  ;;  %v3331_v31 = vmul.f32 %v2721_v2, %v8264_v4 }
 0x44f   : > { %3426 = vmatpush.msra.mxu3 %v3324_v53  ;;  %v2669_v49 = vpop.f32.mrf.mxu2  ;;  %v8276_v55 = vpop.f32.mrf.mxu3 }
 0x451   : > { %3427 = vmatpush.msra.mxu3 %v3323_v58 }
 0x453   : > { %3428 = vmatpush.msra.mxu3 %v3322_v25 }
 0x454   : > { %5851 = vmatmul.msk.f32.gmra.mxu3 %vm2541_vm5, %v8226_v38 }
 0x457   : > { %v2672_v63 = vpop.f32.mrf.mxu2  ;;  %v8282_v13 = vpop.f32.mrf.mxu3 }
 0x458   : > { %v3327_v38 = vmul.f32 %v2672_v63, %v8264_v4 }
 0x45c   : > { %5852 = vmatmul.msk.f32.gmra.mxu3 %vm2541_vm5, %v2455_v61  ;;  %v3326_v61 = vmul.f32 %v2669_v49, %v8273_v40 }
 0x45f   : > { %v2675_v6 = vpop.f32.mrf.mxu2  ;;  %v8285_v14 = vpop.f32.mrf.mxu3 }
 0x460   : > { %v3328_v16 = vmul.f32 %v2675_v6, %v8258_v41  ;;  %v3816_v6 = vsel %vm3814_vm10, %v7654_v39, 0.0 }
 0x464   : > { %5853 = vmatmul.msk.f32.gmra.mxu3 %vm2541_vm5, %v2456_v59 }
 0x467   : > { %v2678_v48 = vpop.f32.mrf.mxu2  ;;  %v8288_v32 = vpop.f32.mrf.mxu3 }
 0x468   : > { %v3329_v22 = vmul.f32 %v2678_v48, %v8253_v27 }
 0x46a   : > { %3452 = vmatpush.msrb.mxu0 %v3329_v22  ;;  %5974 = vmatpush.msra.mxu1 %v3329_v22  ;;  %v3815_v22 = vsel %vm3814_vm10, %v7613_v43, 0.0 }
 0x46c   : > { %3453 = vmatpush.msrb.mxu0 %v3328_v16  ;;  %5975 = vmatpush.msra.mxu1 %v3328_v16  ;;  %v3817_v16 = vadd.f32 %v3816_v6, %v3815_v22  ;;  %v3888_v22 = vsel %vm3814_vm10, %v8069_v0, 0.0  ;;  %v3906_v0 = vsel %vm3814_vm10, %v8087_v42, 0.0 }
 0x46e   : > { %3454 = vmatpush.msrb.mxu0 %v3327_v38  ;;  %5976 = vmatpush.msra.mxu1 %v3327_v38 }
 0x46f   : > { %v8295_v59 = vpop.f32.mrf.mxu2  ;;  %v2914_v10 = vpop.f32.mrf.mxu3 }
 0x470   : > { %9666 = vst [vmem:[#allocation25_spill] sm:$0xff] %v8295_v59  ;;  %3455 = vmatpush.msrb.mxu0 %v3326_v61  ;;  %5977 = vmatpush.msra.mxu1 %v3326_v61  ;;  %v3346_v38 = vmul.f32 %v2914_v10, %v8273_v40 }
 0x471   : > { %5866 = vmatmul.msk.f32.vlgmr.msrb.gmra.mxu0 %vm459_vm0, %v7755_v36  ;;  %5867 = vmatmul.msk.f32.vlgmr.msra.gmra.mxu1 %vm459_vm0, %v7753_v52 }
 0x472   : > { %3479 = vmatpush.msrb.mxu1 %v3333_v26 }
 0x474   : > { %3480 = vmatpush.msrb.mxu1 %v3332_v44  ;;  %v3818_v44 = vrot.slane %v3817_v16, 4 }
 0x476   : > { %3481 = vmatpush.msrb.mxu1 %v3331_v31  ;;  %v3870_v31 = vsel %vm3814_vm10, %v7964_v19, 0.0 }
 0x477   : > { %v8305_v53 = vpop.f32.mrf.mxu2  ;;  %v2917_v58 = vpop.f32.mrf.mxu3 }
 0x478   : > { %9667 = vst [vmem:[#allocation26_spill] sm:$0xff] %v8305_v53  ;;  %3482 = vmatpush.msrb.mxu1 %v3330_v24  ;;  %v3347_v48 = vmul.f32 %v2917_v58, %v8264_v4  ;;  %v2294_v24 = vpop.trf.xlu0  ;;  %v3869_v58 = vsel %vm3814_vm10, %v7942_v56, 0.0 }
 0x479   : > { %5868 = vmatmul.msk.f32.vlgmr.msrb.gmra.mxu1 %vm459_vm0, %v7785_v3  ;;  %5831 = vmatmul.msk.f32.gmra.mxu2 %vm2541_vm5, %v2294_v24  ;;  %v3871_v10 = vadd.f32 %v3870_v31, %v3869_v58  ;;  %v3887_v24 = vsel %vm3814_vm10, %v8043_v46, 0.0 }
 0x47a   : > { %v3889_v31 = vadd.f32 %v3888_v22, %v3887_v24 }
 0x47c   : > { %v3890_v59 = vrot.slane %v3889_v31, 4 }
 0x47f   : > { %v8309_v21 = vpop.f32.mrf.mxu2  ;;  %v2920_v49 = vpop.f32.mrf.mxu3 }
 0x480   : > { %9668 = vst [vmem:[#allocation27_spill] sm:$0xff] %v8309_v21  ;;  %v3348_v51 = vmul.f32 %v2920_v49, %v8258_v41  ;;  %v3819_v49 = vadd.f32 %v3818_v44, %v3817_v16 }
 0x481   : > { %5869 = vmatmul.msk.f32.gmra.mxu1 %vm459_vm0, %v7817_v18 }
 0x482   : > { %v3820_v6 = vrot.slane %v3819_v49, 2 }
 0x484   : > { %v3821_v16 = vadd.f32 %v3820_v6, %v3819_v49 }
 0x486   : > { %v3822_v53 = vrot.slane %v3821_v16, 1 }
 0x487   : > { %v8313_v2 = vpop.f32.mrf.mxu2  ;;  %v2923_v25 = vpop.f32.mrf.mxu3 }
 0x488   : > { %9669 = vst [vmem:[#allocation28_spill] sm:$0xff] %v8313_v2  ;;  %v3349_v63 = vmul.f32 %v2923_v25, %v8253_v27  ;;  %v3872_v25 = vrot.slane %v3871_v10, 4  ;;  %v3823_v22 = vadd.f32 %v3822_v53, %v3821_v16 }
 0x48a   : > { %3587 = vmatpush.msra.mxu1 %v3349_v63 }
 0x48c   : > { %3588 = vmatpush.msra.mxu1 %v3348_v51 }
 0x48e   : > { %3589 = vmatpush.msra.mxu1 %v3347_v48  ;;  %v2295_v48 = vpop.trf.xlu0 }
 0x48f   : > { %v2865_v61 = vpop.f32.mrf.mxu2  ;;  %v8323_v26 = vpop.f32.mrf.mxu3  ;;  %5832 = vmatmul.msk.f32.gmra.mxu2 %vm2541_vm5, %v2295_v48  ;;  %v3891_v48 = vadd.f32 %v3890_v59, %v3889_v31 }
 0x490   : > { %3590 = vmatpush.msra.mxu1 %v3346_v38  ;;  %v3873_v38 = vadd.f32 %v3872_v25, %v3871_v10  ;;  %v3905_v10 = vsel %vm3814_vm10, %v8077_v28, 0.0  ;;  %v3342_v16 = vmul.f32 %v2865_v61, %v8273_v40 }
 0x491   : > { %5876 = vmatmul.msk.f32.vlgmr.msra.gmra.mxu1 %vm459_vm0, %v7974_v60  ;;  %v3907_v46 = vadd.f32 %v3906_v0, %v3905_v10  ;;  %v3892_v43 = vrot.slane %v3891_v48, 2  ;;  %v3923_v0 = vsel %vm3814_vm10, %v8156_v62, 0.0 }
 0x492   : > { %v3874_v57 = vrot.slane %v3873_v38, 2 }
 0x493   : > { %v3908_v2 = vrot.slane %v3907_v46, 4  ;;  %v3893_v31 = vadd.f32 %v3892_v43, %v3891_v48  ;;  %v3833_v43 = vsel %vm3814_vm10, %v7755_v36, 0.0  ;;  %v1757_v48 = vmin.f32 %v8194_v35, 0.0 }
 0x494   : > { %v3875_v25 = vadd.f32 %v3874_v57, %v3873_v38 }
 0x495   : > { %v3909_v59 = vadd.f32 %v3908_v2, %v3907_v46  ;;  %v3834_v46 = vsel %vm3814_vm10, %v7753_v52, 0.0 }
 0x496   : > { %v2296_v21 = vpop.trf.xlu0  ;;  %v3876_v24 = vrot.slane %v3875_v25, 1  ;;  %v3835_v61 = vadd.f32 %v3834_v46, %v3833_v43  ;;  %v3852_v43 = vsel %vm3814_vm10, %v7874_v17, 0.0 }
 0x497   : > { %v2868_v51 = vpop.f32.mrf.mxu2  ;;  %v8332_v63 = vpop.f32.mrf.mxu3  ;;  %5833 = vmatmul.msk.f32.gmra.mxu2 %vm2541_vm5, %v2296_v21  ;;  %v3924_v21 = vsel %vm3814_vm10, %v8166_v5, 0.0 }
 0x498   : > { %v3877_v57 = vadd.f32 %v3876_v24, %v3875_v25  ;;  %v3925_v53 = vadd.f32 %v3924_v21, %v3923_v0  ;;  %v3343_v38 = vmul.f32 %v2868_v51, %v8264_v4  ;;  %v3836_v21 = vrot.slane %v3835_v61, 4 }
 0x499   : > { %5877 = vmatmul.msk.f32.gmra.mxu1 %vm459_vm0, %v7983_v9  ;;  %v3843_v0 = vsel %vm3814_vm10, %v7817_v18, 0.0 }
 0x49f   : > { %v2871_v44 = vpop.f32.mrf.mxu2  ;;  %v8341_v58 = vpop.f32.mrf.mxu3 }
 0x4a0   : > { %v3344_v42 = vmul.f32 %v2871_v44, %v8258_v41  ;;  %v3894_v44 = vrot.slane %v3893_v31, 1 }
 0x4a2   : > { %v3895_v51 = vadd.f32 %v3894_v44, %v3893_v31  ;;  %v3837_v31 = vadd.f32 %v3836_v21, %v3835_v61  ;;  %v3851_v61 = vsel %vm3814_vm10, %v7845_v45, 0.0 }
 0x4a3   : > { %v3853_v21 = vadd.f32 %v3852_v43, %v3851_v61  ;;  %v3879_v61 = vsel %vm3814_vm10, %v7983_v9, 0.0 }
 0x4a4   : > { %v3838_v46 = vrot.slane %v3837_v31, 2 }
 0x4a6   : > { %3975 = vrot.lane.b32.xlu1 %v3823_v22, %s6525_s29  ;;  %v3926_v22 = vrot.slane %v3925_v53, 4 }
 0x4a7   : > { %v2874_v49 = vpop.f32.mrf.mxu2  ;;  %v8349_v6 = vpop.f32.mrf.mxu3 }
 0x4a8   : > { %v3345_v39 = vmul.f32 %v2874_v49, %v8253_v27  ;;  %v3927_v2 = vadd.f32 %v3926_v22, %v3925_v53 }
 0x4aa   : > { %3560 = vmatpush.msra.mxu0 %v3345_v39  ;;  %v3910_v39 = vrot.slane %v3909_v59, 2  ;;  %v3928_v24 = vrot.slane %v3927_v2, 2 }
 0x4ac   : > { %3561 = vmatpush.msra.mxu0 %v3344_v42  ;;  %v3911_v42 = vadd.f32 %v3910_v39, %v3909_v59  ;;  %v3929_v53 = vadd.f32 %v3928_v24, %v3927_v2  ;;  %v3341_v2 = vmul.f32 %v8288_v32, %v8253_v27  ;;  %v3839_v24 = vadd.f32 %v3838_v46, %v3837_v31 }
 0x4ad   : > { %v3854_v31 = vrot.slane %v3853_v21, 4 }
 0x4ae   : > { %3987 = vrot.lane.b32.xlu1 %v3877_v57, %s6525_s29  ;;  %3562 = vmatpush.msra.mxu0 %v3343_v38  ;;  %v3912_v49 = vrot.slane %v3911_v42, 1  ;;  %v1817_v57 = vmul.f32 1.442695, %v1757_v48  ;;  %v3842_v38 = vsel %vm3814_vm10, %v7785_v3, 0.0  ;;  %v3930_v44 = vrot.slane %v3929_v53, 1 }
 0x4af   : > { %v3110_v10 = vpop.f32.mrf.mxu3 }
 0x4b0   : > { %3563 = vmatpush.msra.mxu0 %v3342_v16  ;;  %v3913_v59 = vadd.f32 %v3912_v49, %v3911_v42  ;;  %v3844_v16 = vadd.f32 %v3843_v0, %v3842_v38  ;;  %6256 = vpow2.f32 %v1817_v57  ;;  %v1725_v49 = vadd.f32 1.0, %v8194_v35 }
 0x4b1   : > { %5874 = vmatmul.msk.f32.vlgmr.msra.gmra.mxu0 %vm459_vm0, %v7942_v56  ;;  %v3340_v0 = vmul.f32 %v8285_v14, %v8258_v41  ;;  %v3339_v38 = vmul.f32 %v8282_v13, %v8264_v4  ;;  %v3338_v35 = vmul.f32 %v8276_v55, %v8273_v40  ;;  %v3860_v13 = vsel %vm3814_vm10, %v7920_v54, 0.0 }
 0x4b2   : > { %v3845_v39 = vrot.slane %v3844_v16, 4 }
 0x4b4   : > { %v3846_v42 = vadd.f32 %v3845_v39, %v3844_v16  ;;  %v3840_v16 = vrot.slane %v3839_v24, 1 }
 0x4b6   : > { %3991 = vrot.lane.b32.xlu1 %v3895_v51, %s6525_s29  ;;  %v3931_v51 = vadd.f32 %v3930_v44, %v3929_v53  ;;  %v3362_v44 = vmul.f32 %v3110_v10, %v8273_v40 }
 0x4b7   : > { %v3113_v25 = vpop.f32.mrf.mxu3 }
 0x4b8   : > { %v3363_v14 = vmul.f32 %v3113_v25, %v8264_v4  ;;  %v3855_v25 = vadd.f32 %v3854_v31, %v3853_v21  ;;  %v3897_v31 = vsel %vm3814_vm10, %v7998_v11, 0.0 }
 0x4b9   : > { %5875 = vmatmul.msk.f32.gmra.mxu0 %vm459_vm0, %v7964_v19  ;;  %v6257_v19 = vpop.eup %6256 }
 0x4ba   : > { %v8389_v53 = vsel %vm1693_vm11, %v1725_v49, %v6257_v19  ;;  %v3861_v19 = vsel %vm3814_vm10, %v7940_v47, 0.0 }
 0x4bb   : > { %v3862_v39 = vadd.f32 %v3861_v19, %v3860_v13 }
 0x4bd   : > { %v3863_v10 = vrot.slane %v3862_v39, 4 }
 0x4be   : > { %3995 = vrot.lane.b32.xlu1 %v3913_v59, %s6525_s29 }
 0x4bf   : > { %v3116_v22 = vpop.f32.mrf.mxu3  ;;  %v3864_v49 = vadd.f32 %v3863_v10, %v3862_v39  ;;  %v3915_v10 = vsel %vm3814_vm10, %v8041_v33, 0.0 }
 0x4c0   : > { %v3364_v32 = vmul.f32 %v3116_v22, %v8258_v41  ;;  %v3847_v22 = vrot.slane %v3846_v42, 2 }
 0x4c2   : > { %v3848_v55 = vadd.f32 %v3847_v22, %v3846_v42  ;;  %v3878_v42 = vsel %vm3814_vm10, %v7974_v60, 0.0 }
 0x4c4   : > { %v3849_v43 = vrot.slane %v3848_v55, 1 }
 0x4c6   : > { %3999 = vrot.lane.b32.xlu1 %v3931_v51, %s6525_s29  ;;  %v3841_v51 = vadd.f32 %v3840_v16, %v3839_v24  ;;  %v3850_v21 = vadd.f32 %v3849_v43, %v3848_v55  ;;  %v3896_v16 = vsel %vm3814_vm10, %v7993_v37, 0.0  ;;  %v3914_v43 = vsel %vm3814_vm10, %v8031_v20, 0.0 }
 0x4c7   : > { %v3119_v48 = vpop.f32.mrf.mxu3 }
 0x4c8   : > { %v3365_v57 = vmul.f32 %v3119_v48, %v8253_v27  ;;  %v2517_v59 = vpop.trf.xlu0 }
 0x4c9   : > { %5858 = vmatmul.msk.f32.vlgmr.msrb.gmra.mxu3 %vm2541_vm5, %v2517_v59  ;;  %v8417_v59 = vpop.permute.xlu2 %1983 }
 0x4ca   : > { %3533 = vmatpush.msrb.mxu3 %v3341_v2  ;;  %1981 = vrot.lane.b32.xlu0 %v8389_v53, %s6525_s29  ;;  %v3856_v2 = vrot.slane %v3855_v25, 2 }
 0x4cb   : > { %3695 = vmatpush.msrb.mxu1 %v3365_v57  ;;  %v3880_v57 = vadd.f32 %v3879_v61, %v3878_v42  ;;  %v3357_v61 = vmul.f32 %v8349_v6, %v8253_v27  ;;  %v3355_v6 = vmul.f32 %v8332_v63, %v8264_v4 }
 0x4cc   : > { %3534 = vmatpush.msrb.mxu3 %v3340_v0  ;;  %v3857_v0 = vadd.f32 %v3856_v2, %v3855_v25  ;;  %v3898_v25 = vadd.f32 %v3897_v31, %v3896_v16 }
 0x4cd   : > { %3696 = vmatpush.msrb.mxu1 %v3364_v32 }
 0x4ce   : > { %3535 = vmatpush.msrb.mxu3 %v3339_v38  ;;  %v3858_v32 = vrot.slane %v3857_v0, 1  ;;  %v3865_v38 = vrot.slane %v3864_v49, 2 }
 0x4cf   : > { %3697 = vmatpush.msrb.mxu1 %v3363_v14  ;;  %v8409_v48 = vpop.f32.mrf.mxu3  ;;  %v3881_v14 = vrot.slane %v3880_v57, 4 }
 0x4d0   : > { %3536 = vmatpush.msrb.mxu3 %v3338_v35  ;;  %v2518_v46 = vpop.trf.xlu0  ;;  %v3859_v19 = vadd.f32 %v3858_v32, %v3857_v0 }
 0x4d1   : > { %3698 = vmatpush.msrb.mxu1 %v3362_v44  ;;  %5859 = vmatmul.msk.f32.gmra.mxu3 %vm2541_vm5, %v2518_v46  ;;  %v3866_v44 = vadd.f32 %v3865_v38, %v3864_v49  ;;  %v3882_v13 = vadd.f32 %v3881_v14, %v3880_v57  ;;  %v3899_v46 = vrot.slane %v3898_v25, 4  ;;  %v3356_v38 = vmul.f32 %v8341_v58, %v8258_v41 }
 0x4d2   : > { %5884 = vmatmul.msk.f32.vlgmr.msrb.gmra.mxu1 %vm459_vm0, %v8031_v20  ;;  %3979 = vrot.lane.b32.xlu0 %v3841_v51, %s6525_s29  ;;  %v6122_v51 = vpop.permute.xlu2 %6121 }
 0x4d3   : > { %v3867_v39 = vrot.slane %v3866_v44, 1  ;;  %v3883_v55 = vrot.slane %v3882_v13, 2  ;;  %v6123_v2 = vunpack.i.l.bf16 %v6122_v51  ;;  %v6124_v32 = vunpack.i.h.bf16 %v6122_v51 }
 0x4d5   : > { %v3868_v42 = vadd.f32 %v3867_v39, %v3866_v44  ;;  %v3884_v0 = vadd.f32 %v3883_v55, %v3882_v13 }
 0x4d7   : > { %v3211_v35 = vpop.f32.mrf.mxu3  ;;  %v3885_v31 = vrot.slane %v3884_v0, 1 }
 0x4d8   : > { %v2519_v24 = vpop.trf.xlu0 }
 0x4d9   : > { %5860 = vmatmul.msk.f32.gmra.mxu3 %vm2541_vm5, %v2519_v24  ;;  %v3900_v24 = vadd.f32 %v3899_v46, %v3898_v25  ;;  %v3886_v58 = vadd.f32 %v3885_v31, %v3884_v0 }
 0x4da   : > { %5885 = vmatmul.msk.f32.gmra.mxu1 %vm459_vm0, %v8041_v33  ;;  %3981 = vrot.lane.b32.xlu0 %v3850_v21, %s6525_s29  ;;  %v3916_v21 = vadd.f32 %v3915_v10, %v3914_v43  ;;  %v3371_v43 = vmul.f32 %v3211_v35, %v8264_v4  ;;  %v3321_v35 = vmul.f32 %v8248_v12, %v8253_v27 }
 0x4db   : > { %v3901_v16 = vrot.slane %v3900_v24, 2 }
 0x4dc   : > { %v3917_v14 = vrot.slane %v3916_v21, 4 }
 0x4dd   : > { %v3902_v13 = vadd.f32 %v3901_v16, %v3900_v24  ;;  %v2421_v24 = vpop.trf.xlu1 }
 0x4de   : > { %v3918_v44 = vadd.f32 %v3917_v14, %v3916_v21  ;;  %v3319_v21 = vmul.f32 %v8241_v8, %v8264_v4  ;;  %v8478_v8 = vpop.f32.mrf.mxu2 }
 0x4df   : > { %v3214_v57 = vpop.f32.mrf.mxu3  ;;  %v3903_v25 = vrot.slane %v3902_v13, 1 }
 0x4e0   : > { %v2520_v22 = vpop.trf.xlu0  ;;  %v3919_v39 = vrot.slane %v3918_v44, 2 }
 0x4e1   : > { %5861 = vmatmul.msk.f32.gmra.mxu3 %vm2541_vm5, %v2520_v22  ;;  %v3354_v22 = vmul.f32 %v8323_v26, %v8273_v40  ;;  %v3372_v26 = vmul.f32 %v3214_v57, %v8258_v41  ;;  %v3904_v55 = vadd.f32 %v3903_v25, %v3902_v13  ;;  %v3318_v57 = vmul.f32 %v8236_v15, %v8273_v40 }
 0x4e2   : > { %3983 = vrot.lane.b32.xlu0 %v3859_v19, %s6525_s29  ;;  %v3920_v10 = vadd.f32 %v3919_v39, %v3918_v44  ;;  %v9670_v39 = vld [vmem:[#allocation18_spill] sm:$0xff] }
 0x4e5   : > { %v2422_v0 = vpop.trf.xlu1 }
 0x4e7   : > { %v3217_v63 = vpop.f32.mrf.mxu3 }
 0x4e8   : > { %v2357_v49 = vpop.trf.xlu0  ;;  %v3373_v46 = vmul.f32 %v3217_v63, %v8253_v27 }
 0x4e9   : > { %5838 = vmatmul.msk.f32.vlgmr.msrb.gmra.mxu2 %vm2541_vm5, %v2357_v49  ;;  %5864 = vmatmul.msk.f32.vlgmr.msra.gmra.mxu3 %vm459_vm0, %v7652_v34 }
 0x4ea   : > { %3254 = vmatpush.msrb.mxu2 %v6123_v2  ;;  %3641 = vmatpush.msra.mxu3 %v3357_v61  ;;  %v3370_v2 = vmul.f32 %v8409_v48, %v8273_v40  ;;  %v3921_v61 = vrot.slane %v3920_v10, 1  ;;  %v3320_v48 = vmul.f32 %v8244_v50, %v8258_v41 }
 0x4eb   : > { %3985 = vrot.lane.b32.xlu0 %v3868_v42, %s6525_s29 }
 0x4ec   : > { %3255 = vmatpush.msrb.mxu2 %v6124_v32  ;;  %3642 = vmatpush.msra.mxu3 %v3356_v38  ;;  %v3922_v42 = vadd.f32 %v3921_v61, %v3920_v10 }
 0x4ed   : > { %v2423_v12 = vpop.trf.xlu1 }
 0x4ee   : > { %3643 = vmatpush.msra.mxu3 %v3355_v6 }
 0x4f0   : > { %3644 = vmatpush.msra.mxu3 %v3354_v22  ;;  %v2358_v19 = vpop.trf.xlu0 }
 0x4f1   : > { %5839 = vmatmul.msk.f32.gmra.mxu2 %vm2541_vm5, %v2358_v19  ;;  %5865 = vmatmul.msk.f32.gmra.mxu3 %vm459_vm0, %v7695_v7 }
 0x4f3   : > { %3989 = vrot.lane.b32.xlu0 %v3886_v58, %s6525_s29 }
 0x4f5   : > { %v2424_v50 = vpop.trf.xlu1 }
 0x4f8   : > { %v2359_v51 = vpop.trf.xlu0 }
 0x4f9   : > { %5840 = vmatmul.msk.f32.gmra.mxu2 %vm2541_vm5, %v2359_v51  ;;  %5872 = vmatmul.msk.f32.vlgmr.msrb.gmra.mxu3 %vm459_vm0, %v7920_v54 }
 0x4fa   : > { %3749 = vmatpush.msrb.mxu3 %v3373_v46 }
 0x4fb   : > { %3993 = vrot.lane.b32.xlu0 %v3904_v55, %s6525_s29 }
 0x4fc   : > { %3750 = vmatpush.msrb.mxu3 %v3372_v26  ;;  %v8481_v38 = vpop.f32.mrf.mxu2  ;;  %v9671_v26 = vld [vmem:[#allocation19_spill] sm:$0xff] }
 0x4fe   : > { %3751 = vmatpush.msrb.mxu3 %v3371_v43 }
 0x500   : > { %v2360_v49 = vpop.trf.xlu0  ;;  %3752 = vmatpush.msrb.mxu3 %v3370_v2 }
 0x501   : > { %5841 = vmatmul.msk.f32.gmra.mxu2 %vm2541_vm5, %v2360_v49  ;;  %5873 = vmatmul.msk.f32.gmra.mxu3 %vm459_vm0, %v7940_v47 }
 0x503   : > { %3997 = vrot.lane.b32.xlu0 %v3922_v42, %s6525_s29  ;;  %v9672_v42 = vld [vmem:[#allocation23_spill] sm:$0xff] }
 0x509   : > { %5846 = vmatmul.msk.f32.vlgmr.msra.gmra.mxu2 %vm2541_vm5, %v2421_v24  ;;  %5880 = vmatmul.msk.f32.vlgmr.msra.gmra.mxu3 %vm459_vm0, %v7993_v37  ;;  %v3825_v24 = vsel %vm3814_vm10, %v7695_v7, 0.0 }
 0x50a   : > { %3398 = vmatpush.msra.mxu2 %v3321_v35  ;;  %v3824_v35 = vsel %vm3814_vm10, %v7652_v34, 0.0 }
 0x50c   : > { %3399 = vmatpush.msra.mxu2 %v3320_v48  ;;  %v3826_v48 = vadd.f32 %v3825_v24, %v3824_v35 }
 0x50e   : > { %3400 = vmatpush.msra.mxu2 %v3319_v21  ;;  %v3827_v21 = vrot.slane %v3826_v48, 4 }
 0x510   : > { %3401 = vmatpush.msra.mxu2 %v3318_v57  ;;  %v3932_v57 = vsel %vm3814_vm10, %v8056_v23, 0.0 }
 0x511   : > { %5881 = vmatmul.msk.f32.gmra.mxu3 %vm459_vm0, %v7998_v11  ;;  %5847 = vmatmul.msk.f32.gmra.mxu2 %vm2541_vm5, %v2422_v0  ;;  %v3933_v0 = vsel %vm3814_vm10, %v8064_v1, 0.0 }
 0x512   : > { %v8483_v14 = vpop.f32.mrf.mxu2 }
 0x518   : > { %v3976_v25 = vpop.permute.xlu1 %3975 }
 0x519   : > { %5888 = vmatmul.msk.f32.vlgmr.msrb.gmra.mxu3 %vm459_vm0, %v8056_v23  ;;  %5848 = vmatmul.msk.f32.gmra.mxu2 %vm2541_vm5, %v2423_v12  ;;  %v4023_v46 = vmul.f32 %v3976_v25, %v9670_v39  ;;  %v4024_v55 = vmul.f32 %v3976_v25, %v9671_v26  ;;  %v3828_v12 = vadd.f32 %v3827_v21, %v3826_v48 }
 0x51a   : > { %v8485_v16 = vpop.f32.mrf.mxu2 }
 0x521   : > { %5889 = vmatmul.msk.f32.gmra.mxu3 %vm459_vm0, %v8064_v1  ;;  %5849 = vmatmul.msk.f32.gmra.mxu2 %vm2541_vm5, %v2424_v50  ;;  %v3934_v50 = vadd.f32 %v3933_v0, %v3932_v57  ;;  %v3353_v0 = vmul.f32 %v8485_v16, %v8253_v27  ;;  %v3352_v57 = vmul.f32 %v8483_v14, %v8258_v41 }
 0x53c   : > { %v1982_v15 = vpop.permute.xlu0 %1981 }
 0x53d   : > { %2469 = vxpose.xlu2.b32.start [1/2] (short) (narrow) %v1982_v15, 32  ;;  %v3935_v15 = vrot.slane %v3934_v50, 4 }
 0x545   : > { %2470 = vxpose.xlu2.b32.end [2/2] (short) (narrow) %v8417_v59, 32 }
 0x54c   : > { %v3306_v32 = vpop.f32.mrf.mxu3 }
 0x54d   : > { %v3378_v13 = vmul.f32 %v3306_v32, %v8273_v40  ;;  %v3829_v32 = vrot.slane %v3828_v12, 2 }
 0x554   : > { %v3309_v6 = vpop.f32.mrf.mxu3 }
 0x555   : > { %v3379_v58 = vmul.f32 %v3309_v6, %v8264_v4  ;;  %v3936_v6 = vadd.f32 %v3935_v15, %v3934_v50  ;;  %v3350_v50 = vmul.f32 %v8478_v8, %v8273_v40  ;;  %v8553_v8 = vpop.f32.mrf.mxu1 }
 0x55c   : > { %v3312_v31 = vpop.f32.mrf.mxu3 }
 0x55d   : > { %v3380_v19 = vmul.f32 %v3312_v31, %v8258_v41  ;;  %v3830_v31 = vadd.f32 %v3829_v32, %v3828_v12  ;;  %v3351_v12 = vmul.f32 %v8481_v38, %v8264_v4 }
 0x564   : > { %v3315_v22 = vpop.f32.mrf.mxu3 }
 0x565   : > { %v3381_v44 = vmul.f32 %v3315_v22, %v8253_v27  ;;  %v3831_v22 = vrot.slane %v3830_v31, 1 }
 0x567   : > { %3803 = vmatpush.msra.mxu1 %v3381_v44  ;;  %v3832_v44 = vadd.f32 %v3831_v22, %v3830_v31  ;;  %v8562_v22 = vpop.f32.mrf.mxu1 }
 0x569   : > { %3804 = vmatpush.msra.mxu1 %v3380_v19  ;;  %v3937_v19 = vrot.slane %v3936_v6, 2 }
 0x56b   : > { %3805 = vmatpush.msra.mxu1 %v3379_v58  ;;  %v3938_v58 = vadd.f32 %v3937_v19, %v3936_v6  ;;  %v9678_v19 = vld [vmem:[#allocation22_spill] sm:$0xff] }
 0x56c   : > { %v3061_v59 = vpop.f32.mrf.mxu2 }
 0x56d   : > { %3806 = vmatpush.msra.mxu1 %v3378_v13  ;;  %v3358_v49 = vmul.f32 %v3061_v59, %v8273_v40  ;;  %v3939_v13 = vrot.slane %v3938_v58, 1 }
 0x56e   : > { %5892 = vmatmul.msk.f32.vlgmr.msra.gmra.mxu1 %vm459_vm0, %v8089_v29 }
 0x56f   : > { %4163 = vmatpush.msrb.mxu1 %v8253_v27  ;;  %v3940_v59 = vadd.f32 %v3939_v13, %v3938_v58  ;;  %v3980_v58 = vpop.permute.xlu0 %3979  ;;  %v8569_v13 = vpop.f32.mrf.mxu1 }
 0x571   : > { %4164 = vmatpush.msrb.mxu1 %v8258_v41 }
 0x573   : > { %4165 = vmatpush.msrb.mxu1 %v8264_v4 }
 0x574   : > { %v3064_v63 = vpop.f32.mrf.mxu2 }
 0x575   : > { %4166 = vmatpush.msrb.mxu1 %v8273_v40  ;;  %v3359_v61 = vmul.f32 %v3064_v63, %v8264_v4  ;;  %v9673_v63 = vld [vmem:[#allocation28_spill] sm:$0xff] }
 0x576   : > { %5893 = vmatmul.msk.f32.gmra.mxu1 %vm459_vm0, %v8148_v30  ;;  %v3337_v25 = vmul.f32 %v9673_v63, %v8253_v27 }
 0x577   : > { %v3982_v63 = vpop.permute.xlu0 %3981 }
 0x57c   : > { %v3067_v51 = vpop.f32.mrf.mxu2 }
 0x57d   : > { %v3360_v43 = vmul.f32 %v3067_v51, %v8258_v41  ;;  %v9674_v51 = vld [vmem:[#allocation27_spill] sm:$0xff] }
 0x57e   : > { %5894 = vmatmul.msk.f32.vlgmr.msrb.gmra.mxu1 %vm459_vm0, %v4023_v46 }
 0x584   : > { %v3070_v10 = vpop.f32.mrf.mxu2 }
 0x585   : > { %v3361_v2 = vmul.f32 %v3070_v10, %v8253_v27  ;;  %v9675_v10 = vld [vmem:[#allocation26_spill] sm:$0xff] }
 0x586   : > { %5895 = vmatmul.msk.f32.gmra.mxu1 %vm459_vm0, %v4024_v55  ;;  %v3336_v55 = vmul.f32 %v9674_v51, %v8258_v41  ;;  %v3984_v51 = vpop.permute.xlu0 %3983 }
 0x587   : > { %3668 = vmatpush.msrb.mxu0 %v3361_v2  ;;  %v9676_v2 = vld [vmem:[#allocation25_spill] sm:$0xff] }
 0x589   : > { %3669 = vmatpush.msrb.mxu0 %v3360_v43  ;;  %v3335_v43 = vmul.f32 %v9675_v10, %v8264_v4 }
 0x58b   : > { %3670 = vmatpush.msrb.mxu0 %v3359_v61  ;;  %v3334_v61 = vmul.f32 %v9676_v2, %v8273_v40 }
 0x58c   : > { %v3159_v35 = vpop.f32.mrf.mxu2 }
 0x58d   : > { %3671 = vmatpush.msrb.mxu0 %v3358_v49  ;;  %v3366_v14 = vmul.f32 %v3159_v35, %v8273_v40 }
 0x58e   : > { %5882 = vmatmul.msk.f32.vlgmr.msrb.gmra.mxu0 %vm459_vm0, %v8077_v28 }
 0x594   : > { %v3162_v21 = vpop.f32.mrf.mxu2 }
 0x595   : > { %v3367_v38 = vmul.f32 %v3162_v21, %v8264_v4 }
 0x596   : > { %5883 = vmatmul.msk.f32.gmra.mxu0 %vm459_vm0, %v9672_v42 }
 0x59c   : > { %v3165_v15 = vpop.f32.mrf.mxu2 }
 0x5a4   : > { %v3168_v16 = vpop.f32.mrf.mxu2 }
 0x5a5   : > { %v3369_v32 = vmul.f32 %v3168_v16, %v8253_v27 }
 0x5be   : > { %3977 = vrot.lane.b32.xlu2 %v3832_v44, %s6525_s29 }
 0x5c6   : > { %4001 = vrot.lane.b32.xlu2 %v3940_v59, %s6525_s29  ;;  %v8575_v59 = vpop.f32.mrf.mxu1 }
 0x5d6   : > { %v2485_v46 = vpop.trf.xlu2 }
 0x5d7   : > { %5854 = vmatmul.msk.f32.vlgmr.msrb.gmra.mxu2 %vm2541_vm5, %v2485_v46  ;;  %v8583_v46 = vpop.f32.mrf.mxu1 }
 0x5d8   : > { %3506 = vmatpush.msrb.mxu2 %v3337_v25  ;;  %v4030_v25 = vmul.f32 %v3982_v63, %v7817_v18  ;;  %v3986_v18 = vpop.permute.xlu0 %3985 }
 0x5d9   : > { %v4033_v2 = vmul.f32 %v3986_v18, %v7920_v54 }
 0x5da   : > { %3507 = vmatpush.msrb.mxu2 %v3336_v55  ;;  %v4031_v55 = vmul.f32 %v3984_v51, %v7845_v45 }
 0x5dc   : > { %3508 = vmatpush.msrb.mxu2 %v3335_v43 }
 0x5de   : > { %3509 = vmatpush.msrb.mxu2 %v3334_v61  ;;  %v2486_v49 = vpop.trf.xlu2  ;;  %v4034_v61 = vmul.f32 %v3986_v18, %v7940_v47 }
 0x5df   : > { %5855 = vmatmul.msk.f32.gmra.mxu2 %vm2541_vm5, %v2486_v49  ;;  %v8589_v10 = vpop.f32.mrf.mxu1 }
 0x5e6   : > { %v2487_v24 = vpop.trf.xlu2 }
 0x5e7   : > { %5856 = vmatmul.msk.f32.gmra.mxu2 %vm2541_vm5, %v2487_v24  ;;  %v8593_v43 = vpop.f32.mrf.mxu1 }
 0x5ee   : > { %v2488_v48 = vpop.trf.xlu2 }
 0x5ef   : > { %5857 = vmatmul.msk.f32.gmra.mxu2 %vm2541_vm5, %v2488_v48  ;;  %v9679_v48 = vld [vmem:[#allocation20_spill] sm:$0xff] }
 0x5f7   : > { %5862 = vmatmul.msk.f32.vlgmr.msra.gmra.mxu2 %vm459_vm0, %v9670_v39  ;;  %v3368_v39 = vmul.f32 %v3165_v15, %v8258_v41 }
 0x5f8   : > { %3614 = vmatpush.msra.mxu2 %v3353_v0  ;;  %v3990_v0 = vpop.permute.xlu0 %3989 }
 0x5f9   : > { %v4037_v47 = vmul.f32 %v3990_v0, %v7974_v60 }
 0x5fa   : > { %3615 = vmatpush.msra.mxu2 %v3352_v57 }
 0x5fc   : > { %3616 = vmatpush.msra.mxu2 %v3351_v12 }
 0x5fe   : > { %3617 = vmatpush.msra.mxu2 %v3350_v50 }
 0x5ff   : > { %5863 = vmatmul.msk.f32.gmra.mxu2 %vm459_vm0, %v9671_v26  ;;  %v9677_v26 = vld [vmem:[#allocation21_spill] sm:$0xff] }
 0x607   : > { %5870 = vmatmul.msk.f32.vlgmr.msrb.gmra.mxu2 %vm459_vm0, %v7845_v45  ;;  %v3988_v45 = vpop.permute.xlu1 %3987 }
 0x608   : > { %3722 = vmatpush.msrb.mxu2 %v3369_v32  ;;  %v4035_v24 = vmul.f32 %v3988_v45, %v7942_v56  ;;  %v4036_v21 = vmul.f32 %v3988_v45, %v9679_v48  ;;  %v4038_v32 = vmul.f32 %v3990_v0, %v7983_v9 }
 0x60a   : > { %3723 = vmatpush.msrb.mxu2 %v3368_v39 }
 0x60c   : > { %3724 = vmatpush.msrb.mxu2 %v3367_v38 }
 0x60e   : > { %3725 = vmatpush.msrb.mxu2 %v3366_v14 }
 0x60f   : > { %5871 = vmatmul.msk.f32.gmra.mxu2 %vm459_vm0, %v7874_v17 }
 0x617   : > { %5878 = vmatmul.msk.f32.vlgmr.msra.gmra.mxu2 %vm459_vm0, %v9677_v26 }
 0x618   : > { %v3978_v6 = vpop.permute.xlu2 %3977  ;;  %5978 = vmatpush.msra.mxu2 %v8253_v27 }
 0x619   : > { %v4025_v31 = vmul.f32 %v3978_v6, %v7652_v34  ;;  %v4026_v44 = vmul.f32 %v3978_v6, %v7695_v7  ;;  %v4027_v34 = vmul.f32 %v3980_v58, %v7755_v36  ;;  %v4028_v7 = vmul.f32 %v3980_v58, %v7753_v52 }
 0x61a   : > { %5979 = vmatpush.msra.mxu2 %v8258_v41  ;;  %v4029_v36 = vmul.f32 %v3982_v63, %v7785_v3  ;;  %v4032_v52 = vmul.f32 %v3984_v51, %v7874_v17  ;;  %v8597_v3 = vpop.f32.mrf.mxu1 }
 0x61b   : > { %5896 = vmatmul.msk.f32.gmra.mxu1 %vm459_vm0, %v4025_v31  ;;  %v3992_v31 = vpop.permute.xlu1 %3991 }
 0x61c   : > { %5980 = vmatpush.msra.mxu2 %v8264_v4  ;;  %v4039_v9 = vmul.f32 %v3992_v31, %v9677_v26  ;;  %v4040_v26 = vmul.f32 %v3992_v31, %v9678_v19 }
 0x61e   : > { %5981 = vmatpush.msra.mxu2 %v8273_v40 }
 0x61f   : > { %5879 = vmatmul.msk.f32.gmra.mxu2 %vm459_vm0, %v9678_v19 }
 0x622   : > { %v8602_v17 = vpop.f32.mrf.mxu1 }
 0x623   : > { %5897 = vmatmul.msk.f32.gmra.mxu1 %vm459_vm0, %v4026_v44  ;;  %v4392_v44 = vld [vmem:[%s6712_s11] sm:$0xff] }
 0x627   : > { %5886 = vmatmul.msk.f32.vlgmr.msrb.gmra.mxu2 %vm459_vm0, %v8156_v62 }
 0x62a   : > { %v4168_v54 = vpop.f32.mrf.mxu1 }
 0x62b   : > { %5898 = vmatmul.msk.f32.gmra.mxu1 %vm459_vm0, %v4027_v34  ;;  %v4264_v12 = vadd.f32 1e-06, %v4168_v54 }
 0x62d   : > { %6258 = vrcp.f32 %v4264_v12  ;;  %v3996_v12 = vpop.permute.xlu1 %3995 }
 0x62f   : > { %5887 = vmatmul.msk.f32.gmra.mxu2 %vm459_vm0, %v8166_v5 }
 0x632   : > { %v4171_v50 = vpop.f32.mrf.mxu1 }
 0x633   : > { %5899 = vmatmul.msk.f32.gmra.mxu1 %vm459_vm0, %v4028_v7  ;;  %v4265_v39 = vadd.f32 1e-06, %v4171_v50  ;;  %v6259_v14 = vpop.eup %6258  ;;  %v4393_v7 = vld [vmem:[%s6712_s11 + $0x8] sm:$0xff] }
 0x634   : > { %v4328_v60 = vmul.f32 16.0, %v6259_v14  ;;  %v4394_v14 = vld [vmem:[%s6712_s11 + $0x10] sm:$0xff] }
 0x635   : > { %6260 = vrcp.f32 %v4265_v39  ;;  %v3430_v39 = vpop.f32.mrf.mxu3 }
 0x637   : > { %5901 = vmatmul.msk.f32.vlgmr.msra.gmra.mxu2 %vm459_vm0, %v4030_v25 }
 0x63b   : > { %5900 = vmatmul.msk.f32.gmra.mxu1 %vm459_vm0, %v4029_v36  ;;  %v9680_v36 = vld [vmem:[#allocation24_spill] sm:$0xff] }
 0x63c   : > { %v3942_v51 = vsel %vm3814_vm10, %v9680_v36, 0.0 }
 0x63f   : > { %5902 = vmatmul.msk.f32.gmra.mxu2 %vm459_vm0, %v4031_v55 }
 0x647   : > { %5903 = vmatmul.msk.f32.gmra.mxu2 %vm459_vm0, %v4032_v52  ;;  %v3941_v52 = vsel %vm3814_vm10, %v8389_v53, 0.0 }
 0x648   : > { %v3943_v18 = vadd.f32 %v3942_v51, %v3941_v52 }
 0x64f   : > { %5904 = vmatmul.msk.f32.gmra.mxu2 %vm459_vm0, %v4033_v2 }
 0x657   : > { %5905 = vmatmul.msk.f32.gmra.mxu2 %vm459_vm0, %v4034_v61  ;;  %v3994_v61 = vpop.permute.xlu0 %3993 }
 0x65a   : > { %v3257_v49 = vpop.f32.mrf.mxu2 }
 0x65b   : > { %v3374_v6 = vmul.f32 %v3257_v49, %v8273_v40  ;;  %v6261_v40 = vpop.eup %6260  ;;  %v3944_v49 = vrot.slane %v3943_v18, 4 }
 0x65c   : > { %v4329_v34 = vmul.f32 16.0, %v6261_v40 }
 0x65f   : > { %5906 = vmatmul.msk.f32.gmra.mxu2 %vm459_vm0, %v4035_v24  ;;  %v4041_v24 = vmul.f32 %v3994_v61, %v7993_v37  ;;  %v4043_v37 = vmul.f32 %v3996_v12, %v8077_v28 }
 0x662   : > { %v3260_v35 = vpop.f32.mrf.mxu2 }
 0x663   : > { %v3375_v38 = vmul.f32 %v3260_v35, %v8264_v4  ;;  %v3945_v35 = vadd.f32 %v3944_v49, %v3943_v18  ;;  %v3457_v49 = vpop.f32.mrf.mxu0 }
 0x665   : > { %v3946_v48 = vrot.slane %v3945_v35, 2 }
 0x667   : > { %5907 = vmatmul.msk.f32.gmra.mxu2 %vm459_vm0, %v4036_v21  ;;  %v4042_v21 = vmul.f32 %v3994_v61, %v7998_v11  ;;  %v3947_v54 = vadd.f32 %v3946_v48, %v3945_v35 }
 0x669   : > { %v3948_v50 = vrot.slane %v3947_v54, 1 }
 0x66a   : > { %v3263_v57 = vpop.f32.mrf.mxu2 }
 0x66b   : > { %v3376_v15 = vmul.f32 %v3263_v57, %v8258_v41 }
 0x66f   : > { %5908 = vmatmul.msk.f32.gmra.mxu2 %vm459_vm0, %v4037_v47 }
 0x672   : > { %v3266_v56 = vpop.f32.mrf.mxu2 }
 0x673   : > { %v3377_v16 = vmul.f32 %v3266_v56, %v8253_v27  ;;  %v3949_v56 = vadd.f32 %v3948_v50, %v3947_v54  ;;  %v3950_v50 = vsel %vm3814_vm10, %v8089_v29, 0.0 }
 0x675   : > { %3776 = vmatpush.msra.mxu0 %v3377_v16 }
 0x677   : > { %3777 = vmatpush.msra.mxu0 %v3376_v15  ;;  %5909 = vmatmul.msk.f32.gmra.mxu2 %vm459_vm0, %v4038_v32 }
 0x679   : > { %3778 = vmatpush.msra.mxu0 %v3375_v38 }
 0x67a   : > { %v3403_v41 = vpop.f32.mrf.mxu2 }
 0x67b   : > { %v4360_v27 = vmul.f32 %v4328_v60, %v3403_v41  ;;  %3779 = vmatpush.msra.mxu0 %v3374_v6  ;;  %v4044_v60 = vmul.f32 %v3996_v12, %v9672_v42 }
 0x67c   : > { %5890 = vmatmul.msk.f32.vlgmr.msra.gmra.mxu0 %vm459_vm0, %v8389_v53 }
 0x67d   : > { %v8619_v4 = vadd.f32 %v4392_v44, %v4360_v27 }
 0x67f   : > { %5910 = vmatmul.msk.f32.gmra.mxu2 %vm459_vm0, %v4039_v9  ;;  %v4456_v58 = vsel %vm459_vm0, %v8619_v4, 0.0  ;;  %v3998_v9 = vpop.permute.xlu0 %3997 }
 0x680   : > { %4457 = vadd.xlane.f32.xlu0 %v4456_v58 }
 0x682   : > { %v3406_v63 = vpop.f32.mrf.mxu2 }
 0x683   : > { %v4361_v25 = vmul.f32 %v4329_v34, %v3406_v63  ;;  %v3433_v34 = vpop.f32.mrf.mxu3  ;;  %v4395_v63 = vld [vmem:[%s6712_s11 + $0x18] sm:$0xff] }
 0x684   : > { %5891 = vmatmul.msk.f32.gmra.mxu0 %vm459_vm0, %v9680_v36 }
 0x685   : > { %v8630_v55 = vadd.f32 %v4393_v7, %v4361_v25  ;;  %v4045_v7 = vmul.f32 %v3998_v9, %v8031_v20  ;;  %v4046_v20 = vmul.f32 %v3998_v9, %v8041_v33 }
 0x687   : > { %5911 = vmatmul.msk.f32.gmra.mxu2 %vm459_vm0, %v4040_v26  ;;  %v4459_v2 = vsel %vm459_vm0, %v8630_v55, 0.0 }
 0x688   : > { %4460 = vadd.xlane.f32.xlu1 %v4459_v2 }
 0x68a   : > { %v8637_v45 = vpop.f32.mrf.mxu2 }
 0x68f   : > { %5912 = vmatmul.msk.f32.gmra.mxu2 %vm459_vm0, %v4041_v24  ;;  %v4396_v24 = vld [vmem:[%s6712_s11 + $0x20] sm:$0xff] }
 0x692   : > { %v8641_v19 = vpop.f32.mrf.mxu2 }
 0x697   : > { %5913 = vmatmul.msk.f32.gmra.mxu2 %vm459_vm0, %v4042_v21  ;;  %v3951_v21 = vsel %vm3814_vm10, %v8148_v30, 0.0 }
 0x698   : > { %v4174_v0 = vpop.f32.mrf.mxu1 }
 0x699   : > { %v4266_v57 = vadd.f32 1e-06, %v4174_v0 }
 0x69a   : > { %v8645_v47 = vpop.f32.mrf.mxu2 }
 0x69b   : > { %6262 = vrcp.f32 %v4266_v57 }
 0x69f   : > { %5914 = vmatmul.msk.f32.gmra.mxu2 %vm459_vm0, %v4043_v37  ;;  %v4000_v37 = vpop.permute.xlu1 %3999 }
 0x6a0   : > { %v4177_v15 = vpop.f32.mrf.mxu1 }
 0x6a1   : > { %v6263_v16 = vpop.eup %6262  ;;  %v4267_v11 = vadd.f32 1e-06, %v4177_v15  ;;  %4003 = vrot.lane.b32.xlu1 %v3949_v56, %s6525_s29  ;;  %v3952_v15 = vadd.f32 %v3951_v21, %v3950_v50 }
 0x6a2   : > { %v4330_v32 = vmul.f32 16.0, %v6263_v16  ;;  %v8650_v38 = vpop.f32.mrf.mxu2 }
 0x6a3   : > { %6264 = vrcp.f32 %v4267_v11 }
 0x6a4   : > { %v4362_v6 = vmul.f32 %v4330_v32, %v3430_v39  ;;  %v4397_v39 = vld [vmem:[%s6712_s11 + $0x28] sm:$0xff]  ;;  %v4047_v32 = vmul.f32 %v4000_v37, %v8156_v62 }
 0x6a6   : > { %v8654_v31 = vadd.f32 %v4394_v14, %v4362_v6  ;;  %v3953_v6 = vrot.slane %v3952_v15, 4 }
 0x6a7   : > { %5915 = vmatmul.msk.f32.gmra.mxu2 %vm459_vm0, %v4044_v60 }
 0x6a8   : > { %v4180_v28 = vpop.f32.mrf.mxu1  ;;  %v4462_v41 = vsel %vm459_vm0, %v8654_v31, 0.0  ;;  %v3954_v9 = vadd.f32 %v3953_v6, %v3952_v15  ;;  %v9681_v15 = vld [vmem:[#allocation17_spill] sm:$0xff] }
 0x6a9   : > { %v6265_v44 = vpop.eup %6264  ;;  %v4268_v27 = vadd.f32 1e-06, %v4180_v28  ;;  %4463 = vadd.xlane.f32.xlu2 %v4462_v41 }
 0x6aa   : > { %v4331_v40 = vmul.f32 16.0, %v6265_v44  ;;  %v8659_v58 = vpop.f32.mrf.mxu2 }
 0x6ab   : > { %6266 = vrcp.f32 %v4268_v27 }
 0x6ac   : > { %v4363_v42 = vmul.f32 %v4331_v40, %v3433_v34 }
 0x6ae   : > { %v8663_v25 = vadd.f32 %v4395_v63, %v4363_v42  ;;  %v4048_v63 = vmul.f32 %v4000_v37, %v8166_v5 }
 0x6af   : > { %5916 = vmatmul.msk.f32.gmra.mxu2 %vm459_vm0, %v4045_v7  ;;  %v3955_v7 = vrot.slane %v3954_v9, 2 }
 0x6b0   : > { %v4183_v51 = vpop.f32.mrf.mxu1  ;;  %v4465_v26 = vsel %vm459_vm0, %v8663_v25, 0.0 }
 0x6b1   : > { %v6267_v52 = vpop.eup %6266  ;;  %v4269_v18 = vadd.f32 1e-06, %v4183_v51  ;;  %4466 = vadd.xlane.f32.xlu0 %v4465_v26 }
 0x6b2   : > { %v4332_v2 = vmul.f32 16.0, %v6267_v52  ;;  %v8668_v61 = vpop.f32.mrf.mxu2  ;;  %v4399_v52 = vld [vmem:[%s6712_s11 + $0x38] sm:$0xff] }
 0x6b3   : > { %6268 = vrcp.f32 %v4269_v18  ;;  %v4002_v18 = vpop.permute.xlu2 %4001 }
 0x6b4   : > { %v4364_v35 = vmul.f32 %v4332_v2, %v3457_v49  ;;  %v4049_v5 = vmul.f32 %v4002_v18, %v8056_v23 }
 0x6b6   : > { %v8672_v48 = vadd.f32 %v4396_v24, %v4364_v35 }
 0x6b7   : > { %5917 = vmatmul.msk.f32.gmra.mxu2 %vm459_vm0, %v4046_v20 }
 0x6b8   : > { %v4186_v54 = vpop.f32.mrf.mxu1  ;;  %v4468_v0 = vsel %vm459_vm0, %v8672_v48, 0.0 }
 0x6b9   : > { %v6269_v57 = vpop.eup %6268  ;;  %v4270_v12 = vadd.f32 1e-06, %v4186_v54  ;;  %4469 = vadd.xlane.f32.xlu0 %v4468_v0  ;;  %v4400_v54 = vld [vmem:[%s6712_s11 + $0x40] sm:$0xff] }
 0x6ba   : > { %v4333_v33 = vmul.f32 16.0, %v6269_v57  ;;  %v4189_v56 = vpop.f32.mrf.mxu2 }
 0x6bb   : > { %6270 = vrcp.f32 %v4270_v12  ;;  %v4271_v16 = vadd.f32 1e-06, %v4189_v56  ;;  %v4050_v12 = vmul.f32 %v4002_v18, %v8064_v1 }
 0x6bc   : > { %v4365_v11 = vmul.f32 %v4333_v33, %v8553_v8  ;;  %v4398_v8 = vld [vmem:[%s6712_s11 + $0x30] sm:$0xff] }
 0x6bd   : > { %6272 = vrcp.f32 %v4271_v16 }
 0x6be   : > { %v8684_v14 = vadd.f32 %v4397_v39, %v4365_v11 }
 0x6bf   : > { %5918 = vmatmul.msk.f32.gmra.mxu2 %vm459_vm0, %v4047_v32 }
 0x6c0   : > { %v4471_v60 = vsel %vm459_vm0, %v8684_v14, 0.0 }
 0x6c1   : > { %v6271_v28 = vpop.eup %6270  ;;  %4472 = vadd.xlane.f32.xlu0 %v4471_v60 }
 0x6c2   : > { %v4334_v41 = vmul.f32 16.0, %v6271_v28  ;;  %v4192_v44 = vpop.f32.mrf.mxu2 }
 0x6c3   : > { %v6273_v27 = vpop.eup %6272  ;;  %v4272_v40 = vadd.f32 1e-06, %v4192_v44 }
 0x6c4   : > { %v4366_v62 = vmul.f32 %v4334_v41, %v8562_v22  ;;  %v4335_v34 = vmul.f32 16.0, %v6273_v27  ;;  %v3956_v22 = vadd.f32 %v3955_v7, %v3954_v9  ;;  %v3565_v9 = vpop.f32.mrf.mxu0 }
 0x6c5   : > { %6274 = vrcp.f32 %v4272_v40 }
 0x6c6   : > { %v8692_v42 = vadd.f32 %v4398_v8, %v4366_v62  ;;  %v4367_v51 = vmul.f32 %v4335_v34, %v8569_v13  ;;  %v3957_v20 = vrot.slane %v3956_v22, 1 }
 0x6c7   : > { %5919 = vmatmul.msk.f32.gmra.mxu2 %vm459_vm0, %v4048_v63  ;;  %v4404_v63 = vld [vmem:[%s6712_s11 + $0x60] sm:$0xff] }
 0x6c8   : > { %v4474_v26 = vsel %vm459_vm0, %v8692_v42, 0.0  ;;  %v8699_v24 = vadd.f32 %v4399_v52, %v4367_v51  ;;  %v3958_v0 = vadd.f32 %v3957_v20, %v3956_v22 }
 0x6c9   : > { %4475 = vadd.xlane.f32.xlu2 %v4474_v26 }
 0x6ca   : > { %v4195_v35 = vpop.f32.mrf.mxu2  ;;  %v4477_v21 = vsel %vm459_vm0, %v8699_v24, 0.0 }
 0x6cb   : > { %v6275_v2 = vpop.eup %6274 }
 0x6cc   : > { %v4336_v49 = vmul.f32 16.0, %v6275_v2  ;;  %v3568_v26 = vpop.f32.mrf.mxu0  ;;  %v4405_v2 = vld [vmem:[%s6712_s11 + $0x68] sm:$0xff] }
 0x6ce   : > { %v4368_v13 = vmul.f32 %v4336_v49, %v8637_v45  ;;  %v4273_v49 = vadd.f32 1e-06, %v4195_v35 }
 0x6cf   : > { %5920 = vmatmul.msk.f32.gmra.mxu2 %vm459_vm0, %v4049_v5 }
 0x6d0   : > { %v8707_v57 = vadd.f32 %v4400_v54, %v4368_v13 }
 0x6d1   : > { %4478 = vadd.xlane.f32.xlu2 %v4477_v21 }
 0x6d2   : > { %v4198_v23 = vpop.f32.mrf.mxu2  ;;  %v4480_v50 = vsel %vm459_vm0, %v8707_v57, 0.0 }
 0x6d3   : > { %v4274_v21 = vadd.f32 1e-06, %v4198_v23 }
 0x6d5   : > { %4005 = vrot.lane.b32.xlu0 %v3958_v0, %s6525_s29  ;;  %s5620_s29 = sshll.u32 %s9207_s30, 4  ;;  %s5621_s29 = int_to_ptr.vmem [resolvable:$true] %s5620_s29 }
 0x6d7   : > { %5921 = vmatmul.msk.f32.gmra.mxu2 %vm459_vm0, %v4050_v12 }
 0x6d9   : > { %4481 = vadd.xlane.f32.xlu2 %v4480_v50 }
 0x6da   : > { %v4201_v45 = vpop.f32.mrf.mxu2 }
 0x6e2   : > { %v4204_v37 = vpop.f32.mrf.mxu2 }
 0x6e3   : > { %v4276_v33 = vadd.f32 1e-06, %v4204_v37 }
 0x6e5   : > { %6276 = vrcp.f32 %v4276_v33  ;;  %v4275_v33 = vadd.f32 1e-06, %v4201_v45 }
 0x6ea   : > { %v4207_v39 = vpop.f32.mrf.mxu2 }
 0x6eb   : > { %v4277_v32 = vadd.f32 1e-06, %v4207_v39  ;;  %v6277_v60 = vpop.eup %6276  ;;  %v4401_v39 = vld [vmem:[%s6712_s11 + $0x48] sm:$0xff] }
 0x6ec   : > { %v4340_v44 = vmul.f32 16.0, %v6277_v60 }
 0x6ed   : > { %6278 = vrcp.f32 %v4277_v32 }
 0x6ee   : > { %v4372_v8 = vmul.f32 %v4340_v44, %v3565_v9  ;;  %6280 = vrcp.f32 %v4273_v49 }
 0x6ef   : > { %6282 = vrcp.f32 %v4274_v21 }
 0x6f0   : > { %v8729_v51 = vadd.f32 %v4404_v63, %v4372_v8  ;;  %6284 = vrcp.f32 %v4275_v33  ;;  %v4402_v8 = vld [vmem:[%s6712_s11 + $0x50] sm:$0xff] }
 0x6f2   : > { %v4492_v18 = vsel %vm459_vm0, %v8729_v51, 0.0 }
 0x6f3   : > { %v4458_v56 = vpop.xlane.xlu0 %4457  ;;  %v6279_v34 = vpop.eup %6278 }
 0x6f4   : > { %v4552_v16 = vmul.f32 %v4458_v56, %v9681_v15  ;;  %v4341_v7 = vmul.f32 16.0, %v6279_v34  ;;  %v6281_v54 = vpop.eup %6280 }
 0x6f5   : > { %v4337_v35 = vmul.f32 16.0, %v6281_v54 }
 0x6f6   : > { %v8716_v11 = vsub.f32 %v8619_v4, %v4552_v16  ;;  %v4373_v52 = vmul.f32 %v4341_v7, %v3568_v26  ;;  %v6283_v16 = vpop.eup %6282 }
 0x6f7   : > { %v4369_v23 = vmul.f32 %v4337_v35, %v8641_v19  ;;  %v4338_v32 = vmul.f32 16.0, %v6283_v16  ;;  %v6285_v9 = vpop.eup %6284 }
 0x6f8   : > { %v4616_v1 = vmul.f32 %v8716_v11, %v8716_v11  ;;  %v8734_v22 = vadd.f32 %v4405_v2, %v4373_v52  ;;  %v4339_v34 = vmul.f32 16.0, %v6285_v9 }
 0x6f9   : > { %v8755_v60 = vadd.f32 %v4401_v39, %v4369_v23 }
 0x6fa   : > { %v4648_v6 = vsel %vm459_vm0, %v4616_v1, 0.0  ;;  %v4495_v5 = vsel %vm459_vm0, %v8734_v22, 0.0 }
 0x6fb   : > { %4649 = vadd.xlane.f32.xlu1 %v4648_v6  ;;  %v4461_v28 = vpop.xlane.xlu1 %4460  ;;  %v4483_v44 = vsel %vm459_vm0, %v8755_v60, 0.0 }
 0x6fc   : > { %v4553_v41 = vmul.f32 %v4461_v28, %v9681_v15  ;;  %v3538_v28 = vpop.f32.mrf.mxu3 }
 0x6fd   : > { %v4370_v45 = vmul.f32 %v4338_v32, %v3538_v28 }
 0x6fe   : > { %v8723_v27 = vsub.f32 %v8630_v55, %v4553_v41 }
 0x6ff   : > { %v8767_v7 = vadd.f32 %v4402_v8, %v4370_v45 }
 0x700   : > { %v4617_v40 = vmul.f32 %v8723_v27, %v8723_v27 }
 0x701   : > { %v4486_v49 = vsel %vm459_vm0, %v8767_v7, 0.0 }
 0x702   : > { %v4651_v62 = vsel %vm459_vm0, %v4617_v40, 0.0 }
 0x703   : > { %4652 = vadd.xlane.f32.xlu0 %v4651_v62 }
 0x704   : > { %v3541_v52 = vpop.f32.mrf.mxu3 }
 0x70b   : > { %4493 = vadd.xlane.f32.xlu0 %v4492_v18  ;;  %v4371_v18 = vmul.f32 %v4339_v34, %v3541_v52  ;;  %v4406_v52 = vld [vmem:[%s6712_s11 + $0x70] sm:$0xff] }
 0x713   : > { %v4004_v20 = vpop.permute.xlu1 %4003  ;;  %4496 = vadd.xlane.f32.xlu0 %v4495_v5 }
 0x714   : > { %v4051_v13 = vmul.f32 %v4004_v20, %v8389_v53  ;;  %v4052_v0 = vmul.f32 %v4004_v20, %v9680_v36  ;;  %v4403_v20 = vld [vmem:[%s6712_s11 + $0x58] sm:$0xff] }
 0x716   : > { %5922 = vmatmul.msk.f32.gmra.mxu2 %vm459_vm0, %v4051_v13  ;;  %v4210_v13 = vpop.f32.mrf.mxu2 }
 0x71c   : > { %v4464_v12 = vpop.xlane.xlu2 %4463 }
 0x71d   : > { %v4554_v50 = vmul.f32 %v4464_v12, %v9681_v15 }
 0x71e   : > { %5923 = vmatmul.msk.f32.gmra.mxu2 %vm459_vm0, %v4052_v0  ;;  %v8779_v0 = vadd.f32 %v4403_v20, %v4371_v18 }
 0x71f   : > { %v8744_v37 = vsub.f32 %v8654_v31, %v4554_v50  ;;  %v4278_v50 = vadd.f32 1e-06, %v4210_v13 }
 0x721   : > { %v4618_v53 = vmul.f32 %v8744_v37, %v8744_v37  ;;  %6286 = vrcp.f32 %v4278_v50 }
 0x723   : > { %v4654_v56 = vsel %vm459_vm0, %v4618_v53, 0.0  ;;  %v4489_v53 = vsel %vm459_vm0, %v8779_v0, 0.0 }
 0x724   : > { %v4467_v36 = vpop.xlane.xlu0 %4466  ;;  %4655 = vadd.xlane.f32.xlu2 %v4654_v56  ;;  %v4213_v56 = vpop.f32.mrf.mxu2 }
 0x725   : > { %v4555_v1 = vmul.f32 %v4467_v36, %v9681_v15  ;;  %v4279_v39 = vadd.f32 1e-06, %v4213_v56 }
 0x727   : > { %v8753_v6 = vsub.f32 %v8663_v25, %v4555_v1  ;;  %v6287_v32 = vpop.eup %6286  ;;  %6288 = vrcp.f32 %v4279_v39 }
 0x728   : > { %v4342_v45 = vmul.f32 16.0, %v6287_v32 }
 0x729   : > { %v4619_v19 = vmul.f32 %v8753_v6, %v8753_v6 }
 0x72a   : > { %v4374_v8 = vmul.f32 %v4342_v45, %v8575_v59 }
 0x72b   : > { %v4657_v41 = vsel %vm459_vm0, %v4619_v19, 0.0 }
 0x72c   : > { %v4470_v40 = vpop.xlane.xlu0 %4469  ;;  %4658 = vadd.xlane.f32.xlu1 %v4657_v41  ;;  %4484 = vadd.xlane.f32.xlu2 %v4483_v44 }
 0x72d   : > { %v4556_v62 = vmul.f32 %v4470_v40, %v9681_v15  ;;  %v6289_v34 = vpop.eup %6288 }
 0x72f   : > { %v8765_v63 = vsub.f32 %v8672_v48, %v4556_v62 }
 0x731   : > { %v4620_v26 = vmul.f32 %v8765_v63, %v8765_v63 }
 0x733   : > { %v4660_v2 = vsel %vm459_vm0, %v4620_v26, 0.0 }
 0x734   : > { %v4473_v5 = vpop.xlane.xlu0 %4472  ;;  %4661 = vadd.xlane.f32.xlu1 %v4660_v2  ;;  %4487 = vadd.xlane.f32.xlu2 %v4486_v49  ;;  %v4343_v2 = vmul.f32 16.0, %v6289_v34 }
 0x735   : > { %v4557_v21 = vmul.f32 %v4473_v5, %v9681_v15 }
 0x736   : > { %v4375_v20 = vmul.f32 %v4343_v2, %v8583_v46  ;;  %v5162_v46 = vld [vmem:[%s9572_s6 + $0x10] sm:$0xff] }
 0x737   : > { %v8777_v54 = vsub.f32 %v8684_v14, %v4557_v21 }
 0x739   : > { %v4621_v12 = vmul.f32 %v8777_v54, %v8777_v54 }
 0x73b   : > { %v4663_v35 = vsel %vm459_vm0, %v4621_v12, 0.0  ;;  %v4407_v12 = vld [vmem:[%s6712_s11 + $0x78] sm:$0xff] }
 0x73c   : > { %v4476_v33 = vpop.xlane.xlu2 %4475  ;;  %4664 = vadd.xlane.f32.xlu1 %v4663_v35  ;;  %4490 = vadd.xlane.f32.xlu2 %v4489_v53  ;;  %v8819_v50 = vadd.f32 %v4407_v12, %v4375_v20  ;;  %v5163_v35 = vld [vmem:[%s9572_s6 + $0x18] sm:$0xff]  ;;  %v5161_v53 = vld [vmem:[%s9572_s6 + $0x8] sm:$0xff] }
 0x73d   : > { %v4558_v23 = vmul.f32 %v4476_v33, %v9681_v15  ;;  %5276 = vmatpush.msra.mxu1 %v5163_v35  ;;  %5982 = vmatpush.msra.mxu3 %v5163_v35 }
 0x73f   : > { %v8788_v16 = vsub.f32 %v8692_v42, %v4558_v23  ;;  %5277 = vmatpush.msra.mxu1 %v5162_v46  ;;  %5983 = vmatpush.msra.mxu3 %v5162_v46  ;;  %v5160_v23 = vld [vmem:[%s9572_s6] sm:$0xff] }
 0x741   : > { %v4622_v36 = vmul.f32 %v8788_v16, %v8788_v16  ;;  %5278 = vmatpush.msra.mxu1 %v5161_v53  ;;  %5984 = vmatpush.msra.mxu3 %v5161_v53 }
 0x743   : > { %v4666_v1 = vsel %vm459_vm0, %v4622_v36, 0.0  ;;  %5279 = vmatpush.msra.mxu1 %v5160_v23  ;;  %5985 = vmatpush.msra.mxu3 %v5160_v23 }
 0x744   : > { %v4479_v28 = vpop.xlane.xlu2 %4478  ;;  %4667 = vadd.xlane.f32.xlu2 %v4666_v1 }
 0x745   : > { %v4559_v19 = vmul.f32 %v4479_v28, %v9681_v15 }
 0x747   : > { %v8795_v41 = vsub.f32 %v8699_v24, %v4559_v19  ;;  %v4006_v44 = vpop.permute.xlu0 %4005 }
 0x748   : > { %v4053_v9 = vmul.f32 %v4006_v44, %v8089_v29  ;;  %v8808_v29 = vadd.f32 %v4406_v52, %v4374_v8  ;;  %v4054_v5 = vmul.f32 %v4006_v44, %v8148_v30  ;;  %v4501_v30 = vsel %vm459_vm0, %v8819_v50, 0.0  ;;  %v4216_v8 = vpop.f32.mrf.mxu2 }
 0x749   : > { %v4623_v40 = vmul.f32 %v8795_v41, %v8795_v41  ;;  %v4280_v12 = vadd.f32 1e-06, %v4216_v8 }
 0x74a   : > { %5924 = vmatmul.msk.f32.gmra.mxu2 %vm459_vm0, %v4053_v9  ;;  %v4498_v21 = vsel %vm459_vm0, %v8808_v29, 0.0 }
 0x74b   : > { %v4669_v62 = vsel %vm459_vm0, %v4623_v40, 0.0 }
 0x74c   : > { %4670 = vadd.xlane.f32.xlu1 %v4669_v62  ;;  %v4482_v26 = vpop.xlane.xlu2 %4481 }
 0x74d   : > { %v4560_v18 = vmul.f32 %v4482_v26, %v9681_v15 }
 0x74f   : > { %v8806_v49 = vsub.f32 %v8707_v57, %v4560_v18 }
 0x750   : > { %v4219_v20 = vpop.f32.mrf.mxu2 }
 0x751   : > { %v4624_v59 = vmul.f32 %v8806_v49, %v8806_v49  ;;  %v4281_v53 = vadd.f32 1e-06, %v4219_v20 }
 0x752   : > { %5925 = vmatmul.msk.f32.gmra.mxu2 %vm459_vm0, %v4054_v5 }
 0x753   : > { %v4672_v13 = vsel %vm459_vm0, %v4624_v59, 0.0 }
 0x754   : > { %4673 = vadd.xlane.f32.xlu2 %v4672_v13  ;;  %4499 = vadd.xlane.f32.xlu1 %v4498_v21 }
 0x75c   : > { %4502 = vadd.xlane.f32.xlu2 %v4501_v30  ;;  %v4222_v30 = vpop.f32.mrf.mxu2 }
 0x76e   : > { %v4650_v33 = vpop.xlane.xlu1 %4649 }
 0x76f   : > { %v4744_v56 = vmul.f32 %v4650_v33, %v9681_v15 }
 0x771   : > { %v4776_v36 = vadd.f32 1e-05, %v4744_v56 }
 0x773   : > { %6290 = vrsqrt.f32 %v4776_v36  ;;  %vm4814_vm13 = vweird.f32 %v4776_v36 }
 0x776   : > { %v4653_v39 = vpop.xlane.xlu0 %4652 }
 0x777   : > { %v4745_v1 = vmul.f32 %v4653_v39, %v9681_v15 }
 0x779   : > { %v6291_v32 = vpop.eup %6290  ;;  %v4777_v28 = vadd.f32 1e-05, %v4745_v1 }
 0x77a   : > { %v4809_v19 = vmul.f32 %v6291_v32, %v4776_v36  ;;  %vm4815_vm12 = vweird.f32 %v6291_v32  ;;  %v4225_v36 = vpop.f32.mrf.mxu2 }
 0x77b   : > { %6292 = vrsqrt.f32 %v4777_v28  ;;  %vm4816_vm14 = vmor %vm4814_vm13, %vm4815_vm12  ;;  %vm4824_vm1 = vweird.f32 %v4777_v28  ;;  %v4283_v8 = vadd.f32 1e-06, %v4225_v36 }
 0x77c   : > { %v4810_v45 = vmul.f32 %v6291_v32, %v4809_v19  ;;  %6294 = vrcp.f32 %v4280_v12 }
 0x77e   : > { %v4811_v44 = vmul.f32 0.5, %v4810_v45 }
 0x780   : > { %v4812_v9 = vsub.f32 1.5, %v4811_v44  ;;  %v4282_v44 = vadd.f32 1e-06, %v4222_v30 }
 0x781   : > { %v6293_v40 = vpop.eup %6292 }
 0x782   : > { %v4813_v62 = vmul.f32 %v6291_v32, %v4812_v9  ;;  %v4819_v34 = vmul.f32 %v6293_v40, %v4777_v28  ;;  %vm4825_vm15 = vweird.f32 %v6293_v40  ;;  %v6295_v33 = vpop.eup %6294 }
 0x783   : > { %vm4826_vm2 = vmor %vm4824_vm1, %vm4825_vm15 }
 0x784   : > { %v4817_v26 = vsel %vm4816_vm14, %v6291_v32, %v4813_v62  ;;  %v4820_v52 = vmul.f32 %v6293_v40, %v4819_v34  ;;  %v4344_v32 = vmul.f32 16.0, %v6295_v33 }
 0x785   : > { %v5128_v18 = vmul.f32 %v4817_v26, %v8716_v11  ;;  %v4494_v26 = vpop.xlane.xlu0 %4493 }
 0x786   : > { %v4821_v2 = vmul.f32 0.5, %v4820_v52  ;;  %v4376_v34 = vmul.f32 %v4344_v32, %v8645_v47  ;;  %v4564_v47 = vmul.f32 %v4494_v26, %v9681_v15 }
 0x787   : > { %5926 = vmatmul.msk.f32.vlgmr.msra.gmra.mxu1 %vm459_vm0, %v5128_v18 }
 0x788   : > { %v4822_v5 = vsub.f32 1.5, %v4821_v2 }
 0x78a   : > { %v4823_v59 = vmul.f32 %v6293_v40, %v4822_v5 }
 0x78c   : > { %v4827_v13 = vsel %vm4826_vm2, %v6293_v40, %v4823_v59  ;;  %v4408_v59 = vld [vmem:[%s6712_s11 + $0x80] sm:$0xff] }
 0x78d   : > { %v5129_v21 = vmul.f32 %v4827_v13, %v8723_v27  ;;  %v8863_v33 = vadd.f32 %v4408_v59, %v4376_v34 }
 0x78f   : > { %5927 = vmatmul.msk.f32.gmra.mxu1 %vm459_vm0, %v5129_v21 }
 0x797   : > { %v4656_v35 = vpop.xlane.xlu2 %4655 }
 0x798   : > { %v4746_v46 = vmul.f32 %v4656_v35, %v9681_v15  ;;  %v4228_v35 = vpop.f32.mrf.mxu2 }
 0x799   : > { %v4284_v32 = vadd.f32 1e-06, %v4228_v35 }
 0x79a   : > { %v4778_v11 = vadd.f32 1e-05, %v4746_v46 }
 0x79c   : > { %6296 = vrsqrt.f32 %v4778_v11  ;;  %vm4834_vm4 = vweird.f32 %v4778_v11 }
 0x79d   : > { %6298 = vrcp.f32 %v4281_v53 }
 0x79f   : > { %v4659_v23 = vpop.xlane.xlu1 %4658  ;;  %v4485_v56 = vpop.xlane.xlu2 %4484 }
 0x7a0   : > { %v4747_v39 = vmul.f32 %v4659_v23, %v9681_v15  ;;  %v4561_v27 = vmul.f32 %v4485_v56, %v9681_v15  ;;  %v3646_v23 = vpop.f32.mrf.mxu3 }
 0x7a2   : > { %v6297_v1 = vpop.eup %6296  ;;  %v8844_v28 = vadd.f32 1e-05, %v4747_v39  ;;  %v8847_v19 = vsub.f32 %v8755_v60, %v4561_v27 }
 0x7a3   : > { %v4829_v45 = vmul.f32 %v6297_v1, %v4778_v11  ;;  %v6299_v40 = vpop.eup %6298  ;;  %vm4835_vm3 = vweird.f32 %v6297_v1 }
 0x7a4   : > { %6300 = vrsqrt.f32 %v8844_v28  ;;  %v4625_v9 = vmul.f32 %v8847_v19, %v8847_v19  ;;  %v4345_v20 = vmul.f32 16.0, %v6299_v40  ;;  %vm4836_vm5 = vmor %vm4834_vm4, %vm4835_vm3  ;;  %vm4844_vm7 = vweird.f32 %v8844_v28 }
 0x7a5   : > { %v4830_v62 = vmul.f32 %v6297_v1, %v4829_v45  ;;  %6302 = vrcp.f32 %v4282_v44 }
 0x7a6   : > { %v4675_v52 = vsel %vm459_vm0, %v4625_v9, 0.0  ;;  %6304 = vrcp.f32 %v4283_v8  ;;  %v4377_v39 = vmul.f32 %v4345_v20, %v8650_v38  ;;  %v4409_v9 = vld [vmem:[%s6712_s11 + $0x88] sm:$0xff]  ;;  %v8872_v8 = vsub.f32 %v8729_v51, %v4564_v47 }
 0x7a7   : > { %v4831_v18 = vmul.f32 0.5, %v4830_v62  ;;  %v4662_v2 = vpop.xlane.xlu1 %4661  ;;  %v4488_v5 = vpop.xlane.xlu2 %4487  ;;  %4676 = vadd.xlane.f32.xlu0 %v4675_v52  ;;  %v4504_v62 = vsel %vm459_vm0, %v8863_v33, 0.0 }
 0x7a8   : > { %v4748_v13 = vmul.f32 %v4662_v2, %v9681_v15  ;;  %v4562_v21 = vmul.f32 %v4488_v5, %v9681_v15  ;;  %v4497_v2 = vpop.xlane.xlu0 %4496  ;;  %v8881_v59 = vadd.f32 %v4409_v9, %v4377_v39  ;;  %v4628_v47 = vmul.f32 %v8872_v8, %v8872_v8 }
 0x7a9   : > { %v4832_v12 = vsub.f32 1.5, %v4831_v18 }
 0x7aa   : > { %v6301_v30 = vpop.eup %6300  ;;  %v8858_v46 = vadd.f32 1e-05, %v4748_v13  ;;  %v8861_v53 = vsub.f32 %v8767_v7, %v4562_v21 }
 0x7ab   : > { %v4833_v56 = vmul.f32 %v6297_v1, %v4832_v12  ;;  %v4839_v36 = vmul.f32 %v6301_v30, %v8844_v28  ;;  %v6303_v40 = vpop.eup %6302  ;;  %vm4845_vm6 = vweird.f32 %v6301_v30 }
 0x7ac   : > { %6306 = vrsqrt.f32 %v8858_v46  ;;  %v4626_v27 = vmul.f32 %v8861_v53, %v8861_v53  ;;  %v6305_v34 = vpop.eup %6304  ;;  %v4346_v20 = vmul.f32 16.0, %v6303_v40  ;;  %vm4846_vm8 = vmor %vm4844_vm7, %vm4845_vm6  ;;  %vm4854_vm10 = vweird.f32 %v8858_v46 }
 0x7ad   : > { %v4840_v45 = vmul.f32 %v6301_v30, %v4839_v36  ;;  %v4837_v44 = vsel %vm4836_vm5, %v6297_v1, %v4833_v56  ;;  %6308 = vrcp.f32 %v4284_v32  ;;  %v4347_v21 = vmul.f32 16.0, %v6305_v34  ;;  %v3649_v32 = vpop.f32.mrf.mxu3 }
 0x7ae   : > { %v4678_v11 = vsel %vm459_vm0, %v4626_v27, 0.0  ;;  %v5130_v38 = vmul.f32 %v4837_v44, %v8744_v37  ;;  %v4565_v56 = vmul.f32 %v4497_v2, %v9681_v15  ;;  %v4231_v2 = vpop.f32.mrf.mxu2 }
 0x7af   : > { %v4841_v26 = vmul.f32 0.5, %v4840_v45  ;;  %v4665_v52 = vpop.xlane.xlu1 %4664  ;;  %v4491_v18 = vpop.xlane.xlu2 %4490  ;;  %4679 = vadd.xlane.f32.xlu1 %v4678_v11  ;;  %4505 = vadd.xlane.f32.xlu0 %v4504_v62  ;;  %v4378_v45 = vmul.f32 %v4346_v20, %v3646_v23  ;;  %v4379_v40 = vmul.f32 %v4347_v21, %v3649_v32  ;;  %v4684_v62 = vsel %vm459_vm0, %v4628_v47, 0.0 }
 0x7b0   : > { %v4749_v1 = vmul.f32 %v4665_v52, %v9681_v15  ;;  %v4563_v5 = vmul.f32 %v4491_v18, %v9681_v15  ;;  %5928 = vmatmul.msk.f32.gmra.mxu1 %vm459_vm0, %v5130_v38  ;;  %v8900_v34 = vsub.f32 %v8734_v22, %v4565_v56  ;;  %v4507_v23 = vsel %vm459_vm0, %v8881_v59, 0.0  ;;  %v4410_v18 = vld [vmem:[%s6712_s11 + $0x90] sm:$0xff] }
 0x7b1   : > { %v4842_v13 = vsub.f32 1.5, %v4841_v26  ;;  %v8910_v21 = vadd.f32 %v4410_v18, %v4378_v45 }
 0x7b2   : > { %v6307_v37 = vpop.eup %6306  ;;  %v8883_v12 = vadd.f32 1e-05, %v4749_v1  ;;  %v8886_v35 = vsub.f32 %v8779_v0, %v4563_v5 }
 0x7b3   : > { %v4843_v36 = vmul.f32 %v6301_v30, %v4842_v13  ;;  %v4849_v39 = vmul.f32 %v6307_v37, %v8858_v46  ;;  %v6309_v38 = vpop.eup %6308  ;;  %vm4855_vm9 = vweird.f32 %v6307_v37  ;;  %9682 = vst [vmem:[#allocation18_spill] sm:$0xff] %v8910_v21  ;;  %v4510_v45 = vsel %vm459_vm0, %v8910_v21, 0.0 }
 0x7b4   : > { %6310 = vrsqrt.f32 %v8883_v12  ;;  %v4627_v27 = vmul.f32 %v8886_v35, %v8886_v35  ;;  %v4348_v20 = vmul.f32 16.0, %v6309_v38  ;;  %vm4856_vm11 = vmor %vm4854_vm10, %vm4855_vm9  ;;  %vm4864_vm13 = vweird.f32 %v8883_v12 }
 0x7b5   : > { %v4850_v44 = vmul.f32 %v6307_v37, %v4849_v39  ;;  %v4847_v9 = vsel %vm4846_vm8, %v6301_v30, %v4843_v36  ;;  %v4411_v30 = vld [vmem:[%s6712_s11 + $0x98] sm:$0xff]  ;;  %v4629_v39 = vmul.f32 %v8900_v34, %v8900_v34 }
 0x7b6   : > { %v4681_v11 = vsel %vm459_vm0, %v4627_v27, 0.0  ;;  %v5131_v28 = vmul.f32 %v4847_v9, %v8753_v6  ;;  %v8912_v47 = vadd.f32 %v4411_v30, %v4379_v40  ;;  %v4285_v27 = vadd.f32 1e-06, %v4231_v2  ;;  %v3673_v9 = vpop.f32.mrf.mxu0  ;;  %v4234_v18 = vpop.f32.mrf.mxu2 }
 0x7b7   : > { %v4851_v26 = vmul.f32 0.5, %v4850_v44  ;;  %v4668_v52 = vpop.xlane.xlu2 %4667  ;;  %4682 = vadd.xlane.f32.xlu2 %v4681_v11  ;;  %4685 = vadd.xlane.f32.xlu0 %v4684_v62  ;;  %v4380_v11 = vmul.f32 %v4348_v20, %v3673_v9  ;;  %v4687_v38 = vsel %vm459_vm0, %v4629_v39, 0.0  ;;  %v5423_v20 = vld [vmem:[%s9574_s8 + $0x70] sm:$0xff] }
 0x7b8   : > { %v4750_v1 = vmul.f32 %v4668_v52, %v9681_v15  ;;  %4508 = vadd.xlane.f32.xlu1 %v4507_v23  ;;  %5929 = vmatmul.msk.f32.gmra.mxu1 %vm459_vm0, %v5131_v28  ;;  %9683 = vst [vmem:[#allocation19_spill] sm:$0xff] %v8912_v47  ;;  %v4513_v40 = vsel %vm459_vm0, %v8912_v47, 0.0 }
 0x7b9   : > { %v4852_v6 = vsub.f32 1.5, %v4851_v26 }
 0x7ba   : > { %v6311_v5 = vpop.eup %6310  ;;  %v8908_v13 = vadd.f32 1e-05, %v4750_v1 }
 0x7bb   : > { %v4853_v56 = vmul.f32 %v6307_v37, %v4852_v6  ;;  %v4859_v36 = vmul.f32 %v6311_v5, %v8883_v12  ;;  %vm4865_vm12 = vweird.f32 %v6311_v5  ;;  %v5424_v6 = vld [vmem:[%s9574_s8 + $0x78] sm:$0xff] }
 0x7bc   : > { %6312 = vrsqrt.f32 %v8908_v13  ;;  %vm4866_vm14 = vmor %vm4864_vm13, %vm4865_vm12  ;;  %5429 = vmatpush.msrb.mxu0 %v5424_v6  ;;  %vm4874_vm1 = vweird.f32 %v8908_v13 }
 0x7bd   : > { %v4860_v32 = vmul.f32 %v6311_v5, %v4859_v36  ;;  %v4857_v44 = vsel %vm4856_vm11, %v6307_v37, %v4853_v56  ;;  %v4412_v37 = vld [vmem:[%s6712_s11 + $0xa0] sm:$0xff]  ;;  %6314 = vrcp.f32 %v4285_v27  ;;  %v4286_v56 = vadd.f32 1e-06, %v4234_v18  ;;  %v5422_v27 = vld [vmem:[%s9574_s8 + $0x68] sm:$0xff] }
 0x7be   : > { %v5132_v46 = vmul.f32 %v4857_v44, %v8765_v63  ;;  %v8932_v1 = vadd.f32 %v4412_v37, %v4380_v11  ;;  %5430 = vmatpush.msrb.mxu0 %v5423_v20  ;;  %v5420_v37 = vld [vmem:[%s9574_s8 + $0x58] sm:$0xff]  ;;  %v3676_v6 = vpop.f32.mrf.mxu0 }
 0x7bf   : > { %v4861_v62 = vmul.f32 0.5, %v4860_v32  ;;  %v4671_v28 = vpop.xlane.xlu1 %4670  ;;  %4511 = vadd.xlane.f32.xlu2 %v4510_v45  ;;  %4514 = vadd.xlane.f32.xlu0 %v4513_v40 }
 0x7c0   : > { %v4751_v26 = vmul.f32 %v4671_v28, %v9681_v15  ;;  %4688 = vadd.xlane.f32.xlu1 %v4687_v38  ;;  %5930 = vmatmul.msk.f32.gmra.mxu1 %vm459_vm0, %v5132_v46  ;;  %v4516_v40 = vsel %vm459_vm0, %v8932_v1, 0.0 }
 0x7c1   : > { %v4862_v52 = vsub.f32 1.5, %v4861_v62  ;;  %5431 = vmatpush.msrb.mxu0 %v5422_v27 }
 0x7c2   : > { %v6313_v23 = vpop.eup %6312  ;;  %v8928_v30 = vadd.f32 1e-05, %v4751_v26 }
 0x7c3   : > { %v4863_v63 = vmul.f32 %v6311_v5, %v4862_v52  ;;  %v4869_v2 = vmul.f32 %v6313_v23, %v8908_v13  ;;  %v6315_v32 = vpop.eup %6314  ;;  %vm4875_vm15 = vweird.f32 %v6313_v23 }
 0x7c4   : > { %6316 = vrsqrt.f32 %v8928_v30  ;;  %v4349_v28 = vmul.f32 16.0, %v6315_v32  ;;  %vm4876_vm2 = vmor %vm4874_vm1, %vm4875_vm15  ;;  %vm4884_vm4 = vweird.f32 %v8928_v30 }
 0x7c5   : > { %v4870_v36 = vmul.f32 %v6313_v23, %v4869_v2  ;;  %v4867_v39 = vsel %vm4866_vm14, %v6311_v5, %v4863_v63  ;;  %6318 = vrcp.f32 %v4286_v56  ;;  %v5419_v2 = vld [vmem:[%s9574_s8 + $0x50] sm:$0xff] }
 0x7c6   : > { %v5133_v12 = vmul.f32 %v4867_v39, %v8777_v54  ;;  %v5421_v54 = vld [vmem:[%s9574_s8 + $0x60] sm:$0xff] }
 0x7c7   : > { %v4871_v44 = vmul.f32 0.5, %v4870_v36  ;;  %v4674_v9 = vpop.xlane.xlu2 %4673  ;;  %v4500_v45 = vpop.xlane.xlu1 %4499  ;;  %5432 = vmatpush.msrb.mxu0 %v5421_v54  ;;  %v4381_v36 = vmul.f32 %v4349_v28, %v3676_v6 }
 0x7c8   : > { %v4752_v46 = vmul.f32 %v4674_v9, %v9681_v15  ;;  %v4566_v11 = vmul.f32 %v4500_v45, %v9681_v15  ;;  %4517 = vadd.xlane.f32.xlu1 %v4516_v40  ;;  %5931 = vmatmul.msk.f32.gmra.mxu1 %vm459_vm0, %v5133_v12  ;;  %v5418_v12 = vld [vmem:[%s9574_s8 + $0x48] sm:$0xff] }
 0x7c9   : > { %v4872_v5 = vsub.f32 1.5, %v4871_v44  ;;  %5433 = vmatpush.msrb.mxu0 %v5420_v37  ;;  %v4413_v9 = vld [vmem:[%s6712_s11 + $0xa8] sm:$0xff] }
 0x7ca   : > { %v6317_v62 = vpop.eup %6316  ;;  %v8953_v38 = vadd.f32 1e-05, %v4752_v46  ;;  %v8956_v26 = vsub.f32 %v8808_v29, %v4566_v11  ;;  %v8983_v54 = vadd.f32 %v4413_v9, %v4381_v36 }
 0x7cb   : > { %v4873_v52 = vmul.f32 %v6313_v23, %v4872_v5  ;;  %v4879_v18 = vmul.f32 %v6317_v62, %v8928_v30  ;;  %v6319_v27 = vpop.eup %6318  ;;  %5434 = vmatpush.msrb.mxu0 %v5419_v2  ;;  %vm4885_vm3 = vweird.f32 %v6317_v62  ;;  %v5416_v5 = vld [vmem:[%s9574_s8 + $0x38] sm:$0xff]  ;;  %v5415_v2 = vld [vmem:[%s9574_s8 + $0x30] sm:$0xff] }
 0x7cc   : > { %6320 = vrsqrt.f32 %v8953_v38  ;;  %v4630_v63 = vmul.f32 %v8956_v26, %v8956_v26  ;;  %v4350_v46 = vmul.f32 16.0, %v6319_v27  ;;  %vm4886_vm5 = vmor %vm4884_vm4, %vm4885_vm3  ;;  %vm4894_vm7 = vweird.f32 %v8953_v38  ;;  %v5412_v27 = vld [vmem:[%s9574_s8 + $0x18] sm:$0xff] }
 0x7cd   : > { %v4880_v20 = vmul.f32 %v6317_v62, %v4879_v18  ;;  %v4877_v56 = vsel %vm4876_vm2, %v6313_v23, %v4873_v52  ;;  %v5417_v23 = vld [vmem:[%s9574_s8 + $0x40] sm:$0xff]  ;;  %5435 = vmatpush.msrb.mxu0 %v5418_v12 }
 0x7ce   : > { %v4690_v13 = vsel %vm459_vm0, %v4630_v63, 0.0  ;;  %v5134_v39 = vmul.f32 %v4877_v56, %v8788_v16  ;;  %v4382_v6 = vmul.f32 %v4350_v46, %v8589_v10  ;;  %v4519_v56 = vsel %vm459_vm0, %v8983_v54, 0.0  ;;  %v5413_v10 = vld [vmem:[%s9574_s8 + $0x20] sm:$0xff] }
 0x7cf   : > { %v4881_v32 = vmul.f32 0.5, %v4880_v20  ;;  %v4503_v44 = vpop.xlane.xlu2 %4502  ;;  %4691 = vadd.xlane.f32.xlu2 %v4690_v13  ;;  %5436 = vmatpush.msrb.mxu0 %v5417_v23  ;;  %v4414_v13 = vld [vmem:[%s6712_s11 + $0xb0] sm:$0xff]  ;;  %v5409_v23 = vld [vmem:[%s9574_s8] sm:$0xff] }
 0x7d0   : > { %v4567_v45 = vmul.f32 %v4503_v44, %v9681_v15  ;;  %5932 = vmatmul.msk.f32.gmra.mxu1 %vm459_vm0, %v5134_v39 }
 0x7d1   : > { %v4882_v40 = vsub.f32 1.5, %v4881_v32  ;;  %5437 = vmatpush.msrb.mxu0 %v5416_v5 }
 0x7d2   : > { %v6321_v16 = vpop.eup %6320  ;;  %v8981_v11 = vsub.f32 %v8819_v50, %v4567_v45  ;;  %v5410_v45 = vld [vmem:[%s9574_s8 + $0x8] sm:$0xff] }
 0x7d3   : > { %v4883_v28 = vmul.f32 %v6317_v62, %v4882_v40  ;;  %v4889_v37 = vmul.f32 %v6321_v16, %v8953_v38  ;;  %5438 = vmatpush.msrb.mxu0 %v5415_v2  ;;  %vm4895_vm6 = vweird.f32 %v6321_v16  ;;  %v5411_v38 = vld [vmem:[%s9574_s8 + $0x10] sm:$0xff]  ;;  %v4237_v40 = vpop.f32.mrf.mxu2 }
 0x7d4   : > { %v4631_v52 = vmul.f32 %v8981_v11, %v8981_v11  ;;  %vm4896_vm8 = vmor %vm4894_vm7, %vm4895_vm6  ;;  %v4287_v2 = vadd.f32 1e-06, %v4237_v40 }
 0x7d5   : > { %v4887_v18 = vsel %vm4886_vm5, %v6317_v62, %v4883_v28  ;;  %v4890_v63 = vmul.f32 %v6321_v16, %v4889_v37  ;;  %v5414_v62 = vld [vmem:[%s9574_s8 + $0x28] sm:$0xff] }
 0x7d6   : > { %v5135_v20 = vmul.f32 %v4887_v18, %v8795_v41  ;;  %v4693_v30 = vsel %vm459_vm0, %v4631_v52, 0.0  ;;  %v9008_v41 = vadd.f32 %v4414_v13, %v4382_v6  ;;  %5439 = vmatpush.msrb.mxu0 %v5414_v62  ;;  %6322 = vrcp.f32 %v4287_v2 }
 0x7d7   : > { %v4891_v36 = vmul.f32 0.5, %v4890_v63  ;;  %4694 = vadd.xlane.f32.xlu0 %v4693_v30  ;;  %4520 = vadd.xlane.f32.xlu2 %v4519_v56 }
 0x7d8   : > { %5933 = vmatmul.msk.f32.vlgmr.msra.gmra.mxu3 %vm459_vm0, %v5135_v20  ;;  %5440 = vmatpush.msrb.mxu0 %v5413_v10  ;;  %v4522_v44 = vsel %vm459_vm0, %v9008_v41, 0.0 }
 0x7d9   : > { %v4892_v39 = vsub.f32 1.5, %v4891_v36 }
 0x7da   : > { %5441 = vmatpush.msrb.mxu0 %v5412_v27 }
 0x7db   : > { %v4893_v12 = vmul.f32 %v6321_v16, %v4892_v39  ;;  %v4240_v37 = vpop.f32.mrf.mxu2 }
 0x7dc   : > { %5442 = vmatpush.msrb.mxu0 %v5411_v38  ;;  %v4288_v56 = vadd.f32 1e-06, %v4240_v37  ;;  %v6323_v13 = vpop.eup %6322 }
 0x7dd   : > { %v4897_v32 = vsel %vm4896_vm8, %v6321_v16, %v4893_v12 }
 0x7de   : > { %v5136_v9 = vmul.f32 %v4897_v32, %v8806_v49  ;;  %5443 = vmatpush.msrb.mxu0 %v5410_v45  ;;  %v9030_v49 = vld [vmem:[%s9573_s7] ss:$0 sm:$0xff]  ;;  %v4351_v32 = vmul.f32 16.0, %v6323_v13 }
 0x7df   : > { %4523 = vadd.xlane.f32.xlu0 %v4522_v44 }
 0x7e0   : > { %5934 = vmatmul.msk.f32.gmra.mxu3 %vm459_vm0, %v5136_v9  ;;  %5444 = vmatpush.msrb.mxu0 %v5409_v23 }
 0x7e3   : > { %v4243_v63 = vpop.f32.mrf.mxu2 }
 0x7e4   : > { %v4289_v44 = vadd.f32 1e-06, %v4243_v63  ;;  %v4415_v63 = vld [vmem:[%s6712_s11 + $0xb8] sm:$0xff] }
 0x7eb   : > { %v4246_v36 = vpop.f32.mrf.mxu2 }
 0x7ec   : > { %v4290_v23 = vadd.f32 1e-06, %v4246_v36 }
 0x804   : > { %v5281_v16 = vpop.f32.mrf.mxu1 }
 0x805   : > { %v5282_v46 = vadd.f32 %v9030_v49, %v5281_v16 }
 0x807   : > { %v5377_v5 = vmax.f32 %v5282_v46, 0.0  ;;  %v4383_v46 = vmul.f32 %v4351_v32, %v8593_v43 }
 0x809   : > { %5445 = vmatmul.f32.vlgmr.msrb.gmra.mxu0 %v5377_v5  ;;  %v9057_v32 = vadd.f32 %v4415_v63, %v4383_v46 }
 0x80b   : > { %v4525_v63 = vsel %vm459_vm0, %v9057_v32, 0.0 }
 0x80c   : > { %v5284_v28 = vpop.f32.mrf.mxu1 }
 0x80d   : > { %v5285_v52 = vadd.f32 %v9030_v49, %v5284_v28 }
 0x80f   : > { %v5378_v18 = vmax.f32 %v5285_v52, 0.0 }
 0x811   : > { %5448 = vmatmul.f32.gmra.mxu0 %v5378_v18 }
 0x81a   : > { %v4677_v6 = vpop.xlane.xlu0 %4676 }
 0x81b   : > { %v4753_v20 = vmul.f32 %v4677_v6, %v9681_v15 }
 0x81d   : > { %v4785_v30 = vadd.f32 1e-05, %v4753_v20 }
 0x81f   : > { %6324 = vrsqrt.f32 %v4785_v30  ;;  %vm4904_vm10 = vweird.f32 %v4785_v30 }
 0x820   : > { %6326 = vrcp.f32 %v4288_v56  ;;  %v4249_v56 = vpop.f32.mrf.mxu2 }
 0x822   : > { %v4680_v62 = vpop.xlane.xlu1 %4679  ;;  %v4506_v39 = vpop.xlane.xlu0 %4505 }
 0x823   : > { %v4754_v10 = vmul.f32 %v4680_v62, %v9681_v15  ;;  %v4568_v12 = vmul.f32 %v4506_v39, %v9681_v15 }
 0x825   : > { %v6325_v27 = vpop.eup %6324  ;;  %v9037_v9 = vadd.f32 1e-05, %v4754_v10  ;;  %v9040_v38 = vsub.f32 %v8863_v33, %v4568_v12 }
 0x826   : > { %v4899_v45 = vmul.f32 %v6325_v27, %v4785_v30  ;;  %v6327_v28 = vpop.eup %6326  ;;  %vm4905_vm9 = vweird.f32 %v6325_v27 }
 0x827   : > { %6328 = vrsqrt.f32 %v9037_v9  ;;  %v4632_v40 = vmul.f32 %v9040_v38, %v9040_v38  ;;  %v4352_v62 = vmul.f32 16.0, %v6327_v28  ;;  %vm4906_vm11 = vmor %vm4904_vm10, %vm4905_vm9  ;;  %vm4914_vm13 = vweird.f32 %v9037_v9 }
 0x828   : > { %v4900_v16 = vmul.f32 %v6325_v27, %v4899_v45  ;;  %6330 = vrcp.f32 %v4289_v44 }
 0x829   : > { %v4696_v5 = vsel %vm459_vm0, %v4632_v40, 0.0  ;;  %6332 = vrcp.f32 %v4290_v23 }
 0x82a   : > { %v4901_v37 = vmul.f32 0.5, %v4900_v16  ;;  %v4683_v52 = vpop.xlane.xlu2 %4682  ;;  %v4686_v18 = vpop.xlane.xlu0 %4685  ;;  %4697 = vadd.xlane.f32.xlu1 %v4696_v5  ;;  %v4291_v16 = vadd.f32 1e-06, %v4249_v56 }
 0x82b   : > { %v4755_v2 = vmul.f32 %v4683_v52, %v9681_v15  ;;  %v4756_v6 = vmul.f32 %v4686_v18, %v9681_v15  ;;  %v4509_v20 = vpop.xlane.xlu1 %4508  ;;  %v4384_v52 = vmul.f32 %v4352_v62, %v8659_v58 }
 0x82c   : > { %v4902_v36 = vsub.f32 1.5, %v4901_v37  ;;  %v4569_v43 = vmul.f32 %v4509_v20, %v9681_v15 }
 0x82d   : > { %v9051_v13 = vpop.eup %6328  ;;  %v9053_v39 = vadd.f32 1e-05, %v4755_v2  ;;  %v9055_v10 = vadd.f32 1e-05, %v4756_v6  ;;  %v5287_v12 = vpop.f32.mrf.mxu1 }
 0x82e   : > { %v4903_v44 = vmul.f32 %v6325_v27, %v4902_v36  ;;  %v4909_v45 = vmul.f32 %v9051_v13, %v9037_v9  ;;  %v9062_v23 = vsub.f32 %v8881_v59, %v4569_v43  ;;  %v6331_v40 = vpop.eup %6330  ;;  %v5288_v5 = vadd.f32 %v9030_v49, %v5287_v12  ;;  %v4416_v12 = vld [vmem:[%s6712_s11 + $0xc0] sm:$0xff] }
 0x82f   : > { %6334 = vrsqrt.f32 %v9053_v39  ;;  %v6333_v37 = vpop.eup %6332  ;;  %v4353_v6 = vmul.f32 16.0, %v6331_v40  ;;  %vm4915_vm12 = vweird.f32 %v9051_v13  ;;  %vm4924_vm1 = vweird.f32 %v9053_v39 }
 0x830   : > { %v4910_v28 = vmul.f32 %v9051_v13, %v4909_v45  ;;  %6336 = vrsqrt.f32 %v9055_v10  ;;  %v4633_v30 = vmul.f32 %v9062_v23, %v9062_v23  ;;  %v4907_v46 = vsel %vm4906_vm11, %v6325_v27, %v4903_v44  ;;  %vm4916_vm14 = vmor %vm4914_vm13, %vm4915_vm12 }
 0x831   : > { %v5379_v18 = vmax.f32 %v5288_v5, 0.0  ;;  %v5137_v2 = vmul.f32 %v4907_v46, %v8847_v19  ;;  %v4354_v58 = vmul.f32 16.0, %v6333_v37  ;;  %6338 = vrcp.f32 %v4291_v16 }
 0x832   : > { %v4911_v20 = vmul.f32 0.5, %v4910_v28  ;;  %v4512_v56 = vpop.xlane.xlu2 %4511  ;;  %v4515_v36 = vpop.xlane.xlu0 %4514  ;;  %v4699_v43 = vsel %vm459_vm0, %v4633_v30, 0.0  ;;  %4526 = vadd.xlane.f32.xlu1 %v4525_v63  ;;  %v9089_v46 = vadd.f32 %v4416_v12, %v4384_v52  ;;  %v4385_v16 = vmul.f32 %v4353_v6, %v8668_v61 }
 0x833   : > { %v4689_v45 = vpop.xlane.xlu1 %4688  ;;  %v4570_v27 = vmul.f32 %v4512_v56, %v9681_v15  ;;  %v4571_v44 = vmul.f32 %v4515_v36, %v9681_v15  ;;  %4700 = vadd.xlane.f32.xlu2 %v4699_v43  ;;  %5451 = vmatmul.f32.gmra.mxu0 %v5379_v18  ;;  %vm4934_vm4 = vweird.f32 %v9055_v10 }
 0x834   : > { %v4912_v62 = vsub.f32 1.5, %v4911_v20  ;;  %v4757_v19 = vmul.f32 %v4689_v45, %v9681_v15  ;;  %5935 = vmatmul.msk.f32.gmra.mxu3 %vm459_vm0, %v5137_v2  ;;  %v3754_v20 = vpop.f32.mrf.mxu3 }
 0x835   : > { %v9080_v40 = vpop.eup %6334  ;;  %v9084_v5 = vsub.f32 %v8910_v21, %v4570_v27  ;;  %v9087_v28 = vsub.f32 %v8912_v47, %v4571_v44  ;;  %v5290_v30 = vpop.f32.mrf.mxu1  ;;  %v4386_v61 = vmul.f32 %v4354_v58, %v3754_v20  ;;  %v4418_v20 = vld [vmem:[%s6712_s11 + $0xd0] sm:$0xff] }
 0x836   : > { %v9091_v37 = vpop.eup %6336  ;;  %v4913_v18 = vmul.f32 %v9051_v13, %v4912_v62  ;;  %v4919_v63 = vmul.f32 %v9080_v40, %v9053_v39  ;;  %v9097_v2 = vadd.f32 1e-05, %v4757_v19  ;;  %v5291_v52 = vadd.f32 %v9030_v49, %v5290_v30  ;;  %v4252_v47 = vpop.f32.mrf.mxu2 }
 0x837   : > { %v4929_v56 = vmul.f32 %v9091_v37, %v9055_v10  ;;  %v4634_v36 = vmul.f32 %v9084_v5, %v9084_v5  ;;  %v4635_v9 = vmul.f32 %v9087_v28, %v9087_v28  ;;  %v6339_v44 = vpop.eup %6338  ;;  %v4528_v19 = vsel %vm459_vm0, %v9089_v46, 0.0 }
 0x838   : > { %v4920_v6 = vmul.f32 %v9080_v40, %v4919_v63  ;;  %6340 = vrsqrt.f32 %v9097_v2  ;;  %v5380_v12 = vmax.f32 %v5291_v52, 0.0  ;;  %v4917_v27 = vsel %vm4916_vm14, %v9051_v13, %v4913_v18  ;;  %v4417_v63 = vld [vmem:[%s6712_s11 + $0xc8] sm:$0xff] }
 0x839   : > { %v4930_v43 = vmul.f32 %v9091_v37, %v4929_v56  ;;  %v4702_v45 = vsel %vm459_vm0, %v4634_v36, 0.0  ;;  %v4705_v62 = vsel %vm459_vm0, %v4635_v9, 0.0  ;;  %v5138_v30 = vmul.f32 %v4917_v27, %v8861_v53 }
 0x83a   : > { %v4921_v58 = vmul.f32 0.5, %v4920_v6  ;;  %4703 = vadd.xlane.f32.xlu0 %v4702_v45  ;;  %4706 = vadd.xlane.f32.xlu1 %v4705_v62  ;;  %vm4925_vm15 = vweird.f32 %v9080_v40  ;;  %v4355_v18 = vmul.f32 16.0, %v6339_v44  ;;  %v9123_v6 = vadd.f32 %v4417_v63, %v4385_v16 }
 0x83b   : > { %v4931_v21 = vmul.f32 0.5, %v4930_v43  ;;  %v4518_v56 = vpop.xlane.xlu1 %4517  ;;  %4529 = vadd.xlane.f32.xlu2 %v4528_v19  ;;  %5454 = vmatmul.f32.gmra.mxu0 %v5380_v12  ;;  %v9125_v53 = vadd.f32 %v4418_v20, %v4386_v61  ;;  %vm4926_vm2 = vmor %vm4924_vm1, %vm4925_vm15  ;;  %v4292_v16 = vadd.f32 1e-06, %v4252_v47  ;;  %vm4935_vm3 = vweird.f32 %v9091_v37 }
 0x83c   : > { %v4922_v52 = vsub.f32 1.5, %v4921_v58  ;;  %v4572_v13 = vmul.f32 %v4518_v56, %v9681_v15  ;;  %5936 = vmatmul.msk.f32.gmra.mxu3 %vm459_vm0, %v5138_v30  ;;  %v3757_v19 = vpop.f32.mrf.mxu3  ;;  %v4531_v30 = vsel %vm459_vm0, %v9123_v6, 0.0  ;;  %vm4936_vm5 = vmor %vm4934_vm4, %vm4935_vm3  ;;  %vm4944_vm7 = vweird.f32 %v9097_v2 }
 0x83d   : > { %v5293_v36 = vpop.f32.mrf.mxu1  ;;  %v4932_v12 = vsub.f32 1.5, %v4931_v21  ;;  %v4387_v21 = vmul.f32 %v4355_v18, %v3757_v19  ;;  %v4534_v47 = vsel %vm459_vm0, %v9125_v53, 0.0  ;;  %6342 = vrcp.f32 %v4292_v16 }
 0x83e   : > { %v9127_v9 = vpop.eup %6340  ;;  %v4923_v43 = vmul.f32 %v9080_v40, %v4922_v52  ;;  %v9132_v45 = vsub.f32 %v8932_v1, %v4572_v13  ;;  %v5294_v27 = vadd.f32 %v9030_v49, %v5293_v36  ;;  %v4419_v36 = vld [vmem:[%s6712_s11 + $0xd8] sm:$0xff] }
 0x83f   : > { %v4939_v44 = vmul.f32 %v9127_v9, %v9097_v2  ;;  %v4933_v52 = vmul.f32 %v9091_v37, %v4932_v12  ;;  %v9154_v12 = vadd.f32 %v4419_v36, %v4387_v21  ;;  %vm4945_vm6 = vweird.f32 %v9127_v9 }
 0x840   : > { %v5381_v58 = vmax.f32 %v5294_v27, 0.0  ;;  %v4636_v61 = vmul.f32 %v9132_v45, %v9132_v45  ;;  %v4927_v62 = vsel %vm4926_vm2, %v9080_v40, %v4923_v43  ;;  %vm4946_vm8 = vmor %vm4944_vm7, %vm4945_vm6 }
 0x841   : > { %v4940_v39 = vmul.f32 %v9127_v9, %v4939_v44  ;;  %v5139_v63 = vmul.f32 %v4927_v62, %v8886_v35  ;;  %v4255_v35 = vpop.f32.mrf.mxu2 }
 0x842   : > { %v4692_v20 = vpop.xlane.xlu2 %4691  ;;  %v4708_v56 = vsel %vm459_vm0, %v4636_v61, 0.0  ;;  %4532 = vadd.xlane.f32.xlu0 %v4531_v30  ;;  %4535 = vadd.xlane.f32.xlu1 %v4534_v47  ;;  %v4937_v61 = vsel %vm4936_vm5, %v9091_v37, %v4933_v52  ;;  %v4293_v62 = vadd.f32 1e-06, %v4255_v35  ;;  %v4537_v30 = vsel %vm459_vm0, %v9154_v12, 0.0 }
 0x843   : > { %v4941_v40 = vmul.f32 0.5, %v4940_v39  ;;  %v4758_v13 = vmul.f32 %v4692_v20, %v9681_v15  ;;  %4709 = vadd.xlane.f32.xlu2 %v4708_v56  ;;  %5457 = vmatmul.f32.gmra.mxu0 %v5381_v58  ;;  %v6343_v16 = vpop.eup %6342  ;;  %v5140_v10 = vmul.f32 %v4937_v61, %v8872_v8 }
 0x844   : > { %5937 = vmatmul.msk.f32.gmra.mxu3 %vm459_vm0, %v5139_v63  ;;  %v4356_v56 = vmul.f32 16.0, %v6343_v16 }
 0x845   : > { %v4790_v18 = vadd.f32 1e-05, %v4758_v13  ;;  %v5296_v43 = vpop.f32.mrf.mxu1  ;;  %v4942_v44 = vsub.f32 1.5, %v4941_v40  ;;  %v3781_v40 = vpop.f32.mrf.mxu0 }
 0x846   : > { %v5297_v27 = vadd.f32 %v9030_v49, %v5296_v43  ;;  %v4388_v2 = vmul.f32 %v4356_v56, %v3781_v40 }
 0x847   : > { %6344 = vrsqrt.f32 %v4790_v18  ;;  %v4943_v63 = vmul.f32 %v9127_v9, %v4942_v44  ;;  %vm4954_vm10 = vweird.f32 %v4790_v18 }
 0x848   : > { %v5382_v19 = vmax.f32 %v5297_v27, 0.0  ;;  %6346 = vrcp.f32 %v4293_v62 }
 0x849   : > { %v4947_v43 = vsel %vm4946_vm8, %v9127_v9, %v4943_v63 }
 0x84a   : > { %v4695_v58 = vpop.xlane.xlu0 %4694  ;;  %v4521_v39 = vpop.xlane.xlu2 %4520 }
 0x84b   : > { %v4759_v21 = vmul.f32 %v4695_v58, %v9681_v15  ;;  %v4573_v20 = vmul.f32 %v4521_v39, %v9681_v15  ;;  %4538 = vadd.xlane.f32.xlu2 %v4537_v30  ;;  %5460 = vmatmul.f32.gmra.mxu0 %v5382_v19  ;;  %v5141_v58 = vmul.f32 %v4947_v43, %v8900_v34  ;;  %v4420_v39 = vld [vmem:[%s6712_s11 + $0xe0] sm:$0xff] }
 0x84c   : > { %5938 = vmatmul.msk.f32.gmra.mxu3 %vm459_vm0, %v5140_v10 }
 0x84d   : > { %v6345_v37 = vpop.eup %6344  ;;  %v4791_v47 = vadd.f32 1e-05, %v4759_v21  ;;  %v9167_v8 = vsub.f32 %v8983_v54, %v4573_v20  ;;  %v5299_v52 = vpop.f32.mrf.mxu1  ;;  %v9181_v20 = vadd.f32 %v4420_v39, %v4388_v2 }
 0x84e   : > { %v4949_v13 = vmul.f32 %v6345_v37, %v4790_v18  ;;  %v5300_v36 = vadd.f32 %v9030_v49, %v5299_v52  ;;  %v6347_v62 = vpop.eup %6346  ;;  %vm4955_vm9 = vweird.f32 %v6345_v37  ;;  %v3784_v40 = vpop.f32.mrf.mxu0  ;;  %v4421_v18 = vld [vmem:[%s6712_s11 + $0xe8] sm:$0xff] }
 0x84f   : > { %6348 = vrsqrt.f32 %v4791_v47  ;;  %v4637_v35 = vmul.f32 %v9167_v8, %v9167_v8  ;;  %v4357_v63 = vmul.f32 16.0, %v6347_v62  ;;  %vm4956_vm11 = vmor %vm4954_vm10, %vm4955_vm9  ;;  %vm4964_vm13 = vweird.f32 %v4791_v47 }
 0x850   : > { %v4950_v27 = vmul.f32 %v6345_v37, %v4949_v13  ;;  %v5383_v44 = vmax.f32 %v5300_v36, 0.0 }
 0x851   : > { %v4711_v61 = vsel %vm459_vm0, %v4637_v35, 0.0  ;;  %v4389_v35 = vmul.f32 %v4357_v63, %v3784_v40 }
 0x852   : > { %v4951_v19 = vmul.f32 0.5, %v4950_v27  ;;  %v4524_v16 = vpop.xlane.xlu0 %4523  ;;  %4712 = vadd.xlane.f32.xlu0 %v4711_v61  ;;  %v4540_v27 = vsel %vm459_vm0, %v9181_v20, 0.0 }
 0x853   : > { %v4574_v30 = vmul.f32 %v4524_v16, %v9681_v15  ;;  %5463 = vmatmul.f32.gmra.mxu0 %v5383_v44 }
 0x854   : > { %v4952_v10 = vsub.f32 1.5, %v4951_v19  ;;  %5939 = vmatmul.msk.f32.gmra.mxu3 %vm459_vm0, %v5141_v58 }
 0x855   : > { %v6349_v9 = vpop.eup %6348  ;;  %v9179_v21 = vsub.f32 %v9008_v41, %v4574_v30 }
 0x856   : > { %v4953_v56 = vmul.f32 %v6345_v37, %v4952_v10  ;;  %v4959_v52 = vmul.f32 %v6349_v9, %v4791_v47  ;;  %vm4965_vm12 = vweird.f32 %v6349_v9  ;;  %v9202_v47 = vld [vmem:[%s9575_s9] ss:$0 sm:$0xff] }
 0x857   : > { %v4638_v34 = vmul.f32 %v9179_v21, %v9179_v21  ;;  %vm4966_vm14 = vmor %vm4964_vm13, %vm4965_vm12 }
 0x858   : > { %v4960_v13 = vmul.f32 %v6349_v9, %v4959_v52  ;;  %v4957_v36 = vsel %vm4956_vm11, %v6345_v37, %v4953_v56  ;;  %v9192_v37 = vadd.f32 %v4421_v18, %v4389_v35 }
 0x859   : > { %v4714_v43 = vsel %vm459_vm0, %v4638_v34, 0.0  ;;  %v5142_v44 = vmul.f32 %v4957_v36, %v8956_v26  ;;  %v4258_v36 = vpop.f32.mrf.mxu2 }
 0x85a   : > { %v4961_v2 = vmul.f32 0.5, %v4960_v13  ;;  %4715 = vadd.xlane.f32.xlu1 %v4714_v43  ;;  %4541 = vadd.xlane.f32.xlu0 %v4540_v27  ;;  %v4543_v39 = vsel %vm459_vm0, %v9192_v37, 0.0  ;;  %v4294_v35 = vadd.f32 1e-06, %v4258_v36 }
 0x85b   : > { %v5302_v61 = vpop.f32.mrf.mxu3 }
 0x85c   : > { %v4962_v62 = vsub.f32 1.5, %v4961_v2  ;;  %v5303_v19 = vadd.f32 %v9030_v49, %v5302_v61  ;;  %5940 = vmatmul.msk.f32.gmra.mxu3 %vm459_vm0, %v5142_v44  ;;  %6350 = vrcp.f32 %v4294_v35 }
 0x85e   : > { %v4963_v16 = vmul.f32 %v6349_v9, %v4962_v62  ;;  %v5384_v58 = vmax.f32 %v5303_v19, 0.0 }
 0x860   : > { %5466 = vmatmul.f32.gmra.mxu0 %v5384_v58  ;;  %v4967_v26 = vsel %vm4966_vm14, %v6349_v9, %v4963_v16 }
 0x861   : > { %v5143_v30 = vmul.f32 %v4967_v26, %v8981_v11 }
 0x862   : > { %4544 = vadd.xlane.f32.xlu1 %v4543_v39  ;;  %v6351_v18 = vpop.eup %6350 }
 0x863   : > { %v5305_v10 = vpop.f32.mrf.mxu3  ;;  %v4358_v58 = vmul.f32 16.0, %v6351_v18 }
 0x864   : > { %v5306_v63 = vadd.f32 %v9030_v49, %v5305_v10  ;;  %5941 = vmatmul.msk.f32.gmra.mxu3 %vm459_vm0, %v5143_v30 }
 0x866   : > { %v5385_v56 = vmax.f32 %v5306_v63, 0.0 }
 0x868   : > { %5469 = vmatmul.f32.gmra.mxu0 %v5385_v56  ;;  %v4390_v56 = vmul.f32 %v4358_v58, %v8597_v3 }
 0x886   : > { %v5446_v52 = vpop.f32.mrf.mxu0 }
 0x887   : > { %v5447_v9 = vadd.f32 %v9202_v47, %v5446_v52 }
 0x889   : > { %v5542_v34 = vadd.f32 %v5447_v9, %v8619_v4  ;;  %v4261_v4 = vpop.f32.mrf.mxu2 }
 0x88a   : > { %v4295_v2 = vadd.f32 1e-06, %v4261_v4 }
 0x88b   : > { %5574 = vst.msk [vmem:[%s9207_s30] sm:$0xff] %vm459_vm0, %v5542_v34 }
 0x88e   : > { %v5449_v11 = vpop.f32.mrf.mxu0 }
 0x88f   : > { %v5450_v40 = vadd.f32 %v9202_v47, %v5449_v11 }
 0x891   : > { %v5543_v13 = vadd.f32 %v5450_v40, %v8630_v55  ;;  %v4422_v40 = vld [vmem:[%s6712_s11 + $0xf0] sm:$0xff] }
 0x893   : > { %5575 = vst.msk [vmem:[%s9207_s30 + $0x8] sm:$0xff] %vm459_vm0, %v5543_v13 }
 0x89d   : > { %v4698_v43 = vpop.xlane.xlu1 %4697 }
 0x89e   : > { %v4760_v27 = vmul.f32 %v4698_v43, %v9681_v15 }
 0x8a0   : > { %v4792_v44 = vadd.f32 1e-05, %v4760_v27 }
 0x8a2   : > { %6352 = vrsqrt.f32 %v4792_v44  ;;  %vm4974_vm1 = vweird.f32 %v4792_v44 }
 0x8a3   : > { %6354 = vrcp.f32 %v4295_v2 }
 0x8a5   : > { %v4527_v61 = vpop.xlane.xlu1 %4526 }
 0x8a6   : > { %v4701_v62 = vpop.xlane.xlu2 %4700  ;;  %v4575_v19 = vmul.f32 %v4527_v61, %v9681_v15  ;;  %v9234_v61 = vadd.f32 %v4422_v40, %v4390_v56 }
 0x8a7   : > { %v4761_v55 = vmul.f32 %v4701_v62, %v9681_v15 }
 0x8a8   : > { %v6353_v16 = vpop.eup %6352  ;;  %v9219_v26 = vsub.f32 %v9057_v32, %v4575_v19 }
 0x8a9   : > { %v4969_v39 = vmul.f32 %v6353_v16, %v4792_v44  ;;  %v9221_v30 = vadd.f32 1e-05, %v4761_v55  ;;  %v6355_v9 = vpop.eup %6354  ;;  %vm4975_vm15 = vweird.f32 %v6353_v16 }
 0x8aa   : > { %v4639_v10 = vmul.f32 %v9219_v26, %v9219_v26  ;;  %v4359_v2 = vmul.f32 16.0, %v6355_v9  ;;  %vm4976_vm2 = vmor %vm4974_vm1, %vm4975_vm15  ;;  %v4546_v9 = vsel %vm459_vm0, %v9234_v61, 0.0 }
 0x8ab   : > { %v4970_v63 = vmul.f32 %v6353_v16, %v4969_v39  ;;  %6356 = vrsqrt.f32 %v9221_v30  ;;  %vm4984_vm4 = vweird.f32 %v9221_v30 }
 0x8ac   : > { %v4717_v52 = vsel %vm459_vm0, %v4639_v10, 0.0  ;;  %v4391_v44 = vmul.f32 %v4359_v2, %v8602_v17 }
 0x8ad   : > { %v4971_v34 = vmul.f32 0.5, %v4970_v63  ;;  %v4704_v11 = vpop.xlane.xlu0 %4703  ;;  %4718 = vadd.xlane.f32.xlu2 %v4717_v52  ;;  %v4707_v36 = vpop.xlane.xlu1 %4706 }
 0x8ae   : > { %v4762_v13 = vmul.f32 %v4704_v11, %v9681_v15  ;;  %v4530_v35 = vpop.xlane.xlu2 %4529  ;;  %v4763_v27 = vmul.f32 %v4707_v36, %v9681_v15  ;;  %v4423_v36 = vld [vmem:[%s6712_s11 + $0xf8] sm:$0xff] }
 0x8af   : > { %v4972_v43 = vsub.f32 1.5, %v4971_v34  ;;  %v4576_v4 = vmul.f32 %v4530_v35, %v9681_v15 }
 0x8b0   : > { %v9232_v18 = vadd.f32 1e-05, %v4762_v13  ;;  %v5452_v3 = vpop.f32.mrf.mxu0  ;;  %v9236_v55 = vadd.f32 1e-05, %v4763_v27 }
 0x8b1   : > { %v6357_v62 = vpop.eup %6356  ;;  %v4973_v19 = vmul.f32 %v6353_v16, %v4972_v43  ;;  %v9239_v58 = vsub.f32 %v9089_v46, %v4576_v4  ;;  %v5453_v39 = vadd.f32 %v9202_v47, %v5452_v3 }
 0x8b2   : > { %v4979_v10 = vmul.f32 %v6357_v62, %v9221_v30  ;;  %6358 = vrsqrt.f32 %v9232_v18  ;;  %vm4985_vm3 = vweird.f32 %v6357_v62  ;;  %vm4994_vm7 = vweird.f32 %v9232_v18 }
 0x8b3   : > { %6360 = vrsqrt.f32 %v9236_v55  ;;  %v5544_v63 = vadd.f32 %v5453_v39, %v8654_v31  ;;  %v4640_v56 = vmul.f32 %v9239_v58, %v9239_v58  ;;  %v4977_v34 = vsel %vm4976_vm2, %v6353_v16, %v4973_v19  ;;  %vm4986_vm5 = vmor %vm4984_vm4, %vm4985_vm3 }
 0x8b4   : > { %v4980_v52 = vmul.f32 %v6357_v62, %v4979_v10  ;;  %v5144_v13 = vmul.f32 %v4977_v34, %v9040_v38  ;;  %v9266_v10 = vadd.f32 %v4423_v36, %v4391_v44  ;;  %vm5004_vm10 = vweird.f32 %v9236_v55 }
 0x8b5   : > { %5576 = vst.msk [vmem:[%s9207_s30 + $0x10] sm:$0xff] %vm459_vm0, %v5544_v63  ;;  %v4533_v11 = vpop.xlane.xlu0 %4532  ;;  %4547 = vadd.xlane.f32.xlu2 %v4546_v9  ;;  %v4720_v40 = vsel %vm459_vm0, %v4640_v56, 0.0  ;;  %v4536_v27 = vpop.xlane.xlu1 %4535 }
 0x8b6   : > { %v4981_v31 = vmul.f32 0.5, %v4980_v52  ;;  %v4710_v35 = vpop.xlane.xlu2 %4709  ;;  %v4577_v43 = vmul.f32 %v4533_v11, %v9681_v15  ;;  %4721 = vadd.xlane.f32.xlu0 %v4720_v40  ;;  %v4578_v16 = vmul.f32 %v4536_v27, %v9681_v15  ;;  %5942 = vmatmul.msk.f32.gmra.mxu3 %vm459_vm0, %v5144_v13 }
 0x8b7   : > { %v4764_v4 = vmul.f32 %v4710_v35, %v9681_v15  ;;  %v5308_v17 = vpop.f32.mrf.mxu3 }
 0x8b8   : > { %v6359_v2 = vpop.eup %6358  ;;  %v4982_v3 = vsub.f32 1.5, %v4981_v31  ;;  %v9261_v19 = vsub.f32 %v9123_v6, %v4577_v43  ;;  %v5309_v38 = vadd.f32 %v9030_v49, %v5308_v17  ;;  %v9272_v52 = vsub.f32 %v9125_v53, %v4578_v16  ;;  %v5455_v9 = vpop.f32.mrf.mxu0 }
 0x8b9   : > { %v9264_v39 = vpop.eup %6360  ;;  %v4989_v63 = vmul.f32 %v6359_v2, %v9232_v18  ;;  %v9269_v56 = vadd.f32 1e-05, %v4764_v4  ;;  %v5456_v44 = vadd.f32 %v9202_v47, %v5455_v9  ;;  %v4549_v4 = vsel %vm459_vm0, %v9266_v10, 0.0 }
 0x8ba   : > { %v4983_v34 = vmul.f32 %v6357_v62, %v4982_v3  ;;  %v4999_v11 = vmul.f32 %v9264_v39, %v9236_v55  ;;  %v5386_v40 = vmax.f32 %v5309_v38, 0.0  ;;  %v4642_v31 = vmul.f32 %v9272_v52, %v9272_v52 }
 0x8bb   : > { %v4990_v13 = vmul.f32 %v6359_v2, %v4989_v63  ;;  %6362 = vrsqrt.f32 %v9269_v56  ;;  %v4641_v30 = vmul.f32 %v9261_v19, %v9261_v19  ;;  %v5545_v27 = vadd.f32 %v5456_v44, %v8663_v25 }
 0x8bc   : > { %v5000_v36 = vmul.f32 %v9264_v39, %v4999_v11  ;;  %5472 = vmatmul.f32.gmra.mxu0 %v5386_v40  ;;  %v4987_v35 = vsel %vm4986_vm5, %v6357_v62, %v4983_v34  ;;  %v4726_v3 = vsel %vm459_vm0, %v4642_v31, 0.0  ;;  %vm4995_vm6 = vweird.f32 %v6359_v2 }
 0x8bd   : > { %v4991_v43 = vmul.f32 0.5, %v4990_v13  ;;  %v5145_v16 = vmul.f32 %v4987_v35, %v9062_v23  ;;  %v4723_v38 = vsel %vm459_vm0, %v4641_v30, 0.0  ;;  %5577 = vst.msk [vmem:[%s9207_s30 + $0x18] sm:$0xff] %vm459_vm0, %v5545_v27  ;;  %4727 = vadd.xlane.f32.xlu2 %v4726_v3  ;;  %vm4996_vm8 = vmor %vm4994_vm7, %vm4995_vm6  ;;  %vm5005_vm9 = vweird.f32 %v9264_v39 }
 0x8be   : > { %v4539_v17 = vpop.xlane.xlu2 %4538  ;;  %4550 = vadd.xlane.f32.xlu0 %v4549_v4  ;;  %v5001_v9 = vmul.f32 0.5, %v5000_v36  ;;  %4724 = vadd.xlane.f32.xlu1 %v4723_v38  ;;  %vm5006_vm11 = vmor %vm5004_vm10, %vm5005_vm9  ;;  %vm5014_vm13 = vweird.f32 %v9269_v56 }
 0x8bf   : > { %v4992_v63 = vsub.f32 1.5, %v4991_v43  ;;  %v4579_v62 = vmul.f32 %v4539_v17, %v9681_v15  ;;  %v5311_v25 = vpop.f32.mrf.mxu3  ;;  %5943 = vmatmul.msk.f32.gmra.mxu3 %vm459_vm0, %v5145_v16 }
 0x8c0   : > { %v5312_v34 = vadd.f32 %v9030_v49, %v5311_v25  ;;  %v5458_v13 = vpop.f32.mrf.mxu0  ;;  %v5002_v31 = vsub.f32 1.5, %v5001_v9 }
 0x8c1   : > { %v9295_v23 = vpop.eup %6362  ;;  %v4993_v11 = vmul.f32 %v6359_v2, %v4992_v63  ;;  %v9299_v40 = vsub.f32 %v9154_v12, %v4579_v62  ;;  %v5459_v30 = vadd.f32 %v9202_v47, %v5458_v13 }
 0x8c2   : > { %v5009_v44 = vmul.f32 %v9295_v23, %v9269_v56  ;;  %v5387_v36 = vmax.f32 %v5312_v34, 0.0  ;;  %v5003_v38 = vmul.f32 %v9264_v39, %v5002_v31  ;;  %vm5015_vm12 = vweird.f32 %v9295_v23 }
 0x8c3   : > { %v4643_v35 = vmul.f32 %v9299_v40, %v9299_v40  ;;  %v4997_v43 = vsel %vm4996_vm8, %v6359_v2, %v4993_v11  ;;  %v5546_v4 = vadd.f32 %v5459_v30, %v8672_v48  ;;  %vm5016_vm14 = vmor %vm5014_vm13, %vm5015_vm12 }
 0x8c4   : > { %v5010_v27 = vmul.f32 %v9295_v23, %v5009_v44  ;;  %5475 = vmatmul.f32.gmra.mxu0 %v5387_v36  ;;  %v5146_v18 = vmul.f32 %v4997_v43, %v9084_v5  ;;  %v5007_v11 = vsel %vm5006_vm11, %v9264_v39, %v5003_v38 }
 0x8c5   : > { %v4713_v16 = vpop.xlane.xlu0 %4712  ;;  %v4729_v17 = vsel %vm459_vm0, %v4643_v35, 0.0  ;;  %5578 = vst.msk [vmem:[%s9207_s30 + $0x20] sm:$0xff] %vm459_vm0, %v5546_v4  ;;  %v5147_v55 = vmul.f32 %v5007_v11, %v9087_v28 }
 0x8c6   : > { %v4765_v3 = vmul.f32 %v4713_v16, %v9681_v15  ;;  %v5011_v63 = vmul.f32 0.5, %v5010_v27  ;;  %4730 = vadd.xlane.f32.xlu1 %v4729_v17 }
 0x8c7   : > { %v5314_v2 = vpop.f32.mrf.mxu3  ;;  %5944 = vmatmul.msk.f32.gmra.mxu3 %vm459_vm0, %v5146_v18 }
 0x8c8   : > { %v4797_v9 = vadd.f32 1e-05, %v4765_v3  ;;  %v5315_v62 = vadd.f32 %v9030_v49, %v5314_v2  ;;  %v5461_v48 = vpop.f32.mrf.mxu0  ;;  %v5012_v25 = vsub.f32 1.5, %v5011_v63 }
 0x8c9   : > { %v5462_v34 = vadd.f32 %v9202_v47, %v5461_v48 }
 0x8ca   : > { %6364 = vrsqrt.f32 %v4797_v9  ;;  %v5388_v5 = vmax.f32 %v5315_v62, 0.0  ;;  %v5013_v35 = vmul.f32 %v9295_v23, %v5012_v25  ;;  %vm5024_vm1 = vweird.f32 %v4797_v9 }
 0x8cb   : > { %v5547_v13 = vadd.f32 %v5462_v34, %v8684_v14 }
 0x8cc   : > { %5478 = vmatmul.f32.gmra.mxu0 %v5388_v5  ;;  %v5017_v63 = vsel %vm5016_vm14, %v9295_v23, %v5013_v35 }
 0x8cd   : > { %v4716_v44 = vpop.xlane.xlu1 %4715  ;;  %v4542_v36 = vpop.xlane.xlu0 %4541  ;;  %5579 = vst.msk [vmem:[%s9207_s30 + $0x28] sm:$0xff] %vm459_vm0, %v5547_v13  ;;  %v5148_v25 = vmul.f32 %v5017_v63, %v9132_v45 }
 0x8ce   : > { %v4766_v31 = vmul.f32 %v4716_v44, %v9681_v15  ;;  %v4580_v30 = vmul.f32 %v4542_v36, %v9681_v15 }
 0x8cf   : > { %v5317_v43 = vpop.f32.mrf.mxu3  ;;  %5945 = vmatmul.msk.f32.gmra.mxu3 %vm459_vm0, %v5147_v55 }
 0x8d0   : > { %v6365_v27 = vpop.eup %6364  ;;  %v4798_v39 = vadd.f32 1e-05, %v4766_v31  ;;  %v9329_v18 = vsub.f32 %v9181_v20, %v4580_v30  ;;  %v5318_v14 = vadd.f32 %v9030_v49, %v5317_v43  ;;  %v5464_v4 = vpop.f32.mrf.mxu0 }
 0x8d1   : > { %v5019_v28 = vmul.f32 %v6365_v27, %v4797_v9  ;;  %v5465_v17 = vadd.f32 %v9202_v47, %v5464_v4  ;;  %vm5025_vm15 = vweird.f32 %v6365_v27 }
 0x8d2   : > { %6366 = vrsqrt.f32 %v4798_v39  ;;  %v5389_v16 = vmax.f32 %v5318_v14, 0.0  ;;  %v4644_v38 = vmul.f32 %v9329_v18, %v9329_v18  ;;  %vm5026_vm2 = vmor %vm5024_vm1, %vm5025_vm15  ;;  %vm5034_vm4 = vweird.f32 %v4798_v39 }
 0x8d3   : > { %v5020_v3 = vmul.f32 %v6365_v27, %v5019_v28  ;;  %v5548_v2 = vadd.f32 %v5465_v17, %v8692_v42 }
 0x8d4   : > { %5481 = vmatmul.f32.gmra.mxu0 %v5389_v16  ;;  %v4732_v48 = vsel %vm459_vm0, %v4644_v38, 0.0 }
 0x8d5   : > { %v5021_v62 = vmul.f32 0.5, %v5020_v3  ;;  %v4545_v56 = vpop.xlane.xlu1 %4544  ;;  %5580 = vst.msk [vmem:[%s9207_s30 + $0x30] sm:$0xff] %vm459_vm0, %v5548_v2  ;;  %4733 = vadd.xlane.f32.xlu0 %v4732_v48 }
 0x8d6   : > { %v4581_v5 = vmul.f32 %v4545_v56, %v9681_v15 }
 0x8d7   : > { %v5022_v34 = vsub.f32 1.5, %v5021_v62  ;;  %v5320_v11 = vpop.f32.mrf.mxu3  ;;  %5946 = vmatmul.msk.f32.gmra.mxu3 %vm459_vm0, %v5148_v25 }
 0x8d8   : > { %v6367_v13 = vpop.eup %6366  ;;  %v9345_v23 = vsub.f32 %v9192_v37, %v4581_v5  ;;  %v5321_v42 = vadd.f32 %v9030_v49, %v5320_v11 }
 0x8d9   : > { %v5023_v44 = vmul.f32 %v6365_v27, %v5022_v34  ;;  %v5029_v36 = vmul.f32 %v6367_v13, %v4798_v39  ;;  %vm5035_vm3 = vweird.f32 %v6367_v13 }
 0x8da   : > { %v5390_v31 = vmax.f32 %v5321_v42, 0.0  ;;  %v4645_v30 = vmul.f32 %v9345_v23, %v9345_v23  ;;  %vm5036_vm5 = vmor %vm5034_vm4, %vm5035_vm3 }
 0x8db   : > { %v5030_v45 = vmul.f32 %v6367_v13, %v5029_v36  ;;  %v5027_v55 = vsel %vm5026_vm2, %v6365_v27, %v5023_v44 }
 0x8dc   : > { %5484 = vmatmul.f32.gmra.mxu0 %v5390_v31  ;;  %v4735_v35 = vsel %vm459_vm0, %v4645_v30, 0.0  ;;  %v5149_v43 = vmul.f32 %v5027_v55, %v9167_v8 }
 0x8dd   : > { %v5031_v14 = vmul.f32 0.5, %v5030_v45  ;;  %v5467_v28 = vpop.f32.mrf.mxu0  ;;  %4736 = vadd.xlane.f32.xlu2 %v4735_v35 }
 0x8de   : > { %v5468_v4 = vadd.f32 %v9202_v47, %v5467_v28 }
 0x8df   : > { %v5032_v9 = vsub.f32 1.5, %v5031_v14  ;;  %v5323_v16 = vpop.f32.mrf.mxu3  ;;  %5947 = vmatmul.msk.f32.gmra.mxu3 %vm459_vm0, %v5149_v43 }
 0x8e0   : > { %v5549_v17 = vadd.f32 %v5468_v4, %v8699_v24  ;;  %v5324_v3 = vadd.f32 %v9030_v49, %v5323_v16 }
 0x8e1   : > { %v5033_v27 = vmul.f32 %v6367_v13, %v5032_v9 }
 0x8e2   : > { %5581 = vst.msk [vmem:[%s9207_s30 + $0x38] sm:$0xff] %vm459_vm0, %v5549_v17  ;;  %v5391_v8 = vmax.f32 %v5324_v3, 0.0 }
 0x8e3   : > { %v5037_v38 = vsel %vm5036_vm5, %v6367_v13, %v5033_v27 }
 0x8e4   : > { %5487 = vmatmul.f32.gmra.mxu0 %v5391_v8  ;;  %v5150_v63 = vmul.f32 %v5037_v38, %v9179_v21 }
 0x8e5   : > { %v5470_v2 = vpop.f32.mrf.mxu0 }
 0x8e6   : > { %v5471_v62 = vadd.f32 %v9202_v47, %v5470_v2 }
 0x8e7   : > { %v5326_v48 = vpop.f32.mrf.mxu3  ;;  %5948 = vmatmul.msk.f32.gmra.mxu3 %vm459_vm0, %v5150_v63 }
 0x8e8   : > { %v5550_v24 = vadd.f32 %v5471_v62, %v8707_v57  ;;  %v5327_v56 = vadd.f32 %v9030_v49, %v5326_v48 }
 0x8ea   : > { %5582 = vst.msk [vmem:[%s9207_s30 + $0x40] sm:$0xff] %vm459_vm0, %v5550_v24  ;;  %v5392_v39 = vmax.f32 %v5327_v56, 0.0 }
 0x8ec   : > { %5490 = vmatmul.f32.gmra.mxu0 %v5392_v39 }
 0x920   : > { %v4719_v5 = vpop.xlane.xlu2 %4718 }
 0x921   : > { %v4767_v25 = vmul.f32 %v4719_v5, %v9681_v15 }
 0x923   : > { %v4799_v34 = vadd.f32 1e-05, %v4767_v25 }
 0x925   : > { %6368 = vrsqrt.f32 %v4799_v34  ;;  %vm5044_vm7 = vweird.f32 %v4799_v34 }
 0x928   : > { %v4548_v21 = vpop.xlane.xlu2 %4547 }
 0x929   : > { %v4582_v11 = vmul.f32 %v4548_v21, %v9681_v15  ;;  %v4722_v13 = vpop.xlane.xlu0 %4721 }
 0x92a   : > { %v4768_v42 = vmul.f32 %v4722_v13, %v9681_v15 }
 0x92b   : > { %v6369_v57 = vpop.eup %6368  ;;  %v9370_v49 = vsub.f32 %v9234_v61, %v4582_v11 }
 0x92c   : > { %v5039_v44 = vmul.f32 %v6369_v57, %v4799_v34  ;;  %v4800_v36 = vadd.f32 1e-05, %v4768_v42  ;;  %vm5045_vm6 = vweird.f32 %v6369_v57  ;;  %v9394_v42 = vld [vmem:[%s9573_s7] ss:$0 sm:$0xff] }
 0x92d   : > { %v4646_v31 = vmul.f32 %v9370_v49, %v9370_v49  ;;  %vm5046_vm8 = vmor %vm5044_vm7, %vm5045_vm6 }
 0x92e   : > { %v5040_v30 = vmul.f32 %v6369_v57, %v5039_v44  ;;  %6370 = vrsqrt.f32 %v4800_v36  ;;  %vm5054_vm10 = vweird.f32 %v4800_v36 }
 0x92f   : > { %v4738_v45 = vsel %vm459_vm0, %v4646_v31, 0.0 }
 0x930   : > { %v5041_v55 = vmul.f32 0.5, %v5040_v30  ;;  %4739 = vadd.xlane.f32.xlu1 %v4738_v45  ;;  %v4728_v14 = vpop.xlane.xlu2 %4727 }
 0x931   : > { %v4551_v35 = vpop.xlane.xlu0 %4550  ;;  %v4725_v4 = vpop.xlane.xlu1 %4724  ;;  %v4770_v9 = vmul.f32 %v4728_v14, %v9681_v15 }
 0x932   : > { %v5042_v43 = vsub.f32 1.5, %v5041_v55  ;;  %v4583_v28 = vmul.f32 %v4551_v35, %v9681_v15  ;;  %v4769_v16 = vmul.f32 %v4725_v4, %v9681_v15 }
 0x933   : > { %v9381_v38 = vadd.f32 1e-05, %v4770_v9 }
 0x934   : > { %v6371_v17 = vpop.eup %6370  ;;  %v5043_v3 = vmul.f32 %v6369_v57, %v5042_v43  ;;  %v9379_v27 = vsub.f32 %v9266_v10, %v4583_v28  ;;  %v4801_v63 = vadd.f32 1e-05, %v4769_v16 }
 0x935   : > { %v5049_v8 = vmul.f32 %v6371_v17, %v4800_v36  ;;  %6372 = vrsqrt.f32 %v9381_v38  ;;  %vm5055_vm9 = vweird.f32 %v6371_v17  ;;  %vm5074_vm1 = vweird.f32 %v9381_v38 }
 0x936   : > { %v4647_v2 = vmul.f32 %v9379_v27, %v9379_v27  ;;  %v5047_v62 = vsel %vm5046_vm8, %v6369_v57, %v5043_v3  ;;  %6374 = vrsqrt.f32 %v4801_v63  ;;  %vm5056_vm11 = vmor %vm5054_vm10, %vm5055_vm9  ;;  %vm5064_vm13 = vweird.f32 %v4801_v63 }
 0x937   : > { %v5050_v48 = vmul.f32 %v6371_v17, %v5049_v8  ;;  %v5151_v56 = vmul.f32 %v5047_v62, %v9219_v26 }
 0x938   : > { %v4741_v24 = vsel %vm459_vm0, %v4647_v2, 0.0 }
 0x939   : > { %v5051_v39 = vmul.f32 0.5, %v5050_v48  ;;  %4742 = vadd.xlane.f32.xlu0 %v4741_v24  ;;  %v5473_v5 = vpop.f32.mrf.mxu0  ;;  %v4731_v34 = vpop.xlane.xlu1 %4730  ;;  %5949 = vmatmul.msk.f32.gmra.mxu3 %vm459_vm0, %v5151_v56 }
 0x93a   : > { %v5474_v25 = vadd.f32 %v9202_v47, %v5473_v5  ;;  %v5329_v21 = vpop.f32.mrf.mxu3  ;;  %v4771_v13 = vmul.f32 %v4731_v34, %v9681_v15 }
 0x93b   : > { %v5052_v11 = vsub.f32 1.5, %v5051_v39  ;;  %v5330_v26 = vadd.f32 %v9394_v42, %v5329_v21  ;;  %v9398_v44 = vpop.eup %6372 }
 0x93c   : > { %v5551_v57 = vadd.f32 %v5474_v25, %v8755_v60  ;;  %v9400_v30 = vadd.f32 1e-05, %v4771_v13  ;;  %v6375_v55 = vpop.eup %6374  ;;  %v5069_v35 = vmul.f32 %v9398_v44, %v9381_v38  ;;  %vm5075_vm15 = vweird.f32 %v9398_v44 }
 0x93d   : > { %v5053_v31 = vmul.f32 %v6371_v17, %v5052_v11  ;;  %v5393_v45 = vmax.f32 %v5330_v26, 0.0  ;;  %v5059_v43 = vmul.f32 %v6375_v55, %v4801_v63  ;;  %vm5065_vm12 = vweird.f32 %v6375_v55  ;;  %vm5076_vm2 = vmor %vm5074_vm1, %vm5075_vm15 }
 0x93e   : > { %5583 = vst.msk [vmem:[%s9207_s30 + $0x48] sm:$0xff] %vm459_vm0, %v5551_v57  ;;  %6376 = vrsqrt.f32 %v9400_v30  ;;  %v5070_v60 = vmul.f32 %v9398_v44, %v5069_v35  ;;  %vm5066_vm14 = vmor %vm5064_vm13, %vm5065_vm12  ;;  %vm5084_vm4 = vweird.f32 %v9400_v30 }
 0x93f   : > { %5493 = vmatmul.f32.gmra.mxu0 %v5393_v45  ;;  %v5057_v14 = vsel %vm5056_vm11, %v6371_v17, %v5053_v31  ;;  %v5060_v28 = vmul.f32 %v6375_v55, %v5059_v43 }
 0x940   : > { %v5152_v9 = vmul.f32 %v5057_v14, %v9239_v58  ;;  %v5071_v16 = vmul.f32 0.5, %v5070_v60 }
 0x941   : > { %v5476_v4 = vpop.f32.mrf.mxu0  ;;  %v5061_v3 = vmul.f32 0.5, %v5060_v28 }
 0x942   : > { %v5477_v36 = vadd.f32 %v9202_v47, %v5476_v4  ;;  %v5332_v8 = vpop.f32.mrf.mxu3  ;;  %5950 = vmatmul.msk.f32.gmra.mxu3 %vm459_vm0, %v5152_v9  ;;  %v5072_v58 = vsub.f32 1.5, %v5071_v16 }
 0x943   : > { %v5333_v62 = vadd.f32 %v9394_v42, %v5332_v8  ;;  %v5062_v24 = vsub.f32 1.5, %v5061_v3 }
 0x944   : > { %v5552_v2 = vadd.f32 %v5477_v36, %v8767_v7  ;;  %v6377_v48 = vpop.eup %6376  ;;  %v5073_v26 = vmul.f32 %v9398_v44, %v5072_v58 }
 0x945   : > { %v5079_v17 = vmul.f32 %v6377_v48, %v9400_v30  ;;  %v5394_v56 = vmax.f32 %v5333_v62, 0.0  ;;  %v5063_v39 = vmul.f32 %v6375_v55, %v5062_v24  ;;  %vm5085_vm3 = vweird.f32 %v6377_v48 }
 0x946   : > { %5584 = vst.msk [vmem:[%s9207_s30 + $0x50] sm:$0xff] %vm459_vm0, %v5552_v2  ;;  %v5077_v43 = vsel %vm5076_vm2, %v9398_v44, %v5073_v26  ;;  %vm5086_vm5 = vmor %vm5084_vm4, %vm5085_vm3 }
 0x947   : > { %v5080_v5 = vmul.f32 %v6377_v48, %v5079_v17  ;;  %5496 = vmatmul.f32.gmra.mxu0 %v5394_v56  ;;  %v5067_v7 = vsel %vm5066_vm14, %v6375_v55, %v5063_v39  ;;  %v5154_v4 = vmul.f32 %v5077_v43, %v9272_v52 }
 0x948   : > { %v4734_v25 = vpop.xlane.xlu0 %4733  ;;  %v5153_v13 = vmul.f32 %v5067_v7, %v9261_v19 }
 0x949   : > { %v5479_v34 = vpop.f32.mrf.mxu0  ;;  %v4772_v21 = vmul.f32 %v4734_v25, %v9681_v15  ;;  %v5081_v57 = vmul.f32 0.5, %v5080_v5 }
 0x94a   : > { %v5480_v11 = vadd.f32 %v9202_v47, %v5479_v34  ;;  %v5335_v31 = vpop.f32.mrf.mxu3  ;;  %5951 = vmatmul.msk.f32.gmra.mxu3 %vm459_vm0, %v5153_v13 }
 0x94b   : > { %v4804_v63 = vadd.f32 1e-05, %v4772_v21  ;;  %v5336_v35 = vadd.f32 %v9394_v42, %v5335_v31  ;;  %v5082_v55 = vsub.f32 1.5, %v5081_v57 }
 0x94c   : > { %v5553_v45 = vadd.f32 %v5480_v11, %v8779_v0 }
 0x94d   : > { %6378 = vrsqrt.f32 %v4804_v63  ;;  %v5395_v19 = vmax.f32 %v5336_v35, 0.0  ;;  %v5083_v9 = vmul.f32 %v6377_v48, %v5082_v55  ;;  %vm5094_vm7 = vweird.f32 %v4804_v63 }
 0x94e   : > { %5585 = vst.msk [vmem:[%s9207_s30 + $0x58] sm:$0xff] %vm459_vm0, %v5553_v45 }
 0x94f   : > { %5499 = vmatmul.f32.gmra.mxu0 %v5395_v19  ;;  %v5087_v62 = vsel %vm5086_vm5, %v6377_v48, %v5083_v9 }
 0x950   : > { %v4737_v60 = vpop.xlane.xlu2 %4736  ;;  %v5155_v56 = vmul.f32 %v5087_v62, %v9299_v40 }
 0x951   : > { %v5482_v14 = vpop.f32.mrf.mxu0  ;;  %v4773_v0 = vmul.f32 %v4737_v60, %v9681_v15 }
 0x952   : > { %v5483_v28 = vadd.f32 %v9202_v47, %v5482_v14  ;;  %v5338_v36 = vpop.f32.mrf.mxu3  ;;  %5952 = vmatmul.msk.f32.gmra.mxu3 %vm459_vm0, %v5154_v4 }
 0x953   : > { %v4805_v38 = vadd.f32 1e-05, %v4773_v0  ;;  %v6379_v16 = vpop.eup %6378  ;;  %v5339_v8 = vadd.f32 %v9394_v42, %v5338_v36 }
 0x954   : > { %v5554_v3 = vadd.f32 %v5483_v28, %v8729_v51  ;;  %v5089_v44 = vmul.f32 %v6379_v16, %v4804_v63  ;;  %vm5095_vm6 = vweird.f32 %v6379_v16 }
 0x955   : > { %6380 = vrsqrt.f32 %v4805_v38  ;;  %v5396_v2 = vmax.f32 %v5339_v8, 0.0  ;;  %vm5096_vm8 = vmor %vm5094_vm7, %vm5095_vm6  ;;  %vm5104_vm10 = vweird.f32 %v4805_v38 }
 0x956   : > { %5586 = vst.msk [vmem:[%s9207_s30 + $0x60] sm:$0xff] %vm459_vm0, %v5554_v3  ;;  %v5090_v52 = vmul.f32 %v6379_v16, %v5089_v44 }
 0x957   : > { %5502 = vmatmul.f32.gmra.mxu0 %v5396_v2 }
 0x958   : > { %v5091_v24 = vmul.f32 0.5, %v5090_v52 }
 0x959   : > { %v5485_v17 = vpop.f32.mrf.mxu0 }
 0x95a   : > { %v5486_v51 = vadd.f32 %v9202_v47, %v5485_v17  ;;  %v5092_v39 = vsub.f32 1.5, %v5091_v24  ;;  %v5341_v30 = vpop.f32.mrf.mxu3  ;;  %5953 = vmatmul.msk.f32.gmra.mxu3 %vm459_vm0, %v5155_v56 }
 0x95b   : > { %v6381_v58 = vpop.eup %6380  ;;  %v5342_v34 = vadd.f32 %v9394_v42, %v5341_v30 }
 0x95c   : > { %v5099_v5 = vmul.f32 %v6381_v58, %v4805_v38  ;;  %v5555_v25 = vadd.f32 %v5486_v51, %v8734_v22  ;;  %v5093_v48 = vmul.f32 %v6379_v16, %v5092_v39  ;;  %vm5105_vm9 = vweird.f32 %v6381_v58 }
 0x95d   : > { %v5397_v21 = vmax.f32 %v5342_v34, 0.0  ;;  %vm5106_vm11 = vmor %vm5104_vm10, %vm5105_vm9 }
 0x95e   : > { %v5100_v7 = vmul.f32 %v6381_v58, %v5099_v5  ;;  %5587 = vst.msk [vmem:[%s9207_s30 + $0x68] sm:$0xff] %vm459_vm0, %v5555_v25  ;;  %v5097_v40 = vsel %vm5096_vm8, %v6379_v16, %v5093_v48 }
 0x95f   : > { %5505 = vmatmul.f32.gmra.mxu0 %v5397_v21  ;;  %v5156_v13 = vmul.f32 %v5097_v40, %v9329_v18 }
 0x960   : > { %v5101_v11 = vmul.f32 0.5, %v5100_v7 }
 0x961   : > { %v5488_v26 = vpop.f32.mrf.mxu0 }
 0x962   : > { %v5102_v57 = vsub.f32 1.5, %v5101_v11  ;;  %v5489_v22 = vadd.f32 %v9202_v47, %v5488_v26  ;;  %v5344_v31 = vpop.f32.mrf.mxu3  ;;  %5954 = vmatmul.msk.f32.gmra.mxu3 %vm459_vm0, %v5156_v13 }
 0x963   : > { %v5345_v35 = vadd.f32 %v9394_v42, %v5344_v31 }
 0x964   : > { %v5103_v45 = vmul.f32 %v6381_v58, %v5102_v57  ;;  %v5556_v63 = vadd.f32 %v5489_v22, %v8808_v29 }
 0x965   : > { %v5398_v19 = vmax.f32 %v5345_v35, 0.0 }
 0x966   : > { %5588 = vst.msk [vmem:[%s9207_s30 + $0x70] sm:$0xff] %vm459_vm0, %v5556_v63  ;;  %v5107_v18 = vsel %vm5106_vm11, %v6381_v58, %v5103_v45 }
 0x967   : > { %5508 = vmatmul.f32.gmra.mxu0 %v5398_v19  ;;  %v5157_v55 = vmul.f32 %v5107_v18, %v9345_v23 }
 0x969   : > { %v5491_v43 = vpop.f32.mrf.mxu0 }
 0x96a   : > { %v5492_v60 = vadd.f32 %v9202_v47, %v5491_v43  ;;  %v5347_v14 = vpop.f32.mrf.mxu3  ;;  %5955 = vmatmul.msk.f32.gmra.mxu3 %vm459_vm0, %v5157_v55  ;;  %v9685_v43 = vld [vmem:[#allocation19_spill] sm:$0xff] }
 0x96b   : > { %v5348_v29 = vadd.f32 %v9394_v42, %v5347_v14 }
 0x96c   : > { %v5557_v0 = vadd.f32 %v5492_v60, %v8819_v50 }
 0x96d   : > { %v5399_v28 = vmax.f32 %v5348_v29, 0.0 }
 0x96e   : > { %5589 = vst.msk [vmem:[%s9207_s30 + $0x78] sm:$0xff] %vm459_vm0, %v5557_v0 }
 0x96f   : > { %5511 = vmatmul.f32.gmra.mxu0 %v5399_v28 }
 0x9a3   : > { %v4740_v4 = vpop.xlane.xlu1 %4739 }
 0x9a4   : > { %v4774_v9 = vmul.f32 %v4740_v4, %v9681_v15 }
 0x9a6   : > { %v4806_v38 = vadd.f32 1e-05, %v4774_v9 }
 0x9a8   : > { %6382 = vrsqrt.f32 %v4806_v38  ;;  %vm5114_vm13 = vweird.f32 %v4806_v38 }
 0x9ac   : > { %v4743_v23 = vpop.xlane.xlu0 %4742 }
 0x9ad   : > { %v4775_v36 = vmul.f32 %v4743_v23, %v9681_v15 }
 0x9ae   : > { %v6383_v16 = vpop.eup %6382 }
 0x9af   : > { %v5109_v3 = vmul.f32 %v6383_v16, %v4806_v38  ;;  %v4807_v8 = vadd.f32 1e-05, %v4775_v36  ;;  %vm5115_vm12 = vweird.f32 %v6383_v16 }
 0x9b0   : > { %vm5116_vm14 = vmor %vm5114_vm13, %vm5115_vm12 }
 0x9b1   : > { %v5110_v50 = vmul.f32 %v6383_v16, %v5109_v3  ;;  %6384 = vrsqrt.f32 %v4807_v8  ;;  %vm5124_vm1 = vweird.f32 %v4807_v8 }
 0x9b3   : > { %v5111_v44 = vmul.f32 0.5, %v5110_v50 }
 0x9b5   : > { %v5112_v2 = vsub.f32 1.5, %v5111_v44 }
 0x9b7   : > { %v6385_v52 = vpop.eup %6384  ;;  %v5113_v62 = vmul.f32 %v6383_v16, %v5112_v2 }
 0x9b8   : > { %v5119_v24 = vmul.f32 %v6385_v52, %v4807_v8  ;;  %vm5125_vm15 = vweird.f32 %v6385_v52 }
 0x9b9   : > { %v5117_v17 = vsel %vm5116_vm14, %v6383_v16, %v5113_v62  ;;  %vm5126_vm2 = vmor %vm5124_vm1, %vm5125_vm15 }
 0x9ba   : > { %v5120_v51 = vmul.f32 %v6385_v52, %v5119_v24  ;;  %v5158_v56 = vmul.f32 %v5117_v17, %v9370_v49 }
 0x9bc   : > { %v5121_v58 = vmul.f32 0.5, %v5120_v51  ;;  %v5494_v15 = vpop.f32.mrf.mxu0  ;;  %5956 = vmatmul.msk.f32.gmra.mxu3 %vm459_vm0, %v5158_v56  ;;  %v5350_v30 = vpop.f32.mrf.mxu3 }
 0x9bd   : > { %v5495_v39 = vadd.f32 %v9202_v47, %v5494_v15  ;;  %v5351_v25 = vadd.f32 %v9394_v42, %v5350_v30 }
 0x9be   : > { %v5122_v5 = vsub.f32 1.5, %v5121_v58 }
 0x9bf   : > { %v5558_v34 = vadd.f32 %v5495_v39, %v8863_v33  ;;  %v5400_v7 = vmax.f32 %v5351_v25, 0.0 }
 0x9c0   : > { %v5123_v48 = vmul.f32 %v6385_v52, %v5122_v5  ;;  %v6388_v5 = vld [vmem:[%s9575_s9] ss:$0 sm:$0xff] }
 0x9c1   : > { %5590 = vst.msk [vmem:[%s9207_s30 + $0x80] sm:$0xff] %vm459_vm0, %v5558_v34  ;;  %5514 = vmatmul.f32.gmra.mxu0 %v5400_v7 }
 0x9c2   : > { %v5127_v49 = vsel %vm5126_vm2, %v6385_v52, %v5123_v48 }
 0x9c3   : > { %v5159_v21 = vmul.f32 %v5127_v49, %v9379_v27  ;;  %v9684_v27 = vld [vmem:[#allocation18_spill] sm:$0xff] }
 0x9c4   : > { %v5497_v40 = vpop.f32.mrf.mxu0 }
 0x9c5   : > { %5957 = vmatmul.msk.f32.gmra.mxu3 %vm459_vm0, %v5159_v21  ;;  %v5498_v11 = vadd.f32 %v9202_v47, %v5497_v40  ;;  %v5353_v13 = vpop.f32.mrf.mxu3 }
 0x9c6   : > { %v5354_v33 = vadd.f32 %v9394_v42, %v5353_v13 }
 0x9c7   : > { %v5559_v26 = vadd.f32 %v5498_v11, %v8881_v59 }
 0x9c8   : > { %v5401_v57 = vmax.f32 %v5354_v33, 0.0 }
 0x9c9   : > { %5591 = vst.msk [vmem:[%s9207_s30 + $0x88] sm:$0xff] %vm459_vm0, %v5559_v26 }
 0x9ca   : > { %5517 = vmatmul.f32.gmra.mxu0 %v5401_v57 }
 0x9cc   : > { %v5500_v22 = vpop.f32.mrf.mxu0 }
 0x9cd   : > { %v5501_v31 = vadd.f32 %v9202_v47, %v5500_v22  ;;  %v5356_v45 = vpop.f32.mrf.mxu3 }
 0x9ce   : > { %v5357_v35 = vadd.f32 %v9394_v42, %v5356_v45 }
 0x9cf   : > { %v5560_v63 = vadd.f32 %v5501_v31, %v9684_v27 }
 0x9d0   : > { %v5402_v19 = vmax.f32 %v5357_v35, 0.0 }
 0x9d1   : > { %5592 = vst.msk [vmem:[%s9207_s30 + $0x90] sm:$0xff] %vm459_vm0, %v5560_v63 }
 0x9d2   : > { %5520 = vmatmul.f32.gmra.mxu0 %v5402_v19 }
 0x9d4   : > { %v5503_v18 = vpop.f32.mrf.mxu0 }
 0x9d5   : > { %v5504_v59 = vadd.f32 %v9202_v47, %v5503_v18  ;;  %v5359_v55 = vpop.f32.mrf.mxu3 }
 0x9d6   : > { %v5360_v14 = vadd.f32 %v9394_v42, %v5359_v55 }
 0x9d7   : > { %v5561_v60 = vadd.f32 %v5504_v59, %v9685_v43 }
 0x9d8   : > { %v5403_v0 = vmax.f32 %v5360_v14, 0.0 }
 0x9d9   : > { %5593 = vst.msk [vmem:[%s9207_s30 + $0x98] sm:$0xff] %vm459_vm0, %v5561_v60 }
 0x9da   : > { %5523 = vmatmul.f32.gmra.mxu0 %v5403_v0 }
 0x9dc   : > { %v5506_v29 = vpop.f32.mrf.mxu0 }
 0x9dd   : > { %v5507_v28 = vadd.f32 %v9202_v47, %v5506_v29  ;;  %v5362_v4 = vpop.f32.mrf.mxu3 }
 0x9de   : > { %v5363_v38 = vadd.f32 %v9394_v42, %v5362_v4 }
 0x9df   : > { %v5562_v9 = vadd.f32 %v5507_v28, %v8932_v1 }
 0x9e0   : > { %v5404_v23 = vmax.f32 %v5363_v38, 0.0 }
 0x9e1   : > { %5594 = vst.msk [vmem:[%s9207_s30 + $0xa0] sm:$0xff] %vm459_vm0, %v5562_v9 }
 0x9e2   : > { %5526 = vmatmul.f32.gmra.mxu0 %v5404_v23 }
 0x9e4   : > { %v5509_v36 = vpop.f32.mrf.mxu0 }
 0x9e5   : > { %v5510_v16 = vadd.f32 %v9202_v47, %v5509_v36  ;;  %v5365_v3 = vpop.f32.mrf.mxu3 }
 0x9e6   : > { %v5366_v50 = vadd.f32 %v9394_v42, %v5365_v3 }
 0x9e7   : > { %v5563_v8 = vadd.f32 %v5510_v16, %v8983_v54 }
 0x9e8   : > { %v5405_v44 = vmax.f32 %v5366_v50, 0.0 }
 0x9e9   : > { %5595 = vst.msk [vmem:[%s9207_s30 + $0xa8] sm:$0xff] %vm459_vm0, %v5563_v8 }
 0x9ea   : > { %5529 = vmatmul.f32.gmra.mxu0 %v5405_v44 }
 0x9ec   : > { %v5512_v1 = vpop.f32.mrf.mxu0 }
 0x9ed   : > { %v5513_v2 = vadd.f32 %v9202_v47, %v5512_v1  ;;  %v5368_v52 = vpop.f32.mrf.mxu3 }
 0x9ee   : > { %v5369_v24 = vadd.f32 %v9394_v42, %v5368_v52 }
 0x9ef   : > { %v5564_v62 = vadd.f32 %v5513_v2, %v9008_v41 }
 0x9f0   : > { %v5406_v17 = vmax.f32 %v5369_v24, 0.0 }
 0x9f1   : > { %5596 = vst.msk [vmem:[%s9207_s30 + $0xb0] sm:$0xff] %vm459_vm0, %v5564_v62 }
 0x9f2   : > { %5532 = vmatmul.f32.gmra.mxu0 %v5406_v17 }
 0xa3e   : > { %v5515_v54 = vpop.f32.mrf.mxu0 }
 0xa3f   : > { %v5371_v51 = vpop.f32.mrf.mxu3  ;;  %v5516_v56 = vadd.f32 %v9202_v47, %v5515_v54 }
 0xa40   : > { %v5372_v58 = vadd.f32 %v9394_v42, %v5371_v51 }
 0xa41   : > { %v5565_v15 = vadd.f32 %v5516_v56, %v9057_v32 }
 0xa42   : > { %v5407_v39 = vmax.f32 %v5372_v58, 0.0 }
 0xa43   : > { %5597 = vst.msk [vmem:[%s9207_s30 + $0xb8] sm:$0xff] %vm459_vm0, %v5565_v15 }
 0xa44   : > { %5535 = vmatmul.f32.gmra.mxu0 %v5407_v39 }
 0xa47   : > { %v5518_v41 = vpop.f32.mrf.mxu0 }
 0xa48   : > { %v5374_v30 = vpop.f32.mrf.mxu3  ;;  %v5519_v25 = vadd.f32 %v6388_v5, %v5518_v41 }
 0xa49   : > { %v5375_v34 = vadd.f32 %v9394_v42, %v5374_v30 }
 0xa4a   : > { %v5566_v47 = vadd.f32 %v5519_v25, %v9089_v46 }
 0xa4b   : > { %v5408_v48 = vmax.f32 %v5375_v34, 0.0 }
 0xa4c   : > { %5598 = vst.msk [vmem:[%s9207_s30 + $0xc0] sm:$0xff] %vm459_vm0, %v5566_v47 }
 0xa4d   : > { %5538 = vmatmul.f32.gmra.mxu0 %v5408_v48 }
 0xa4f   : > { %v5521_v32 = vpop.f32.mrf.mxu0 }
 0xa50   : > { %v5522_v7 = vadd.f32 %v6388_v5, %v5521_v32 }
 0xa52   : > { %v5567_v49 = vadd.f32 %v5522_v7, %v9123_v6 }
 0xa54   : > { %5599 = vst.msk [vmem:[%s9207_s30 + $0xc8] sm:$0xff] %vm459_vm0, %v5567_v49 }
 0xa57   : > { %v5524_v21 = vpop.f32.mrf.mxu0 }
 0xa58   : > { %v5525_v40 = vadd.f32 %v6388_v5, %v5524_v21 }
 0xa5a   : > { %v5568_v11 = vadd.f32 %v5525_v40, %v9125_v53 }
 0xa5c   : > { %5600 = vst.msk [vmem:[%s9207_s30 + $0xd0] sm:$0xff] %vm459_vm0, %v5568_v11 }
 0xa5f   : > { %v5527_v46 = vpop.f32.mrf.mxu0 }
 0xa60   : > { %v5528_v42 = vadd.f32 %v6388_v5, %v5527_v46 }
 0xa62   : > { %v5569_v13 = vadd.f32 %v5528_v42, %v9154_v12 }
 0xa64   : > { %5601 = vst.msk [vmem:[%s9207_s30 + $0xd8] sm:$0xff] %vm459_vm0, %v5569_v13 }
 0xa67   : > { %v5530_v33 = vpop.f32.mrf.mxu0 }
 0xa68   : > { %v5531_v6 = vadd.f32 %v6388_v5, %v5530_v33 }
 0xa6a   : > { %v5570_v26 = vadd.f32 %v5531_v6, %v9181_v20 }
 0xa6c   : > { %5602 = vst.msk [vmem:[%s9207_s30 + $0xe0] sm:$0xff] %vm459_vm0, %v5570_v26 }
 0xa6f   : > { %v5533_v57 = vpop.f32.mrf.mxu0 }
 0xa70   : > { %v5534_v22 = vadd.f32 %v6388_v5, %v5533_v57 }
 0xa72   : > { %v5571_v53 = vadd.f32 %v5534_v22, %v9192_v37 }
 0xa74   : > { %5603 = vst.msk [vmem:[%s9207_s30 + $0xe8] sm:$0xff] %vm459_vm0, %v5571_v53 }
 0xac1   : > { %v5536_v31 = vpop.f32.mrf.mxu0 }
 0xac2   : > { %v5537_v45 = vadd.f32 %v6388_v5, %v5536_v31 }
 0xac4   : > { %v5572_v12 = vadd.f32 %v5537_v45, %v9234_v61 }
 0xac6   : > { %5604 = vst.msk [vmem:[%s9207_s30 + $0xf0] sm:$0xff] %vm459_vm0, %v5572_v12 }
 0xaca   : > { %v5539_v20 = vpop.f32.mrf.mxu0 }
 0xacb   : > { %v5540_v27 = vadd.f32 %v6388_v5, %v5539_v20 }
 0xacd   : > { %v5573_v37 = vadd.f32 %v5540_v27, %v9266_v10 }
 0xacf   : > { %5605 = vst.msk [vmem:[%s9207_s30 + $0xf8] sm:$0xff] %vm459_vm0, %v5573_v37 }
 0xad0   : > { %6476 = shalt.err (!%p6473_p0)
}
 0xad1   : > { %s6526_s0 = smov 128   ;;  %s6527_s30 = smov 8  }
 0xad2   : > { %5990 = dma.vmem_to_hbm [thread:$0]  (%p6633_p11), %s5621_s29, 4096, %s5623_s13, %s5607_s17, %s6526_s0, %s6526_s0, %s6527_s30  }
 0xad3 PF: > { %s9688_s19 = sld [smem:[#allocation11_spill]]  ;;  %p9690_p1 = scmp.ge.s32.totalorder %s6519_s16, 2 }
 0xad5   : > { %p6000_p4 = pnand %p9690_p1, %p6637_p12 }
 0xad7   : > { %p6001_p7 = pneg %p6000_p4 }
 0xad9   : > { %s5637_s25 = sand.u32 1, %s9688_s19  }
 0xada   : > { %s5638_s22 = scalar_lea.sflag [#allocation4], %s5637_s25 }
 0xadb   : > { %6502 = dma.done.wait (%p6001_p7), %s5638_s22, 4096  }
 0xadc   : > { %6504 = vsyncadd (%p6001_p7), %s5638_s22, 4294963200  ;;  %s9691_s16 = sld [smem:[#allocation13_spill]]  ;;  %s9694_s13 = smov %s6511_s14 }
 0xadd   : > { %s9692_s24 = sld [smem:[#allocation12_spill]] }
 0xade   : > { %s9693_s15 = sld [smem:[#allocation14_spill]] }
 0xae2   : > { %p26_p5 = scmp.ge.s32.totalorder %s9691_s16, 4  }
 0xae3   : > { %s9695_s14 = smov %s9692_s24 }
 0xae4   :  { %28 = sbr.rel (!%p26_p5) target bundleno = 10 (0xa), region = 118 }
 0xae9   :  { %5644 = vsyncpa [#allocation3], 1 }
 0xaea   :  { %5646 = vsyncpa [#allocation3 + $0x1], 1 }
 0xaeb   :  { %5647 = vsyncpa [#allocation6], 1 }
 0xaec   :  { %5649 = vsyncpa [#allocation6 + $0x1], 1 }
 0xaed   :  { %5650 = vsyncpa [#allocation4], 1 }
 0xaee   :  { %5652 = vsyncpa [#allocation4 + $0x1], 1 }

</bundles_post_ra>
